<compile_context>
chip_gen: v7x
topology: tpu7x:2x2x1
jax: 0.10.0
libtpu: 0.0.40
codegen_flags: <defaults>
</compile_context>

<pallas_src>
import jax
import jax.numpy as jnp
from jax.experimental import pallas as pl
from jax.experimental.pallas import tpu as pltpu

# ---- model / problem sizes (consistent with the module) ----
BATCH     = 256         # total batch for the demo
TB        = 128         # batch rows per grid step (MXU-shaped LHS tile)
INPUT_DIM = 128
D_MODEL   = 64
N_HEADS   = 4           # seq_len == 1 => heads do not change the result
N_LAYERS  = 2
D_FF      = 2 * D_MODEL
D_HALF    = D_MODEL // 2
N_CLASSES = 2
OUT_PAD   = 128         # lane-dense (padded) classifier width
EPS       = 1e-5

# packed-vector slab layout: rows of a (VEC_ROWS, 128) f32 array
#   row 0            : b_in (BN folded in), zero-padded to 128 lanes
#   row 1            : pos embedding
#   rows 2 + 7*l ..  : per layer l: ln1_g, ln1_b, b_attn, ln2_g, ln2_b, b1, b2
#   last 4 rows      : lnp_g, lnp_b, bp (padded), bc (padded)
VEC_PER_LAYER = 7
VEC_ROWS_USED = 2 + N_LAYERS * VEC_PER_LAYER + 4
VEC_ROWS      = ((VEC_ROWS_USED + 7) // 8) * 8      # sublane-aligned slab


# ---------------- in-kernel math helpers (pure jnp, lower in Mosaic) ----------------
def _gelu(x):
    # tanh-approximation GELU (PyTorch gelu(approximate='tanh')).
    # Differs from exact erf-GELU by <~1e-3; well inside the bf16-matmul
    # tolerance, and moves work from the VALU slot to the otherwise-idle EUP.
    c = 0.7978845608028654   # sqrt(2/pi)
    return 0.5 * x * (1.0 + jnp.tanh(c * (x + 0.044715 * x * x * x)))


def _layernorm(x, g, b):
    # single-pass variance: E[x^2] - mu^2 (saves one elementwise pass per LN)
    mu = jnp.mean(x, axis=-1, keepdims=True)
    var = jnp.mean(x * x, axis=-1, keepdims=True) - mu * mu
    return (x - mu) * jax.lax.rsqrt(var + EPS) * g + b


# ---------------- the Pallas kernel (whole forward pass, one batch tile) ----------------
def smri_kernel(x_ref, vec_ref, w_in_ref, w_attn_ref, w1_ref, w2_ref, wp_ref, wc_ref,
                out_ref):
    bf16 = jnp.bfloat16

    def vec(row, width=D_MODEL):
        # static slice of the packed vector slab -> (1, width)
        return vec_ref[row:row + 1, :width]

    def mm(a, w):
        # bf16 MXU inputs, f32 accumulation
        return jnp.dot(a.astype(bf16), w, preferred_element_type=jnp.float32)

    x = x_ref[...]                                            # (TB, INPUT_DIM) f32

    # input_projection: Linear (with eval-mode BatchNorm folded in) -> ReLU
    # (Dropout = identity in eval mode)
    h = mm(x, w_in_ref[...]) + vec(0)
    h = jnp.maximum(h, 0.0)

    # unsqueeze(1) + pos_embedding  (seq_len == 1, sequence axis folded away)
    h = h + vec(1)

    # TransformerEncoder, norm_first=True, activation='gelu', eval mode.
    # seq_len == 1 => softmax over a single key is identically 1, so the
    # attention output equals out_proj(V); V/out projections pre-folded host-side.
    # TODO(synk): this shortcut is only valid for seq_len == 1 (as in this module).
    for l in range(N_LAYERS):
        base = 2 + l * VEC_PER_LAYER
        z = _layernorm(h, vec(base + 0), vec(base + 1))
        h = h + mm(z, w_attn_ref[l]) + vec(base + 2)

        z = _layernorm(h, vec(base + 3), vec(base + 4))
        z = _gelu(mm(z, w1_ref[l]) + vec(base + 5, D_FF))
        h = h + mm(z, w2_ref[l]) + vec(base + 6)

    # layer_dropout = identity (eval), squeeze(1) implicit

    # pre_classifier: LayerNorm -> Linear -> GELU   (weights lane-padded to 128)
    fb = 2 + N_LAYERS * VEC_PER_LAYER
    f = _layernorm(h, vec(fb + 0), vec(fb + 1))
    f = _gelu(mm(f, wp_ref[...]) + vec(fb + 2, OUT_PAD))

    # classifier (lane-dense 128-wide store; real logits live in cols [:2])
    out_ref[...] = mm(f, wc_ref[...]) + vec(fb + 3, OUT_PAD)


# ---------------- wrapper ----------------
@jax.jit
def smri_forward(x, packed):
    vec, w_in, w_attn, w1, w2, wp, wc = packed
    B = x.shape[0]
    B_pad = ((B + TB - 1) // TB) * TB
    if B_pad != B:
        x = jnp.pad(x, ((0, B_pad - B), (0, 0)))

    def rep(shape):
        nd = len(shape)
        return pl.BlockSpec(shape, lambda i, _nd=nd: (0,) * _nd)   # broadcast over grid

    # VMEM accounting (per review): bf16 weights ~160 KB single-buffered
    # (~320 KB double-buffered) + f32 (TB,128) in/out tiles 2*64 KB each
    # double-buffered (~256 KB) + the 12 KB vec slab  =>  < 1 MiB total.
    # Huge headroom vs v5e/v6e 128 MiB and v7x 64 MiB VMEM, so TB is chosen
    # for MXU / TensorCore utilization, not capacity.
    out = pl.pallas_call(
        smri_kernel,
        out_shape=jax.ShapeDtypeStruct((B_pad, OUT_PAD), jnp.float32),
        grid=(B_pad // TB,),
        in_specs=[
            pl.BlockSpec((TB, INPUT_DIM), lambda i: (i, 0)),
            rep(vec.shape), rep(w_in.shape), rep(w_attn.shape),
            rep(w1.shape), rep(w2.shape), rep(wp.shape), rep(wc.shape),
        ],
        out_specs=pl.BlockSpec((TB, OUT_PAD), lambda i: (i, 0)),
        compiler_params=pltpu.CompilerParams(dimension_semantics=("parallel",)),
    )(x, vec, w_in, w_attn, w1, w2, wp, wc)
    return out[:B, :N_CLASSES]


# ---------------- deterministic raw parameter construction (torch-like) ----------------
def _xavier(key, fan_in, fan_out):
    bound = (6.0 / (fan_in + fan_out)) ** 0.5
    # stored as (in, out) so the kernel does activations @ W
    return jax.random.uniform(key, (fan_in, fan_out), jnp.float32, -bound, bound)


def make_raw_params(key):
    ks = iter(jax.random.split(key, 64))
    f32 = jnp.float32

    w_in = _xavier(next(ks), INPUT_DIM, D_MODEL)
    b_in = jnp.zeros((1, D_MODEL), f32)
    bn_g = jnp.ones((1, D_MODEL), f32)
    bn_b = jnp.zeros((1, D_MODEL), f32)
    bn_m = jnp.zeros((1, D_MODEL), f32)        # running_mean (eval mode)
    bn_v = jnp.ones((1, D_MODEL), f32)         # running_var  (eval mode)
    pos  = 0.1 * jax.random.normal(next(ks), (1, D_MODEL), f32)

    ln1_g, ln1_b, wv, bv, wo, bo = [], [], [], [], [], []
    ln2_g, ln2_b, w1, b1, w2, b2 = [], [], [], [], [], []
    for _ in range(N_LAYERS):
        ln1_g.append(jnp.ones((1, D_MODEL), f32)); ln1_b.append(jnp.zeros((1, D_MODEL), f32))
        wv.append(_xavier(next(ks), D_MODEL, D_MODEL)); bv.append(jnp.zeros((1, D_MODEL), f32))
        wo.append(_xavier(next(ks), D_MODEL, D_MODEL)); bo.append(jnp.zeros((1, D_MODEL), f32))
        ln2_g.append(jnp.ones((1, D_MODEL), f32)); ln2_b.append(jnp.zeros((1, D_MODEL), f32))
        w1.append(_xavier(next(ks), D_MODEL, D_FF));   b1.append(jnp.zeros((1, D_FF), f32))
        w2.append(_xavier(next(ks), D_FF, D_MODEL));   b2.append(jnp.zeros((1, D_MODEL), f32))

    stack = lambda xs: jnp.stack(xs, axis=0)

    lnp_g = jnp.ones((1, D_MODEL), f32)
    lnp_b = jnp.zeros((1, D_MODEL), f32)
    wp = _xavier(next(ks), D_MODEL, D_HALF)
    bp = jnp.zeros((1, D_HALF), f32)
    wc = _xavier(next(ks), D_HALF, N_CLASSES)
    bc = jnp.zeros((1, N_CLASSES), f32)

    return (w_in, b_in, bn_g, bn_b, bn_m, bn_v, pos,
            stack(ln1_g), stack(ln1_b), stack(wv), stack(bv), stack(wo), stack(bo),
            stack(ln2_g), stack(ln2_b), stack(w1), stack(b1), stack(w2), stack(b2),
            lnp_g, lnp_b, wp, bp, wc, bc)


# ---------------- host-side folding / packing into kernel form ----------------
def pack_params(raw):
    (w_in, b_in, bn_g, bn_b, bn_m, bn_v, pos,
     ln1_g, ln1_b, wv, bv, wo, bo,
     ln2_g, ln2_b, w1, b1, w2, b2,
     lnp_g, lnp_b, wp, bp, wc, bc) = raw
    f32, bf16 = jnp.float32, jnp.bfloat16

    # fold eval-mode BatchNorm into the input Linear (exact affine)
    scale  = bn_g * jax.lax.rsqrt(bn_v + EPS)                   # (1, D)
    w_in_f = w_in * scale
    b_in_f = (b_in - bn_m) * scale + bn_b

    # fold V / out-proj per layer (valid because seq_len == 1 => softmax == 1)
    w_attn = jnp.einsum("lij,ljk->lik", wv, wo)                 # (L, D, D)
    b_attn = jnp.einsum("lij,ljk->lik", bv, wo) + bo            # (L, 1, D)

    def pad_lane(v, width=OUT_PAD):
        return jnp.pad(v, ((0, 0), (0, width - v.shape[-1])))

    # lane-dense pre-classifier / classifier weights.
    # INVARIANT: all padding here is exactly zero so the padded lanes of the
    # pre-classifier activation stay gelu(0) = 0 and cannot leak into the
    # logits through wc_p.
    wp_p = jnp.zeros((D_MODEL, OUT_PAD), f32).at[:, :D_HALF].set(wp)
    wc_p = jnp.zeros((OUT_PAD, OUT_PAD), f32).at[:D_HALF, :N_CLASSES].set(wc)

    rows = [pad_lane(b_in_f), pad_lane(pos)]
    for l in range(N_LAYERS):
        rows += [pad_lane(ln1_g[l]), pad_lane(ln1_b[l]), pad_lane(b_attn[l]),
                 pad_lane(ln2_g[l]), pad_lane(ln2_b[l]), pad_lane(b1[l]),
                 pad_lane(b2[l])]
    rows += [pad_lane(lnp_g), pad_lane(lnp_b), pad_lane(bp), pad_lane(bc)]
    vec = jnp.concatenate(rows, axis=0)
    vec = jnp.pad(vec, ((0, VEC_ROWS - vec.shape[0]), (0, 0)))  # (VEC_ROWS, 128) f32

    # matmul weights feed the MXU in bf16 (biases / LN vectors stay f32)
    cast = lambda a: a.astype(bf16)
    return (vec, cast(w_in_f), cast(w_attn), cast(w1), cast(w2),
            cast(wp_p), cast(wc_p))


# ---------------- pure-JAX reference (un-fused f32 math, mirrors the PyTorch module) ----------------
def _gelu_exact(x):
    return 0.5 * x * (1.0 + jax.scipy.special.erf(x * 0.7071067811865476))


def _layernorm_ref(x, g, b):
    mu = jnp.mean(x, axis=-1, keepdims=True)
    var = jnp.mean((x - mu) ** 2, axis=-1, keepdims=True)
    return (x - mu) * jax.lax.rsqrt(var + EPS) * g + b


def reference_forward(x, raw):
    (w_in, b_in, bn_g, bn_b, bn_m, bn_v, pos,
     ln1_g, ln1_b, wv, bv, wo, bo,
     ln2_g, ln2_b, w1, b1, w2, b2,
     lnp_g, lnp_b, wp, bp, wc, bc) = raw
    h = x @ w_in + b_in
    h = (h - bn_m) * jax.lax.rsqrt(bn_v + EPS) * bn_g + bn_b
    h = jnp.maximum(h, 0.0) + pos
    for l in range(N_LAYERS):
        z = _layernorm_ref(h, ln1_g[l], ln1_b[l])
        h = h + ((z @ wv[l] + bv[l]) @ wo[l] + bo[l])
        z = _layernorm_ref(h, ln2_g[l], ln2_b[l])
        h = h + (_gelu_exact(z @ w1[l] + b1[l]) @ w2[l] + b2[l])
    f = _gelu_exact(_layernorm_ref(h, lnp_g, lnp_b) @ wp + bp)
    return f @ wc + bc


if __name__ == "__main__":
    key = jax.random.PRNGKey(0)
    k_x, k_p = jax.random.split(key)
    x = jax.random.normal(k_x, (BATCH, INPUT_DIM), jnp.float32)

    raw = make_raw_params(k_p)
    packed = pack_params(raw)

    logits = smri_forward(x, packed)
    logits = jax.block_until_ready(logits)

    ref = reference_forward(x, raw)
    assert logits.shape == (BATCH, N_CLASSES)
    # bf16 MXU inputs + tanh-GELU vs the exact f32/erf reference => looser
    # tolerance than the old 1e-4 f32 check (per perf review).
    max_err = float(jnp.max(jnp.abs(logits - ref)))
    assert max_err < 1e-1, f"kernel/reference mismatch, max abs err = {max_err}"
    print("KERNEL_OK")
</pallas_src>

<mosaic_0001>
module attributes {stable_mosaic.version = 11 : i64} {
  func.func @smri_kernel(%arg0: i32, %arg1: memref<128x128xf32, #tpu.memory_space<vmem>>, %arg2: memref<24x128xf32, #tpu.memory_space<vmem>>, %arg3: memref<128x64xbf16, #tpu.memory_space<vmem>>, %arg4: memref<2x64x64xbf16, #tpu.memory_space<vmem>>, %arg5: memref<2x64x128xbf16, #tpu.memory_space<vmem>>, %arg6: memref<2x128x64xbf16, #tpu.memory_space<vmem>>, %arg7: memref<64x128xbf16, #tpu.memory_space<vmem>>, %arg8: memref<128x128xbf16, #tpu.memory_space<vmem>>, %arg9: memref<128x128xf32, #tpu.memory_space<vmem>>) attributes {dimension_semantics = [#tpu.dimension_semantics<parallel>], iteration_bounds = array<i64: 2>, scalar_prefetch = 0 : i64, scratch_operands = 0 : i64, tpu.core_type = #tpu.core_type<tc>, window_params = [{transform_indices = @transform_0, window_bounds = array<i64: 128, 128>}, {pipeline_mode = #tpu.pipeline_mode<synchronous>, transform_indices = @transform_1, window_bounds = array<i64: 24, 128>}, {pipeline_mode = #tpu.pipeline_mode<synchronous>, transform_indices = @transform_2, window_bounds = array<i64: 128, 64>}, {pipeline_mode = #tpu.pipeline_mode<synchronous>, transform_indices = @transform_3, window_bounds = array<i64: 2, 64, 64>}, {pipeline_mode = #tpu.pipeline_mode<synchronous>, transform_indices = @transform_4, window_bounds = array<i64: 2, 64, 128>}, {pipeline_mode = #tpu.pipeline_mode<synchronous>, transform_indices = @transform_5, window_bounds = array<i64: 2, 128, 64>}, {pipeline_mode = #tpu.pipeline_mode<synchronous>, transform_indices = @transform_6, window_bounds = array<i64: 64, 128>}, {pipeline_mode = #tpu.pipeline_mode<synchronous>, transform_indices = @transform_7, window_bounds = array<i64: 128, 128>}, {transform_indices = @transform_8, window_bounds = array<i64: 128, 128>}]} {
    %c0 = arith.constant 0 : index
    %c0_0 = arith.constant 0 : index
    %0 = vector.load %arg1[%c0, %c0_0] : memref<128x128xf32, #tpu.memory_space<vmem>>, vector<128x128xf32>
    %c0_1 = arith.constant 0 : index
    %c0_2 = arith.constant 0 : index
    %1 = vector.load %arg3[%c0_1, %c0_2] : memref<128x64xbf16, #tpu.memory_space<vmem>>, vector<128x64xbf16>
    %2 = arith.truncf %0 : vector<128x128xf32> to vector<128x128xbf16>
    %cst = arith.constant dense<0.000000e+00> : vector<128x64xf32>
    %3 = tpu.matmul %2, %1, %cst {dimension_numbers = #tpu.dot_dimension_numbers<[1], [0], [0], [1], [0, 0, 1, 1], [], []>} : vector<128x128xbf16>, vector<128x64xbf16>, vector<128x64xf32> -> vector<128x64xf32>
    %c0_3 = arith.constant 0 : index
    %c0_4 = arith.constant 0 : index
    %4 = vector.load %arg2[%c0_3, %c0_4] : memref<24x128xf32, #tpu.memory_space<vmem>>, vector<1x64xf32>
    %5 = vector.broadcast %4 : vector<1x64xf32> to vector<128x64xf32>
    %6 = arith.addf %3, %5 : vector<128x64xf32>
    %cst_5 = arith.constant 0.000000e+00 : f32
    %7 = vector.broadcast %cst_5 : f32 to vector<128x64xf32>
    %8 = arith.maximumf %6, %7 : vector<128x64xf32>
    %c1 = arith.constant 1 : index
    %c0_6 = arith.constant 0 : index
    %9 = vector.load %arg2[%c1, %c0_6] : memref<24x128xf32, #tpu.memory_space<vmem>>, vector<1x64xf32>
    %10 = vector.broadcast %9 : vector<1x64xf32> to vector<128x64xf32>
    %11 = arith.addf %8, %10 : vector<128x64xf32>
    %c2 = arith.constant 2 : index
    %c0_7 = arith.constant 0 : index
    %12 = vector.load %arg2[%c2, %c0_7] : memref<24x128xf32, #tpu.memory_space<vmem>>, vector<1x64xf32>
    %c3 = arith.constant 3 : index
    %c0_8 = arith.constant 0 : index
    %13 = vector.load %arg2[%c3, %c0_8] : memref<24x128xf32, #tpu.memory_space<vmem>>, vector<1x64xf32>
    %cst_9 = arith.constant dense<0.000000e+00> : vector<128xf32>
    %14 = vector.multi_reduction <add>, %11, %cst_9 [1] : vector<128x64xf32> to vector<128xf32>
    %15 = vector.shape_cast %14 : vector<128xf32> to vector<128x1xf32>
    %cst_10 = arith.constant 6.400000e+01 : f32
    %16 = vector.broadcast %cst_10 : f32 to vector<128x1xf32>
    %17 = arith.divf %15, %16 : vector<128x1xf32>
    %18 = arith.mulf %11, %11 : vector<128x64xf32>
    %cst_11 = arith.constant dense<0.000000e+00> : vector<128xf32>
    %19 = vector.multi_reduction <add>, %18, %cst_11 [1] : vector<128x64xf32> to vector<128xf32>
    %20 = vector.shape_cast %19 : vector<128xf32> to vector<128x1xf32>
    %cst_12 = arith.constant 6.400000e+01 : f32
    %21 = vector.broadcast %cst_12 : f32 to vector<128x1xf32>
    %22 = arith.divf %20, %21 : vector<128x1xf32>
    %23 = arith.mulf %17, %17 : vector<128x1xf32>
    %24 = arith.subf %22, %23 : vector<128x1xf32>
    %25 = vector.broadcast %17 : vector<128x1xf32> to vector<128x64xf32>
    %26 = arith.subf %11, %25 : vector<128x64xf32>
    %cst_13 = arith.constant 9.99999974E-6 : f32
    %27 = vector.broadcast %cst_13 : f32 to vector<128x1xf32>
    %28 = arith.addf %24, %27 : vector<128x1xf32>
    %29 = math.rsqrt %28 : vector<128x1xf32>
    %30 = vector.broadcast %29 : vector<128x1xf32> to vector<128x64xf32>
    %31 = arith.mulf %26, %30 : vector<128x64xf32>
    %32 = vector.broadcast %12 : vector<1x64xf32> to vector<128x64xf32>
    %33 = arith.mulf %31, %32 : vector<128x64xf32>
    %34 = vector.broadcast %13 : vector<1x64xf32> to vector<128x64xf32>
    %35 = arith.addf %33, %34 : vector<128x64xf32>
    %c0_14 = arith.constant 0 : index
    %c0_15 = arith.constant 0 : index
    %c0_16 = arith.constant 0 : index
    %36 = vector.load %arg4[%c0_14, %c0_15, %c0_16] : memref<2x64x64xbf16, #tpu.memory_space<vmem>>, vector<1x64x64xbf16>
    %37 = vector.shape_cast %36 : vector<1x64x64xbf16> to vector<64x64xbf16>
    %38 = arith.truncf %35 : vector<128x64xf32> to vector<128x64xbf16>
    %cst_17 = arith.constant dense<0.000000e+00> : vector<128x64xf32>
    %39 = tpu.matmul %38, %37, %cst_17 {dimension_numbers = #tpu.dot_dimension_numbers<[1], [0], [0], [1], [0, 0, 1, 1], [], []>} : vector<128x64xbf16>, vector<64x64xbf16>, vector<128x64xf32> -> vector<128x64xf32>
    %40 = arith.addf %11, %39 : vector<128x64xf32>
    %c4 = arith.constant 4 : index
    %c0_18 = arith.constant 0 : index
    %41 = vector.load %arg2[%c4, %c0_18] : memref<24x128xf32, #tpu.memory_space<vmem>>, vector<1x64xf32>
    %42 = vector.broadcast %41 : vector<1x64xf32> to vector<128x64xf32>
    %43 = arith.addf %40, %42 : vector<128x64xf32>
    %c5 = arith.constant 5 : index
    %c0_19 = arith.constant 0 : index
    %44 = vector.load %arg2[%c5, %c0_19] : memref<24x128xf32, #tpu.memory_space<vmem>>, vector<1x64xf32>
    %c6 = arith.constant 6 : index
    %c0_20 = arith.constant 0 : index
    %45 = vector.load %arg2[%c6, %c0_20] : memref<24x128xf32, #tpu.memory_space<vmem>>, vector<1x64xf32>
    %cst_21 = arith.constant dense<0.000000e+00> : vector<128xf32>
    %46 = vector.multi_reduction <add>, %43, %cst_21 [1] : vector<128x64xf32> to vector<128xf32>
    %47 = vector.shape_cast %46 : vector<128xf32> to vector<128x1xf32>
    %cst_22 = arith.constant 6.400000e+01 : f32
    %48 = vector.broadcast %cst_22 : f32 to vector<128x1xf32>
    %49 = arith.divf %47, %48 : vector<128x1xf32>
    %50 = arith.mulf %43, %43 : vector<128x64xf32>
    %cst_23 = arith.constant dense<0.000000e+00> : vector<128xf32>
    %51 = vector.multi_reduction <add>, %50, %cst_23 [1] : vector<128x64xf32> to vector<128xf32>
    %52 = vector.shape_cast %51 : vector<128xf32> to vector<128x1xf32>
    %cst_24 = arith.constant 6.400000e+01 : f32
    %53 = vector.broadcast %cst_24 : f32 to vector<128x1xf32>
    %54 = arith.divf %52, %53 : vector<128x1xf32>
    %55 = arith.mulf %49, %49 : vector<128x1xf32>
    %56 = arith.subf %54, %55 : vector<128x1xf32>
    %57 = vector.broadcast %49 : vector<128x1xf32> to vector<128x64xf32>
    %58 = arith.subf %43, %57 : vector<128x64xf32>
    %cst_25 = arith.constant 9.99999974E-6 : f32
    %59 = vector.broadcast %cst_25 : f32 to vector<128x1xf32>
    %60 = arith.addf %56, %59 : vector<128x1xf32>
    %61 = math.rsqrt %60 : vector<128x1xf32>
    %62 = vector.broadcast %61 : vector<128x1xf32> to vector<128x64xf32>
    %63 = arith.mulf %58, %62 : vector<128x64xf32>
    %64 = vector.broadcast %44 : vector<1x64xf32> to vector<128x64xf32>
    %65 = arith.mulf %63, %64 : vector<128x64xf32>
    %66 = vector.broadcast %45 : vector<1x64xf32> to vector<128x64xf32>
    %67 = arith.addf %65, %66 : vector<128x64xf32>
    %c0_26 = arith.constant 0 : index
    %c0_27 = arith.constant 0 : index
    %c0_28 = arith.constant 0 : index
    %68 = vector.load %arg5[%c0_26, %c0_27, %c0_28] : memref<2x64x128xbf16, #tpu.memory_space<vmem>>, vector<1x64x128xbf16>
    %69 = vector.shape_cast %68 : vector<1x64x128xbf16> to vector<64x128xbf16>
    %70 = arith.truncf %67 : vector<128x64xf32> to vector<128x64xbf16>
    %cst_29 = arith.constant dense<0.000000e+00> : vector<128x128xf32>
    %71 = tpu.matmul %70, %69, %cst_29 {dimension_numbers = #tpu.dot_dimension_numbers<[1], [0], [0], [1], [0, 0, 1, 1], [], []>} : vector<128x64xbf16>, vector<64x128xbf16>, vector<128x128xf32> -> vector<128x128xf32>
    %c7 = arith.constant 7 : index
    %c0_30 = arith.constant 0 : index
    %72 = vector.load %arg2[%c7, %c0_30] : memref<24x128xf32, #tpu.memory_space<vmem>>, vector<1x128xf32>
    %73 = vector.broadcast %72 : vector<1x128xf32> to vector<128x128xf32>
    %74 = arith.addf %71, %73 : vector<128x128xf32>
    %cst_31 = arith.constant 5.000000e-01 : f32
    %75 = vector.broadcast %cst_31 : f32 to vector<128x128xf32>
    %76 = arith.mulf %75, %74 : vector<128x128xf32>
    %cst_32 = arith.constant 4.471500e-02 : f32
    %77 = vector.broadcast %cst_32 : f32 to vector<128x128xf32>
    %78 = arith.mulf %77, %74 : vector<128x128xf32>
    %79 = arith.mulf %78, %74 : vector<128x128xf32>
    %80 = arith.mulf %79, %74 : vector<128x128xf32>
    %81 = arith.addf %74, %80 : vector<128x128xf32>
    %cst_33 = arith.constant 0.797884583 : f32
    %82 = vector.broadcast %cst_33 : f32 to vector<128x128xf32>
    %83 = arith.mulf %82, %81 : vector<128x128xf32>
    %84 = math.tanh %83 : vector<128x128xf32>
    %cst_34 = arith.constant 1.000000e+00 : f32
    %85 = vector.broadcast %cst_34 : f32 to vector<128x128xf32>
    %86 = arith.addf %85, %84 : vector<128x128xf32>
    %87 = arith.mulf %76, %86 : vector<128x128xf32>
    %c0_35 = arith.constant 0 : index
    %c0_36 = arith.constant 0 : index
    %c0_37 = arith.constant 0 : index
    %88 = vector.load %arg6[%c0_35, %c0_36, %c0_37] : memref<2x128x64xbf16, #tpu.memory_space<vmem>>, vector<1x128x64xbf16>
    %89 = vector.shape_cast %88 : vector<1x128x64xbf16> to vector<128x64xbf16>
    %90 = arith.truncf %87 : vector<128x128xf32> to vector<128x128xbf16>
    %cst_38 = arith.constant dense<0.000000e+00> : vector<128x64xf32>
    %91 = tpu.matmul %90, %89, %cst_38 {dimension_numbers = #tpu.dot_dimension_numbers<[1], [0], [0], [1], [0, 0, 1, 1], [], []>} : vector<128x128xbf16>, vector<128x64xbf16>, vector<128x64xf32> -> vector<128x64xf32>
    %92 = arith.addf %43, %91 : vector<128x64xf32>
    %c8 = arith.constant 8 : index
    %c0_39 = arith.constant 0 : index
    %93 = vector.load %arg2[%c8, %c0_39] : memref<24x128xf32, #tpu.memory_space<vmem>>, vector<1x64xf32>
    %94 = vector.broadcast %93 : vector<1x64xf32> to vector<128x64xf32>
    %95 = arith.addf %92, %94 : vector<128x64xf32>
    %c9 = arith.constant 9 : index
    %c0_40 = arith.constant 0 : index
    %96 = vector.load %arg2[%c9, %c0_40] : memref<24x128xf32, #tpu.memory_space<vmem>>, vector<1x64xf32>
    %c10 = arith.constant 10 : index
    %c0_41 = arith.constant 0 : index
    %97 = vector.load %arg2[%c10, %c0_41] : memref<24x128xf32, #tpu.memory_space<vmem>>, vector<1x64xf32>
    %cst_42 = arith.constant dense<0.000000e+00> : vector<128xf32>
    %98 = vector.multi_reduction <add>, %95, %cst_42 [1] : vector<128x64xf32> to vector<128xf32>
    %99 = vector.shape_cast %98 : vector<128xf32> to vector<128x1xf32>
    %cst_43 = arith.constant 6.400000e+01 : f32
    %100 = vector.broadcast %cst_43 : f32 to vector<128x1xf32>
    %101 = arith.divf %99, %100 : vector<128x1xf32>
    %102 = arith.mulf %95, %95 : vector<128x64xf32>
    %cst_44 = arith.constant dense<0.000000e+00> : vector<128xf32>
    %103 = vector.multi_reduction <add>, %102, %cst_44 [1] : vector<128x64xf32> to vector<128xf32>
    %104 = vector.shape_cast %103 : vector<128xf32> to vector<128x1xf32>
    %cst_45 = arith.constant 6.400000e+01 : f32
    %105 = vector.broadcast %cst_45 : f32 to vector<128x1xf32>
    %106 = arith.divf %104, %105 : vector<128x1xf32>
    %107 = arith.mulf %101, %101 : vector<128x1xf32>
    %108 = arith.subf %106, %107 : vector<128x1xf32>
    %109 = vector.broadcast %101 : vector<128x1xf32> to vector<128x64xf32>
    %110 = arith.subf %95, %109 : vector<128x64xf32>
    %cst_46 = arith.constant 9.99999974E-6 : f32
    %111 = vector.broadcast %cst_46 : f32 to vector<128x1xf32>
    %112 = arith.addf %108, %111 : vector<128x1xf32>
    %113 = math.rsqrt %112 : vector<128x1xf32>
    %114 = vector.broadcast %113 : vector<128x1xf32> to vector<128x64xf32>
    %115 = arith.mulf %110, %114 : vector<128x64xf32>
    %116 = vector.broadcast %96 : vector<1x64xf32> to vector<128x64xf32>
    %117 = arith.mulf %115, %116 : vector<128x64xf32>
    %118 = vector.broadcast %97 : vector<1x64xf32> to vector<128x64xf32>
    %119 = arith.addf %117, %118 : vector<128x64xf32>
    %c1_47 = arith.constant 1 : index
    %c0_48 = arith.constant 0 : index
    %c0_49 = arith.constant 0 : index
    %120 = vector.load %arg4[%c1_47, %c0_48, %c0_49] : memref<2x64x64xbf16, #tpu.memory_space<vmem>>, vector<1x64x64xbf16>
    %121 = vector.shape_cast %120 : vector<1x64x64xbf16> to vector<64x64xbf16>
    %122 = arith.truncf %119 : vector<128x64xf32> to vector<128x64xbf16>
    %cst_50 = arith.constant dense<0.000000e+00> : vector<128x64xf32>
    %123 = tpu.matmul %122, %121, %cst_50 {dimension_numbers = #tpu.dot_dimension_numbers<[1], [0], [0], [1], [0, 0, 1, 1], [], []>} : vector<128x64xbf16>, vector<64x64xbf16>, vector<128x64xf32> -> vector<128x64xf32>
    %124 = arith.addf %95, %123 : vector<128x64xf32>
    %c11 = arith.constant 11 : index
    %c0_51 = arith.constant 0 : index
    %125 = vector.load %arg2[%c11, %c0_51] : memref<24x128xf32, #tpu.memory_space<vmem>>, vector<1x64xf32>
    %126 = vector.broadcast %125 : vector<1x64xf32> to vector<128x64xf32>
    %127 = arith.addf %124, %126 : vector<128x64xf32>
    %c12 = arith.constant 12 : index
    %c0_52 = arith.constant 0 : index
    %128 = vector.load %arg2[%c12, %c0_52] : memref<24x128xf32, #tpu.memory_space<vmem>>, vector<1x64xf32>
    %c13 = arith.constant 13 : index
    %c0_53 = arith.constant 0 : index
    %129 = vector.load %arg2[%c13, %c0_53] : memref<24x128xf32, #tpu.memory_space<vmem>>, vector<1x64xf32>
    %cst_54 = arith.constant dense<0.000000e+00> : vector<128xf32>
    %130 = vector.multi_reduction <add>, %127, %cst_54 [1] : vector<128x64xf32> to vector<128xf32>
    %131 = vector.shape_cast %130 : vector<128xf32> to vector<128x1xf32>
    %cst_55 = arith.constant 6.400000e+01 : f32
    %132 = vector.broadcast %cst_55 : f32 to vector<128x1xf32>
    %133 = arith.divf %131, %132 : vector<128x1xf32>
    %134 = arith.mulf %127, %127 : vector<128x64xf32>
    %cst_56 = arith.constant dense<0.000000e+00> : vector<128xf32>
    %135 = vector.multi_reduction <add>, %134, %cst_56 [1] : vector<128x64xf32> to vector<128xf32>
    %136 = vector.shape_cast %135 : vector<128xf32> to vector<128x1xf32>
    %cst_57 = arith.constant 6.400000e+01 : f32
    %137 = vector.broadcast %cst_57 : f32 to vector<128x1xf32>
    %138 = arith.divf %136, %137 : vector<128x1xf32>
    %139 = arith.mulf %133, %133 : vector<128x1xf32>
    %140 = arith.subf %138, %139 : vector<128x1xf32>
    %141 = vector.broadcast %133 : vector<128x1xf32> to vector<128x64xf32>
    %142 = arith.subf %127, %141 : vector<128x64xf32>
    %cst_58 = arith.constant 9.99999974E-6 : f32
    %143 = vector.broadcast %cst_58 : f32 to vector<128x1xf32>
    %144 = arith.addf %140, %143 : vector<128x1xf32>
    %145 = math.rsqrt %144 : vector<128x1xf32>
    %146 = vector.broadcast %145 : vector<128x1xf32> to vector<128x64xf32>
    %147 = arith.mulf %142, %146 : vector<128x64xf32>
    %148 = vector.broadcast %128 : vector<1x64xf32> to vector<128x64xf32>
    %149 = arith.mulf %147, %148 : vector<128x64xf32>
    %150 = vector.broadcast %129 : vector<1x64xf32> to vector<128x64xf32>
    %151 = arith.addf %149, %150 : vector<128x64xf32>
    %c1_59 = arith.constant 1 : index
    %c0_60 = arith.constant 0 : index
    %c0_61 = arith.constant 0 : index
    %152 = vector.load %arg5[%c1_59, %c0_60, %c0_61] : memref<2x64x128xbf16, #tpu.memory_space<vmem>>, vector<1x64x128xbf16>
    %153 = vector.shape_cast %152 : vector<1x64x128xbf16> to vector<64x128xbf16>
    %154 = arith.truncf %151 : vector<128x64xf32> to vector<128x64xbf16>
    %cst_62 = arith.constant dense<0.000000e+00> : vector<128x128xf32>
    %155 = tpu.matmul %154, %153, %cst_62 {dimension_numbers = #tpu.dot_dimension_numbers<[1], [0], [0], [1], [0, 0, 1, 1], [], []>} : vector<128x64xbf16>, vector<64x128xbf16>, vector<128x128xf32> -> vector<128x128xf32>
    %c14 = arith.constant 14 : index
    %c0_63 = arith.constant 0 : index
    %156 = vector.load %arg2[%c14, %c0_63] : memref<24x128xf32, #tpu.memory_space<vmem>>, vector<1x128xf32>
    %157 = vector.broadcast %156 : vector<1x128xf32> to vector<128x128xf32>
    %158 = arith.addf %155, %157 : vector<128x128xf32>
    %cst_64 = arith.constant 5.000000e-01 : f32
    %159 = vector.broadcast %cst_64 : f32 to vector<128x128xf32>
    %160 = arith.mulf %159, %158 : vector<128x128xf32>
    %cst_65 = arith.constant 4.471500e-02 : f32
    %161 = vector.broadcast %cst_65 : f32 to vector<128x128xf32>
    %162 = arith.mulf %161, %158 : vector<128x128xf32>
    %163 = arith.mulf %162, %158 : vector<128x128xf32>
    %164 = arith.mulf %163, %158 : vector<128x128xf32>
    %165 = arith.addf %158, %164 : vector<128x128xf32>
    %cst_66 = arith.constant 0.797884583 : f32
    %166 = vector.broadcast %cst_66 : f32 to vector<128x128xf32>
    %167 = arith.mulf %166, %165 : vector<128x128xf32>
    %168 = math.tanh %167 : vector<128x128xf32>
    %cst_67 = arith.constant 1.000000e+00 : f32
    %169 = vector.broadcast %cst_67 : f32 to vector<128x128xf32>
    %170 = arith.addf %169, %168 : vector<128x128xf32>
    %171 = arith.mulf %160, %170 : vector<128x128xf32>
    %c1_68 = arith.constant 1 : index
    %c0_69 = arith.constant 0 : index
    %c0_70 = arith.constant 0 : index
    %172 = vector.load %arg6[%c1_68, %c0_69, %c0_70] : memref<2x128x64xbf16, #tpu.memory_space<vmem>>, vector<1x128x64xbf16>
    %173 = vector.shape_cast %172 : vector<1x128x64xbf16> to vector<128x64xbf16>
    %174 = arith.truncf %171 : vector<128x128xf32> to vector<128x128xbf16>
    %cst_71 = arith.constant dense<0.000000e+00> : vector<128x64xf32>
    %175 = tpu.matmul %174, %173, %cst_71 {dimension_numbers = #tpu.dot_dimension_numbers<[1], [0], [0], [1], [0, 0, 1, 1], [], []>} : vector<128x128xbf16>, vector<128x64xbf16>, vector<128x64xf32> -> vector<128x64xf32>
    %176 = arith.addf %127, %175 : vector<128x64xf32>
    %c15 = arith.constant 15 : index
    %c0_72 = arith.constant 0 : index
    %177 = vector.load %arg2[%c15, %c0_72] : memref<24x128xf32, #tpu.memory_space<vmem>>, vector<1x64xf32>
    %178 = vector.broadcast %177 : vector<1x64xf32> to vector<128x64xf32>
    %179 = arith.addf %176, %178 : vector<128x64xf32>
    %c16 = arith.constant 16 : index
    %c0_73 = arith.constant 0 : index
    %180 = vector.load %arg2[%c16, %c0_73] : memref<24x128xf32, #tpu.memory_space<vmem>>, vector<1x64xf32>
    %c17 = arith.constant 17 : index
    %c0_74 = arith.constant 0 : index
    %181 = vector.load %arg2[%c17, %c0_74] : memref<24x128xf32, #tpu.memory_space<vmem>>, vector<1x64xf32>
    %cst_75 = arith.constant dense<0.000000e+00> : vector<128xf32>
    %182 = vector.multi_reduction <add>, %179, %cst_75 [1] : vector<128x64xf32> to vector<128xf32>
    %183 = vector.shape_cast %182 : vector<128xf32> to vector<128x1xf32>
    %cst_76 = arith.constant 6.400000e+01 : f32
    %184 = vector.broadcast %cst_76 : f32 to vector<128x1xf32>
    %185 = arith.divf %183, %184 : vector<128x1xf32>
    %186 = arith.mulf %179, %179 : vector<128x64xf32>
    %cst_77 = arith.constant dense<0.000000e+00> : vector<128xf32>
    %187 = vector.multi_reduction <add>, %186, %cst_77 [1] : vector<128x64xf32> to vector<128xf32>
    %188 = vector.shape_cast %187 : vector<128xf32> to vector<128x1xf32>
    %cst_78 = arith.constant 6.400000e+01 : f32
    %189 = vector.broadcast %cst_78 : f32 to vector<128x1xf32>
    %190 = arith.divf %188, %189 : vector<128x1xf32>
    %191 = arith.mulf %185, %185 : vector<128x1xf32>
    %192 = arith.subf %190, %191 : vector<128x1xf32>
    %193 = vector.broadcast %185 : vector<128x1xf32> to vector<128x64xf32>
    %194 = arith.subf %179, %193 : vector<128x64xf32>
    %cst_79 = arith.constant 9.99999974E-6 : f32
    %195 = vector.broadcast %cst_79 : f32 to vector<128x1xf32>
    %196 = arith.addf %192, %195 : vector<128x1xf32>
    %197 = math.rsqrt %196 : vector<128x1xf32>
    %198 = vector.broadcast %197 : vector<128x1xf32> to vector<128x64xf32>
    %199 = arith.mulf %194, %198 : vector<128x64xf32>
    %200 = vector.broadcast %180 : vector<1x64xf32> to vector<128x64xf32>
    %201 = arith.mulf %199, %200 : vector<128x64xf32>
    %202 = vector.broadcast %181 : vector<1x64xf32> to vector<128x64xf32>
    %203 = arith.addf %201, %202 : vector<128x64xf32>
    %c0_80 = arith.constant 0 : index
    %c0_81 = arith.constant 0 : index
    %204 = vector.load %arg7[%c0_80, %c0_81] : memref<64x128xbf16, #tpu.memory_space<vmem>>, vector<64x128xbf16>
    %205 = arith.truncf %203 : vector<128x64xf32> to vector<128x64xbf16>
    %cst_82 = arith.constant dense<0.000000e+00> : vector<128x128xf32>
    %206 = tpu.matmul %205, %204, %cst_82 {dimension_numbers = #tpu.dot_dimension_numbers<[1], [0], [0], [1], [0, 0, 1, 1], [], []>} : vector<128x64xbf16>, vector<64x128xbf16>, vector<128x128xf32> -> vector<128x128xf32>
    %c18 = arith.constant 18 : index
    %c0_83 = arith.constant 0 : index
    %207 = vector.load %arg2[%c18, %c0_83] : memref<24x128xf32, #tpu.memory_space<vmem>>, vector<1x128xf32>
    %208 = vector.broadcast %207 : vector<1x128xf32> to vector<128x128xf32>
    %209 = arith.addf %206, %208 : vector<128x128xf32>
    %cst_84 = arith.constant 5.000000e-01 : f32
    %210 = vector.broadcast %cst_84 : f32 to vector<128x128xf32>
    %211 = arith.mulf %210, %209 : vector<128x128xf32>
    %cst_85 = arith.constant 4.471500e-02 : f32
    %212 = vector.broadcast %cst_85 : f32 to vector<128x128xf32>
    %213 = arith.mulf %212, %209 : vector<128x128xf32>
    %214 = arith.mulf %213, %209 : vector<128x128xf32>
    %215 = arith.mulf %214, %209 : vector<128x128xf32>
    %216 = arith.addf %209, %215 : vector<128x128xf32>
    %cst_86 = arith.constant 0.797884583 : f32
    %217 = vector.broadcast %cst_86 : f32 to vector<128x128xf32>
    %218 = arith.mulf %217, %216 : vector<128x128xf32>
    %219 = math.tanh %218 : vector<128x128xf32>
    %cst_87 = arith.constant 1.000000e+00 : f32
    %220 = vector.broadcast %cst_87 : f32 to vector<128x128xf32>
    %221 = arith.addf %220, %219 : vector<128x128xf32>
    %222 = arith.mulf %211, %221 : vector<128x128xf32>
    %c0_88 = arith.constant 0 : index
    %c0_89 = arith.constant 0 : index
    %223 = vector.load %arg8[%c0_88, %c0_89] : memref<128x128xbf16, #tpu.memory_space<vmem>>, vector<128x128xbf16>
    %224 = arith.truncf %222 : vector<128x128xf32> to vector<128x128xbf16>
    %cst_90 = arith.constant dense<0.000000e+00> : vector<128x128xf32>
    %225 = tpu.matmul %224, %223, %cst_90 {dimension_numbers = #tpu.dot_dimension_numbers<[1], [0], [0], [1], [0, 0, 1, 1], [], []>} : vector<128x128xbf16>, vector<128x128xbf16>, vector<128x128xf32> -> vector<128x128xf32>
    %c19 = arith.constant 19 : index
    %c0_91 = arith.constant 0 : index
    %226 = vector.load %arg2[%c19, %c0_91] : memref<24x128xf32, #tpu.memory_space<vmem>>, vector<1x128xf32>
    %227 = vector.broadcast %226 : vector<1x128xf32> to vector<128x128xf32>
    %228 = arith.addf %225, %227 : vector<128x128xf32>
    %c0_92 = arith.constant 0 : index
    %c0_93 = arith.constant 0 : index
    %229 = vector.load %arg9[%c0_92, %c0_93] : memref<128x128xf32, #tpu.memory_space<vmem>>, vector<128x128xf32>
    tpu.vector_store %arg9[%c0_92, %c0_93], %228 {strides = array<i32>} : memref<128x128xf32, #tpu.memory_space<vmem>>, vector<128x128xf32>,
    return
  }
  func.func @transform_0(%arg0: i32) -> (i32, i32) {
    %c0_i32 = arith.constant 0 : i32
    %c0_i32_0 = arith.constant 0 : i32
    return %arg0, %c0_i32 : i32, i32
  }
  func.func @transform_1(%arg0: i32) -> (i32, i32) {
    %c0_i32 = arith.constant 0 : i32
    %c0_i32_0 = arith.constant 0 : i32
    %c0_i32_1 = arith.constant 0 : i32
    return %c0_i32, %c0_i32_0 : i32, i32
  }
  func.func @transform_2(%arg0: i32) -> (i32, i32) {
    %c0_i32 = arith.constant 0 : i32
    %c0_i32_0 = arith.constant 0 : i32
    %c0_i32_1 = arith.constant 0 : i32
    return %c0_i32, %c0_i32_0 : i32, i32
  }
  func.func @transform_3(%arg0: i32) -> (i32, i32, i32) {
    %c0_i32 = arith.constant 0 : i32
    %c0_i32_0 = arith.constant 0 : i32
    %c0_i32_1 = arith.constant 0 : i32
    %c0_i32_2 = arith.constant 0 : i32
    return %c0_i32, %c0_i32_0, %c0_i32_1 : i32, i32, i32
  }
  func.func @transform_4(%arg0: i32) -> (i32, i32, i32) {
    %c0_i32 = arith.constant 0 : i32
    %c0_i32_0 = arith.constant 0 : i32
    %c0_i32_1 = arith.constant 0 : i32
    %c0_i32_2 = arith.constant 0 : i32
    return %c0_i32, %c0_i32_0, %c0_i32_1 : i32, i32, i32
  }
  func.func @transform_5(%arg0: i32) -> (i32, i32, i32) {
    %c0_i32 = arith.constant 0 : i32
    %c0_i32_0 = arith.constant 0 : i32
    %c0_i32_1 = arith.constant 0 : i32
    %c0_i32_2 = arith.constant 0 : i32
    return %c0_i32, %c0_i32_0, %c0_i32_1 : i32, i32, i32
  }
  func.func @transform_6(%arg0: i32) -> (i32, i32) {
    %c0_i32 = arith.constant 0 : i32
    %c0_i32_0 = arith.constant 0 : i32
    %c0_i32_1 = arith.constant 0 : i32
    return %c0_i32, %c0_i32_0 : i32, i32
  }
  func.func @transform_7(%arg0: i32) -> (i32, i32) {
    %c0_i32 = arith.constant 0 : i32
    %c0_i32_0 = arith.constant 0 : i32
    %c0_i32_1 = arith.constant 0 : i32
    return %c0_i32, %c0_i32_0 : i32, i32
  }
  func.func @transform_8(%arg0: i32) -> (i32, i32) {
    %c0_i32 = arith.constant 0 : i32
    %c0_i32_0 = arith.constant 0 : i32
    return %arg0, %c0_i32 : i32, i32
  }
}

</mosaic_0001>

<bundles_post_ra>
// kernel: smri_forward.1
= control target key start
LH: loop header
LB: loop body
LE: loop exit
PB: predicated region body
PF: predicated region fallthrough
CT: control target
= control target key end

     0   :  { %13 = vsyncpa [#allocation3], 0  ;;  %s6873_s0 = inlined_call_operand.vmem [shape: f32[256,128], index: 0, kind: input, shape index: {}]   ;;  %s6874_s1 = inlined_call_operand.hbm [shape: f32[24,128], index: 1, kind: input, shape index: {}]   ;;  %s6875_s2 = inlined_call_operand.vmem [shape: bf16[128,64], index: 2, kind: input, shape index: {}]   ;;  %s6876_s3 = inlined_call_operand.hbm [shape: bf16[2,64,64], index: 3, kind: input, shape index: {}]   ;;  %s6877_s4 = inlined_call_operand.hbm [shape: bf16[2,64,128], index: 4, kind: input, shape index: {}]   ;;  %s6878_s5 = inlined_call_operand.vmem [shape: bf16[2,128,64], index: 5, kind: input, shape index: {}]   ;;  %s6879_s6 = inlined_call_operand.vmem [shape: bf16[64,128], index: 6, kind: input, shape index: {}]   ;;  %s6880_s7 = inlined_call_operand.hbm [shape: bf16[128,128], index: 7, kind: input, shape index: {}]   ;;  %s6881_s8 = inlined_call_operand.vmem [shape: f32[256,128], index: 8, kind: output, shape index: {}]  }
   0x1   :  { %14 = vsyncpa [#allocation5], 0 }
   0x2   :  { %15 = vsyncpa [#allocation8], 0  ;;  %s5117_s27 = smov 0  }
   0x3 LB: > { %s5064_s28 = smov [#allocation4]   ;;  %s6882_s30 = sadd.s32 4294967295, %s5062_s27   ;;  %s5062_s27 = sphi %s5117_s27, %s21_s27  }
   0x4   : > { %s253_s29 = sshll.u32 %s5064_s28, 4  ;;  %p4038_p0 = scmp.ge.s32.totalorder %s5062_s27, 1  ;;  %s5131_s29 = int_to_ptr.vmem [resolvable:$true] %s253_s29 }
   0x5   : > { %p225_p1 = scmp.lt.s32.totalorder %s5062_s27, 3  ;;  %p5127_p2 = scmp.eq.s32.totalorder %s6882_s30, 0 }
   0x6   : > { %s5065_s11 = smov [#allocation2]   ;;  %s5066_s14 = smov [#allocation6]  }
   0x7   : > { %s6886_s9 = scalar_select %p5127_p2, 1, 0 }
   0x8   : > { %p5133_p3 = pnand %p4038_p0, %p225_p1  ;;  %s237_s12 = sshll.u32 %s5065_s11, 4  ;;  %s5139_s12 = int_to_ptr.vmem [resolvable:$true] %s237_s12 }
   0x9   : > { %s5147_s15 = sshll.u32 %s5066_s14, 4  ;;  %s4932_s18 = scalar_lea.hbm %s6876_s3, 1024  ;;  %s267_s15 = int_to_ptr.vmem [resolvable:$true] %s5147_s15 }
   0xa   : > { %s6887_s10 = scalar_select %p5133_p3, 1, 0 }
   0xb   : > { %p4587_p4 = pneg %p5133_p3  ;;  %p4933_p6 = scmp.ne.s32.totalorder %s6876_s3, %s4932_s18 }
   0xc   : > { %p4939_p10 = scmp.lt.u32.totalorder %s4932_s18, %s6876_s3 }
   0xd   : > { %p5143_p5 = pnand %p5127_p2, %p4587_p4 }
   0xf   : > { %p5157_p7 = pneg %p5143_p5 }
  0x11   : > { %p4935_p8 = pnand %p5157_p7, %p4933_p6 }
  0x13   : > { %p4936_p9 = pneg %p4935_p8 }
  0x15   : > { %p4941_p11 = pnand %p4939_p10, %p4936_p9 }
  0x17   : > { %4944 = shalt.err (!%p4941_p11)
}
  0x18   : > { %s4945_s24 = scalar_lea.vmem %s5131_s29, 1024  ;;  %p4953_p1 = scmp.lt.s32.totalorder %s5131_s29, %s5131_s29 }
  0x19   : > { %p4946_p12 = scmp.ne.s32.totalorder %s5131_s29, %s4945_s24  ;;  %p4954_p4 = scmp.lt.s32.totalorder %s4945_s24, %s4945_s24 }
  0x1b   : > { %p4948_p13 = pnand %p4946_p12, %p5157_p7  ;;  %p4955_p6 = por %p4954_p4, %p4953_p1 }
  0x1d   : > { %p4949_p0 = pneg %p4948_p13 }
  0x1f   : > { %p4956_p8 = pnand %p4955_p6, %p4949_p0 }
  0x21   : > { %4959 = shalt.err (!%p4956_p8)
}
  0x22   : > { %s5067_s25 = smov 64   ;;  %s5068_s26 = smov 4  }
  0x23   : > { %4593 = dma.hbm_to_vmem [thread:$0]  (!%p5143_p5), %s6876_s3, 1024, %s5131_s29, [#allocation5], %s5067_s25, %s5067_s25, %s5068_s26  }
  0x24   : > { %s4960_s17 = scalar_lea.hbm %s6874_s1, 384 }
  0x25   : > { %p4961_p9 = scmp.ne.s32.totalorder %s6874_s1, %s4960_s17  ;;  %p4967_p12 = scmp.lt.u32.totalorder %s4960_s17, %s6874_s1 }
  0x27   : > { %p4963_p10 = pnand %p4961_p9, %p5157_p7 }
  0x29   : > { %p4964_p11 = pneg %p4963_p10 }
  0x2b   : > { %p4969_p13 = pnand %p4967_p12, %p4964_p11 }
  0x2d   : > { %4972 = shalt.err (!%p4969_p13)
}
  0x2e   : > { %s4973_s29 = scalar_lea.vmem %s5139_s12, 384  ;;  %p4981_p6 = scmp.lt.s32.totalorder %s5139_s12, %s5139_s12 }
  0x2f   : > { %p4974_p0 = scmp.ne.s32.totalorder %s5139_s12, %s4973_s29  ;;  %p4982_p8 = scmp.lt.s32.totalorder %s4973_s29, %s4973_s29 }
  0x31   : > { %p4976_p1 = pnand %p4974_p0, %p5157_p7  ;;  %p4983_p9 = por %p4982_p8, %p4981_p6 }
  0x33   : > { %p4977_p4 = pneg %p4976_p1 }
  0x35   : > { %p4984_p10 = pnand %p4983_p9, %p4977_p4 }
  0x37   : > { %4987 = shalt.err (!%p4984_p10)
}
  0x38   : > { %s5069_s23 = smov 128   ;;  %s5070_s24 = smov 8  }
  0x39   : > { %4590 = dma.hbm_to_vmem [thread:$0]  (!%p5143_p5), %s6874_s1, 384, %s5139_s12, [#allocation3], %s5069_s23, %s5069_s23, %s5070_s24  }
  0x3a   : > { %s5071_s14 = smov [#allocation7]   ;;  %s4988_s19 = scalar_lea.hbm %s6877_s4, 1024 }
  0x3b   : > { %s285_s16 = sshll.u32 %s5071_s14, 4  ;;  %p4989_p11 = scmp.ne.s32.totalorder %s6877_s4, %s4988_s19  ;;  %s286_s16 = int_to_ptr.vmem [resolvable:$true] %s285_s16 }
  0x3c   : > { %p4995_p0 = scmp.lt.u32.totalorder %s4988_s19, %s6877_s4 }
  0x3d   : > { %p4991_p12 = pnand %p4989_p11, %p5157_p7 }
  0x3f   : > { %p4992_p13 = pneg %p4991_p12 }
  0x41   : > { %p4997_p1 = pnand %p4995_p0, %p4992_p13 }
  0x43   : > { %5000 = shalt.err (!%p4997_p1)
}
  0x44   : > { %s5001_s12 = scalar_lea.vmem %s267_s15, 1024  ;;  %p5009_p9 = scmp.lt.s32.totalorder %s267_s15, %s267_s15 }
  0x45   : > { %p5002_p4 = scmp.ne.s32.totalorder %s267_s15, %s5001_s12  ;;  %p5010_p10 = scmp.lt.s32.totalorder %s5001_s12, %s5001_s12 }
  0x47   : > { %p5004_p6 = pnand %p5002_p4, %p5157_p7  ;;  %p5011_p2 = por %p5010_p10, %p5009_p9 }
  0x49   : > { %p5005_p8 = pneg %p5004_p6 }
  0x4b   : > { %p5012_p3 = pnand %p5011_p2, %p5005_p8 }
  0x4d   : > { %5015 = shalt.err (!%p5012_p3)
}
  0x4e   : > { %4596 = dma.hbm_to_vmem [thread:$0]  (!%p5143_p5), %s6877_s4, 1024, %s267_s15, [#allocation5], %s5067_s25, %s5067_s25, %s5068_s26  }
  0x4f   : > { %s5016_s11 = scalar_lea.hbm %s6880_s7, 1024 }
  0x50   : > { %p5017_p2 = scmp.ne.s32.totalorder %s6880_s7, %s5016_s11  ;;  %p5023_p12 = scmp.lt.u32.totalorder %s5016_s11, %s6880_s7 }
  0x52   : > { %p5019_p3 = pnand %p5017_p2, %p5157_p7 }
  0x54   : > { %p5020_p11 = pneg %p5019_p3 }
  0x56   : > { %p5025_p13 = pnand %p5023_p12, %p5020_p11 }
  0x58   : > { %5028 = shalt.err (!%p5025_p13)
}
  0x59   : > { %s5029_s20 = scalar_lea.vmem %s286_s16, 1024  ;;  %p5037_p6 = scmp.lt.s32.totalorder %s286_s16, %s286_s16 }
  0x5a   : > { %p5030_p0 = scmp.ne.s32.totalorder %s286_s16, %s5029_s20  ;;  %p5038_p8 = scmp.lt.s32.totalorder %s5029_s20, %s5029_s20 }
  0x5c   : > { %p5032_p1 = pnand %p5030_p0, %p5157_p7  ;;  %p5039_p9 = por %p5038_p8, %p5037_p6 }
  0x5e   : > { %p5033_p4 = pneg %p5032_p1 }
  0x60   : > { %p5040_p10 = pnand %p5039_p9, %p5033_p4 }
  0x62   : > { %5043 = shalt.err (!%p5040_p10)
}
  0x63   : > { %4599 = dma.hbm_to_vmem [thread:$0]  (!%p5143_p5), %s6880_s7, 1024, %s286_s16, [#allocation8], %s5067_s25, %s5067_s25, %s5068_s26  }
  0x64   : > { %p6890_p2 = scmp.ne.s32.totalorder %s6887_s10, 0 }
  0x65   : > { %p6891_p7 = scmp.ne.s32.totalorder (!%p6890_p2), %s6886_s9, 0 }
  0x66   : > { %310 = sbr.rel (%p6890_p2) target bundleno = 3143 (0xc47), region = 52 }
  0x6d   : > { %5049 = dma.done.wait (%p6891_p7), [#allocation3], 384  }
  0x6e   : > { %5051 = vsyncadd (%p6891_p7), [#allocation3], 4294966912 }
  0x6f   : > { %5053 = dma.done.wait (%p6891_p7), [#allocation5], 2048  }
  0x70   : > { %5055 = vsyncadd (%p6891_p7), [#allocation5], 4294965248 }
  0x71   : > { %5057 = dma.done.wait (%p6891_p7), [#allocation8], 1024  }
  0x72   : > { %5059 = vsyncadd (%p6891_p7), [#allocation8], 4294966272  ;;  %s6892_s10 = sadd.s32 4294967295, %s5062_s27   ;;  %v4624_v0 = vld [vmem:[%s6875_s2] sm:$0xff]   ;;  %v4625_v1 = vld [vmem:[%s6875_s2 + $0x8] sm:$0xff]   ;;  %vm598_vm0 = vcmask 523264  }
  0x73   : > { %s4049_s13 = sshll.u32 %s6892_s10, 4  ;;  %4307 = vmatprep.subr.bf16.mxu0 %v4624_v0  ;;  %v4626_v2 = vld [vmem:[%s6875_s2 + $0x10] sm:$0xff]   ;;  %v4627_v3 = vld [vmem:[%s6875_s2 + $0x18] sm:$0xff]   ;;  %v4628_v7 = vld [vmem:[%s6875_s2 + $0x20] sm:$0xff]  }
  0x74   : > { %p357_p5 = scmp.lt.s32.totalorder %s4049_s13, 31  ;;  %4308 = vmatpush3.bf16.msra.mxu0 %v4624_v0  ;;  %v4629_v8 = vld [vmem:[%s6875_s2 + $0x28] sm:$0xff]   ;;  %v4630_v9 = vld [vmem:[%s6875_s2 + $0x30] sm:$0xff]   ;;  %v4631_v10 = vld [vmem:[%s6875_s2 + $0x38] sm:$0xff]  }
  0x75   : > { %4309 = vmatprep.subr.bf16.mxu0 %v4625_v1  ;;  %v5313_v32 = vld [vmem:[#allocation2] ss:$0 sm:$0xff]  ;;  %v5316_v36 = vld [vmem:[#allocation2 + $0x1] ss:$0 sm:$0xff] }
  0x76   : > { %s6894_s13 = smov (!%p357_p5, %s4049_s13), 31 }
  0x77   : > { %s4050_s29 = sshll.u32 %s6894_s13, 3 }
  0x78   : > { %s5280_s24 = scalar_lea.vmem %s6873_s0, %s4050_s29  ;;  %4310 = vmatpush3.bf16.msra.mxu0 %v4625_v1  ;;  %s6852_s9 = scalar_lea.vmem %s6881_s8, %s4050_s29 }
  0x79   : > { %4311 = vmatprep.subr.bf16.mxu0 %v4626_v2  ;;  %v369_v4 = vld [vmem:[%s5280_s24] sm:$0xff]  ;;  %v370_v5 = vld [vmem:[%s5280_s24 + $0x8] sm:$0xff]  ;;  %v371_v11 = vld [vmem:[%s5280_s24 + $0x10] sm:$0xff] }
  0x7a   : > { %v401_v6 = vpack.c.bf16 %v370_v5, %v369_v4  ;;  %v372_v12 = vld [vmem:[%s5280_s24 + $0x18] sm:$0xff]  ;;  %v373_v13 = vld [vmem:[%s5280_s24 + $0x20] sm:$0xff]  ;;  %v374_v14 = vld [vmem:[%s5280_s24 + $0x28] sm:$0xff] }
  0x7b   : > { %v402_v15 = vpack.c.bf16 %v372_v12, %v371_v11  ;;  %v403_v16 = vpack.c.bf16 %v374_v14, %v373_v13  ;;  %v375_v17 = vld [vmem:[%s5280_s24 + $0x30] sm:$0xff]  ;;  %v376_v18 = vld [vmem:[%s5280_s24 + $0x38] sm:$0xff]  ;;  %v377_v19 = vld [vmem:[%s5280_s24 + $0x40] sm:$0xff] }
  0x7c   : > { %4312 = vmatpush3.bf16.msra.mxu0 %v4626_v2  ;;  %4323 = vmatprep.mubr.bf16.mxu0 %v401_v6  ;;  %v378_v20 = vld [vmem:[%s5280_s24 + $0x48] sm:$0xff]  ;;  %v404_v21 = vpack.c.bf16 %v376_v18, %v375_v17  ;;  %v379_v23 = vld [vmem:[%s5280_s24 + $0x50] sm:$0xff]  ;;  %v380_v24 = vld [vmem:[%s5280_s24 + $0x58] sm:$0xff] }
  0x7d   : > { %4313 = vmatprep.subr.bf16.mxu0 %v4627_v3  ;;  %v405_v22 = vpack.c.bf16 %v378_v20, %v377_v19  ;;  %v381_v25 = vld [vmem:[%s5280_s24 + $0x60] sm:$0xff]  ;;  %v382_v26 = vld [vmem:[%s5280_s24 + $0x68] sm:$0xff]  ;;  %v406_v27 = vpack.c.bf16 %v380_v24, %v379_v23  ;;  %v383_v29 = vld [vmem:[%s5280_s24 + $0x70] sm:$0xff] }
  0x7e   : > { %v407_v28 = vpack.c.bf16 %v382_v26, %v381_v25  ;;  %v384_v30 = vld [vmem:[%s5280_s24 + $0x78] sm:$0xff] }
  0x7f   : > { %v408_v31 = vpack.c.bf16 %v384_v30, %v383_v29 }
  0x80   : > { %4314 = vmatpush3.bf16.msra.mxu0 %v4627_v3 }
  0x81   : > { %4315 = vmatprep.subr.bf16.mxu0 %v4628_v7 }
  0x84   : > { %4316 = vmatpush3.bf16.msra.mxu0 %v4628_v7 }
  0x85   : > { %4317 = vmatprep.subr.bf16.mxu0 %v4629_v8 }
  0x88   : > { %4318 = vmatpush3.bf16.msra.mxu0 %v4629_v8 }
  0x89   : > { %4319 = vmatprep.subr.bf16.mxu0 %v4630_v9 }
  0x8c   : > { %4320 = vmatpush3.bf16.msra.mxu0 %v4630_v9 }
  0x8d   : > { %4321 = vmatprep.subr.bf16.mxu0 %v4631_v10 }
  0x90   : > { %4322 = vmatpush3.bf16.msra.mxu0 %v4631_v10 }
  0x93   : > { %4324 = vmatmul.mubr.bf16.vlgmr.msra.gmra.mrb[0].mxu0 %v402_v15 }
  0x94   : > { %4327 = vmatprep.mubr.bf16.mxu0 %v403_v16 }
  0x9b   : > { %4328 = vmatmul.mubr.bf16.gmra.mrb[4].mxu0 %v404_v21 }
  0x9c   : > { %4331 = vmatprep.mubr.bf16.mxu0 %v405_v22 }
  0xa3   : > { %4332 = vmatmul.mubr.bf16.gmra.mrb[8].mxu0 %v406_v27 }
  0xa4   : > { %4335 = vmatprep.mubr.bf16.mxu0 %v407_v28 }
  0xab   : > { %4336 = vmatmul.mubr.bf16.gmra.mrb[12].mxu0 %v408_v31 }
 0x166   : > { %v4325_v33 = vpop.f32.mrb[0].mxu0 }
 0x167   : > { %v505_v34 = vadd.f32 %v4325_v33, %v5313_v32  ;;  %v496_v35 = vpop.f32.mrb[1].mxu0 }
 0x168   : > { %v497_v37 = vadd.f32 %v5313_v32, %v496_v35  ;;  %v4326_v38 = vpop.f32.mrb[2].mxu0 }
 0x169   : > { %v561_v39 = vmax.f32 %v505_v34, 0.0  ;;  %v508_v40 = vadd.f32 %v4326_v38, %v5313_v32  ;;  %v499_v41 = vpop.f32.mrb[3].mxu0 }
 0x16a   : > { %v559_v42 = vmax.f32 %v497_v37, 0.0  ;;  %v500_v43 = vadd.f32 %v5313_v32, %v499_v41 }
 0x16b   : > { %v5322_v44 = vadd.f32 %v5316_v36, %v561_v39  ;;  %v562_v45 = vmax.f32 %v508_v40, 0.0 }
 0x16c   : > { %v5325_v46 = vadd.f32 %v5316_v36, %v559_v42  ;;  %v560_v48 = vmax.f32 %v500_v43, 0.0 }
 0x16d   : > { %v5328_v47 = vadd.f32 %v5316_v36, %v562_v45  ;;  %v605_v49 = vsel %vm598_vm0, %v5322_v44, 0.0  ;;  %v666_v52 = vmul.f32 %v5322_v44, %v5322_v44 }
 0x16e   : > { %606 = vadd.xlane.f32.xlu1 %v605_v49  ;;  %v599_v50 = vsel %vm598_vm0, %v5325_v46, 0.0  ;;  %v4329_v51 = vpop.f32.mrb[4].mxu0  ;;  %v5337_v55 = vadd.f32 %v5316_v36, %v560_v48  ;;  %v664_v5 = vmul.f32 %v5325_v46, %v5325_v46 }
 0x16f   : > { %600 = vadd.xlane.f32.xlu0 %v599_v50  ;;  %v512_v53 = vpop.f32.mrb[5].mxu0  ;;  %v608_v56 = vsel %vm598_vm0, %v5328_v47, 0.0  ;;  %v667_v59 = vmul.f32 %v5328_v47, %v5328_v47  ;;  %v521_v60 = vadd.f32 %v4329_v51, %v5313_v32  ;;  %v686_v61 = vsel %vm598_vm0, %v666_v52, 0.0 }
 0x170   : > { %v4330_v54 = vpop.f32.mrb[6].mxu0  ;;  %v665_v1 = vmul.f32 %v5337_v55, %v5337_v55  ;;  %v513_v3 = vadd.f32 %v5313_v32, %v512_v53  ;;  %v602_v4 = vsel %vm598_vm0, %v5337_v55, 0.0  ;;  %v680_v15 = vsel %vm598_vm0, %v664_v5, 0.0 }
 0x171   : > { %v524_v57 = vadd.f32 %v4330_v54, %v5313_v32  ;;  %v515_v58 = vpop.f32.mrb[7].mxu0  ;;  %v689_v0 = vsel %vm598_vm0, %v667_v59, 0.0  ;;  %v565_v2 = vmax.f32 %v521_v60, 0.0 }
 0x172   : > { %609 = vadd.xlane.f32.xlu1 %v608_v56  ;;  %v516_v63 = vadd.f32 %v5313_v32, %v515_v58  ;;  %v683_v11 = vsel %vm598_vm0, %v665_v1, 0.0  ;;  %v563_v14 = vmax.f32 %v513_v3, 0.0  ;;  %v4632_v58 = vld [vmem:[#allocation4] sm:$0xff]  }
 0x173   : > { %687 = vadd.xlane.f32.xlu0 %v686_v61  ;;  %v566_v62 = vmax.f32 %v524_v57, 0.0  ;;  %v5360_v13 = vadd.f32 %v5316_v36, %v565_v2  ;;  %4339 = vmatprep.subr.bf16.mxu1 %v4632_v58  ;;  %v4633_v2 = vld [vmem:[#allocation4 + $0x8] sm:$0xff]  }
 0x174   : > { %v564_v10 = vmax.f32 %v516_v63, 0.0  ;;  %v5369_v18 = vadd.f32 %v5316_v36, %v563_v14  ;;  %4340 = vmatpush3.bf16.msra.mxu1 %v4632_v58 }
 0x175   : > { %v5356_v7 = vadd.f32 %v5316_v36, %v566_v62  ;;  %v617_v19 = vsel %vm598_vm0, %v5360_v13, 0.0  ;;  %v670_v29 = vmul.f32 %v5360_v13, %v5360_v13  ;;  %4341 = vmatprep.subr.bf16.mxu1 %v4633_v2 }
 0x176   : > { %690 = vadd.xlane.f32.xlu1 %v689_v0  ;;  %v4333_v6 = vpop.f32.mrb[8].mxu0  ;;  %v5366_v17 = vadd.f32 %v5316_v36, %v564_v10  ;;  %v611_v28 = vsel %vm598_vm0, %v5369_v18, 0.0  ;;  %v668_v39 = vmul.f32 %v5369_v18, %v5369_v18 }
 0x177   : > { %603 = vadd.xlane.f32.xlu0 %v602_v4  ;;  %v528_v8 = vpop.f32.mrb[9].mxu0  ;;  %v620_v16 = vsel %vm598_vm0, %v5356_v7, 0.0  ;;  %v671_v25 = vmul.f32 %v5356_v7, %v5356_v7  ;;  %v537_v27 = vadd.f32 %v4333_v6, %v5313_v32  ;;  %v698_v38 = vsel %vm598_vm0, %v670_v29, 0.0 }
 0x178   : > { %v4334_v9 = vpop.f32.mrb[10].mxu0  ;;  %v614_v24 = vsel %vm598_vm0, %v5366_v17, 0.0  ;;  %v669_v34 = vmul.f32 %v5366_v17, %v5366_v17  ;;  %v529_v37 = vadd.f32 %v5313_v32, %v528_v8  ;;  %v692_v48 = vsel %vm598_vm0, %v668_v39, 0.0  ;;  %4342 = vmatpush3.bf16.msra.mxu1 %v4633_v2 }
 0x179   : > { %v531_v12 = vpop.f32.mrb[11].mxu0  ;;  %v540_v21 = vadd.f32 %v4334_v9, %v5313_v32  ;;  %v701_v33 = vsel %vm598_vm0, %v671_v25, 0.0  ;;  %v569_v35 = vmax.f32 %v537_v27, 0.0 }
 0x17a   : > { %684 = vadd.xlane.f32.xlu1 %v683_v11  ;;  %v532_v31 = vadd.f32 %v5313_v32, %v531_v12  ;;  %v695_v42 = vsel %vm598_vm0, %v669_v34, 0.0  ;;  %v567_v45 = vmax.f32 %v529_v37, 0.0  ;;  %v4634_v11 = vld [vmem:[#allocation4 + $0x10] sm:$0xff]  }
 0x17b   : > { %681 = vadd.xlane.f32.xlu0 %v680_v15  ;;  %v570_v30 = vmax.f32 %v540_v21, 0.0  ;;  %v5396_v43 = vadd.f32 %v5316_v36, %v569_v35  ;;  %4343 = vmatprep.subr.bf16.mxu1 %v4634_v11 }
 0x17c   : > { %v568_v41 = vmax.f32 %v532_v31, 0.0  ;;  %v5405_v51 = vadd.f32 %v5316_v36, %v567_v45  ;;  %4344 = vmatpush3.bf16.msra.mxu1 %v4634_v11 }
 0x17d   : > { %v5392_v40 = vadd.f32 %v5316_v36, %v570_v30  ;;  %v629_v52 = vsel %vm598_vm0, %v5396_v43, 0.0  ;;  %v674_v60 = vmul.f32 %v5396_v43, %v5396_v43 }
 0x17e   : > { %621 = vadd.xlane.f32.xlu1 %v620_v16  ;;  %v4337_v20 = vpop.f32.mrb[12].mxu0  ;;  %v5402_v50 = vadd.f32 %v5316_v36, %v568_v41  ;;  %v623_v59 = vsel %vm598_vm0, %v5405_v51, 0.0  ;;  %v672_v5 = vmul.f32 %v5405_v51, %v5405_v51 }
 0x17f   : > { %618 = vadd.xlane.f32.xlu0 %v617_v19  ;;  %v544_v22 = vpop.f32.mrb[13].mxu0  ;;  %v632_v49 = vsel %vm598_vm0, %v5392_v40, 0.0  ;;  %v553_v54 = vadd.f32 %v4337_v20, %v5313_v32  ;;  %v675_v57 = vmul.f32 %v5392_v40, %v5392_v40  ;;  %v710_v4 = vsel %vm598_vm0, %v674_v60, 0.0  ;;  %v4635_v19 = vld [vmem:[#allocation4 + $0x18] sm:$0xff]  }
 0x180   : > { %v4338_v23 = vpop.f32.mrb[14].mxu0  ;;  %v626_v56 = vsel %vm598_vm0, %v5402_v50, 0.0  ;;  %v673_v1 = vmul.f32 %v5402_v50, %v5402_v50  ;;  %v545_v3 = vadd.f32 %v5313_v32, %v544_v22  ;;  %v704_v12 = vsel %vm598_vm0, %v672_v5, 0.0  ;;  %4345 = vmatprep.subr.bf16.mxu1 %v4635_v19 }
 0x181   : > { %v547_v26 = vpop.f32.mrb[15].mxu0  ;;  %v556_v53 = vadd.f32 %v4338_v23, %v5313_v32  ;;  %v573_v63 = vmax.f32 %v553_v54, 0.0  ;;  %v713_v0 = vsel %vm598_vm0, %v675_v57, 0.0  ;;  %4346 = vmatpush3.bf16.msra.mxu1 %v4635_v19 }
 0x182   : > { %615 = vadd.xlane.f32.xlu1 %v614_v24  ;;  %v548_v62 = vadd.f32 %v5313_v32, %v547_v26  ;;  %v707_v10 = vsel %vm598_vm0, %v673_v1, 0.0  ;;  %v571_v32 = vmax.f32 %v545_v3, 0.0 }
 0x183   : > { %612 = vadd.xlane.f32.xlu0 %v611_v28  ;;  %v574_v61 = vmax.f32 %v556_v53, 0.0  ;;  %v5431_v9 = vadd.f32 %v5316_v36, %v573_v63 }
 0x184   : > { %v572_v8 = vmax.f32 %v548_v62, 0.0  ;;  %v5443_v20 = vadd.f32 %v5316_v36, %v571_v32 }
 0x185   : > { %v5428_v6 = vadd.f32 %v5316_v36, %v574_v61  ;;  %v641_v16 = vsel %vm598_vm0, %v5431_v9, 0.0  ;;  %v678_v27 = vmul.f32 %v5431_v9, %v5431_v9 }
 0x186   : > { %702 = vadd.xlane.f32.xlu1 %v701_v33  ;;  %v5436_v14 = vadd.f32 %v5316_v36, %v572_v8  ;;  %v635_v23 = vsel %vm598_vm0, %v5443_v20, 0.0  ;;  %v676_v24 = vmul.f32 %v5443_v20, %v5443_v20 }
 0x187   : > { %699 = vadd.xlane.f32.xlu0 %v698_v38  ;;  %v644_v15 = vsel %vm598_vm0, %v5428_v6, 0.0  ;;  %v679_v25 = vmul.f32 %v5428_v6, %v5428_v6  ;;  %v722_v29 = vsel %vm598_vm0, %v678_v27, 0.0 }
 0x188   : > { %v638_v21 = vsel %vm598_vm0, %v5436_v14, 0.0  ;;  %v677_v22 = vmul.f32 %v5436_v14, %v5436_v14  ;;  %v716_v26 = vsel %vm598_vm0, %v676_v24, 0.0 }
 0x189   : > { %v725_v28 = vsel %vm598_vm0, %v679_v25, 0.0 }
 0x18a   : > { %696 = vadd.xlane.f32.xlu1 %v695_v42  ;;  %v719_v36 = vsel %vm598_vm0, %v677_v22, 0.0 }
 0x18b   : > { %693 = vadd.xlane.f32.xlu0 %v692_v48 }
 0x18e   : > { %633 = vadd.xlane.f32.xlu1 %v632_v49 }
 0x18f   : > { %630 = vadd.xlane.f32.xlu0 %v629_v52 }
 0x192   : > { %627 = vadd.xlane.f32.xlu1 %v626_v56 }
 0x193   : > { %624 = vadd.xlane.f32.xlu0 %v623_v59 }
 0x196   : > { %714 = vadd.xlane.f32.xlu1 %v713_v0 }
 0x197   : > { %711 = vadd.xlane.f32.xlu0 %v710_v4 }
 0x19a   : > { %708 = vadd.xlane.f32.xlu1 %v707_v10 }
 0x19b   : > { %705 = vadd.xlane.f32.xlu0 %v704_v12 }
 0x19e   : > { %645 = vadd.xlane.f32.xlu1 %v644_v15 }
 0x19f   : > { %642 = vadd.xlane.f32.xlu0 %v641_v16 }
 0x1a2   : > { %639 = vadd.xlane.f32.xlu1 %v638_v21 }
 0x1a3   : > { %636 = vadd.xlane.f32.xlu0 %v635_v23 }
 0x1a6   : > { %720 = vadd.xlane.f32.xlu1 %v719_v36 }
 0x1a7   : > { %717 = vadd.xlane.f32.xlu0 %v716_v26 }
 0x1aa   : > { %726 = vadd.xlane.f32.xlu1 %v725_v28 }
 0x1ab   : > { %723 = vadd.xlane.f32.xlu0 %v722_v29 }
 0x1fb   : > { %v607_v30 = vpop.xlane.xlu1 %606 }
 0x1fc   : > { %v601_v31 = vpop.xlane.xlu0 %600  ;;  %v650_v33 = vmul.f32 0.015625, %v607_v30 }
 0x1fd   : > { %v648_v52 = vmul.f32 0.015625, %v601_v31 }
 0x1fe   : > { %v746_v38 = vmul.f32 %v650_v33, %v650_v33  ;;  %v778_v25 = vsub.f32 %v5322_v44, %v650_v33 }
 0x1ff   : > { %v610_v34 = vpop.xlane.xlu1 %609  ;;  %v744_v62 = vmul.f32 %v648_v52, %v648_v52  ;;  %v776_v30 = vsub.f32 %v5325_v46, %v648_v52 }
 0x200   : > { %v651_v35 = vmul.f32 0.015625, %v610_v34  ;;  %v688_v37 = vpop.xlane.xlu0 %687 }
 0x201   : > { %v730_v39 = vmul.f32 0.015625, %v688_v37 }
 0x202   : > { %v747_v45 = vmul.f32 %v651_v35, %v651_v35  ;;  %v779_v15 = vsub.f32 %v5328_v47, %v651_v35 }
 0x203   : > { %v762_v41 = vsub.f32 %v730_v39, %v746_v38  ;;  %v691_v42 = vpop.xlane.xlu1 %690 }
 0x204   : > { %v731_v48 = vmul.f32 0.015625, %v691_v42  ;;  %v604_v49 = vpop.xlane.xlu0 %603 }
 0x205   : > { %v794_v53 = vadd.f32 1e-05, %v762_v41  ;;  %v649_v54 = vmul.f32 0.015625, %v604_v49 }
 0x206   : > { %v763_v56 = vsub.f32 %v731_v48, %v747_v45  ;;  %v5481_v48 = vld [vmem:[#allocation2 + $0x2] ss:$0 sm:$0xff] }
 0x207   : > { %v745_v57 = vmul.f32 %v649_v54, %v649_v54  ;;  %v685_v58 = vpop.xlane.xlu1 %684  ;;  %4676 = vrsqrt.f32 %v794_v53  ;;  %v777_v31 = vsub.f32 %v5337_v55, %v649_v54 }
 0x208   : > { %v795_v59 = vadd.f32 1e-05, %v763_v56  ;;  %v729_v60 = vmul.f32 0.015625, %v685_v58  ;;  %v682_v61 = vpop.xlane.xlu0 %681 }
 0x209   : > { %v728_v63 = vmul.f32 0.015625, %v682_v61 }
 0x20a   : > { %4678 = vrsqrt.f32 %v795_v59  ;;  %v761_v0 = vsub.f32 %v729_v60, %v745_v57 }
 0x20b   : > { %v760_v1 = vsub.f32 %v728_v63, %v744_v62  ;;  %v622_v2 = vpop.xlane.xlu1 %621 }
 0x20c   : > { %v793_v3 = vadd.f32 1e-05, %v761_v0  ;;  %v619_v4 = vpop.xlane.xlu0 %618  ;;  %v5461_v10 = vmul.f32 0.015625, %v622_v2 }
 0x20d   : > { %v792_v5 = vadd.f32 1e-05, %v760_v1  ;;  %v5463_v32 = vmul.f32 0.015625, %v619_v4  ;;  %v5486_v1 = vld [vmem:[#allocation2 + $0x3] ss:$0 sm:$0xff] }
 0x20e   : > { %4680 = vrsqrt.f32 %v793_v3  ;;  %v751_v21 = vmul.f32 %v5461_v10, %v5461_v10 }
 0x20f   : > { %4682 = vrsqrt.f32 %v792_v5  ;;  %v616_v8 = vpop.xlane.xlu1 %615  ;;  %v750_v26 = vmul.f32 %v5463_v32, %v5463_v32 }
 0x210   : > { %v613_v11 = vpop.xlane.xlu0 %612  ;;  %v5468_v22 = vmul.f32 0.015625, %v616_v8 }
 0x211   : > { %v4677_v12 = vpop.eup %4676  ;;  %v5470_v23 = vmul.f32 0.015625, %v613_v11 }
 0x212   : > { %v826_v37 = vmul.f32 %v4677_v12, %v778_v25  ;;  %v749_v39 = vmul.f32 %v5468_v22, %v5468_v22 }
 0x213   : > { %v703_v16 = vpop.xlane.xlu1 %702  ;;  %v748_v33 = vmul.f32 %v5470_v23, %v5470_v23 }
 0x214   : > { %v4679_v19 = vpop.eup %4678  ;;  %v735_v24 = vmul.f32 0.015625, %v703_v16  ;;  %v700_v36 = vpop.xlane.xlu0 %699  ;;  %v846_v62 = vmul.f32 %v5481_v48, %v826_v37 }
 0x215   : > { %v734_v27 = vmul.f32 0.015625, %v700_v36  ;;  %v827_v28 = vmul.f32 %v4679_v19, %v779_v15  ;;  %v783_v36 = vsub.f32 %v5356_v7, %v5461_v10 }
 0x216   : > { %v767_v29 = vsub.f32 %v735_v24, %v751_v21  ;;  %v866_v12 = vadd.f32 %v5486_v1, %v846_v62 }
 0x217   : > { %v766_v34 = vsub.f32 %v734_v27, %v750_v26  ;;  %v697_v35 = vpop.xlane.xlu1 %696  ;;  %v847_v54 = vmul.f32 %v5481_v48, %v827_v28  ;;  %v782_v28 = vsub.f32 %v5360_v13, %v5463_v32  ;;  %v780_v32 = vsub.f32 %v5369_v18, %v5470_v23 }
 0x218   : > { %v4681_v38 = vpop.eup %4680  ;;  %v799_v41 = vadd.f32 1e-05, %v767_v29  ;;  %v733_v42 = vmul.f32 0.015625, %v697_v35  ;;  %v694_v45 = vpop.xlane.xlu0 %693 }
 0x219   : > { %v4683_v49 = vpop.eup %4682  ;;  %v798_v53 = vadd.f32 1e-05, %v766_v34  ;;  %v732_v52 = vmul.f32 0.015625, %v694_v45  ;;  %v825_v56 = vmul.f32 %v4681_v38, %v777_v31  ;;  %v867_v5 = vadd.f32 %v5486_v1, %v847_v54 }
 0x21a   : > { %4684 = vrsqrt.f32 %v799_v41  ;;  %v765_v57 = vsub.f32 %v733_v42, %v749_v39  ;;  %v824_v58 = vmul.f32 %v4683_v49, %v776_v30  ;;  %v781_v41 = vsub.f32 %v5366_v17, %v5468_v22 }
 0x21b   : > { %4686 = vrsqrt.f32 %v798_v53  ;;  %v764_v59 = vsub.f32 %v732_v52, %v748_v33  ;;  %v634_v60 = vpop.xlane.xlu1 %633  ;;  %v845_v61 = vmul.f32 %v5481_v48, %v825_v56  ;;  %v889_v24 = vpack.c.bf16 %v867_v5, %v866_v12 }
 0x21c   : > { %v797_v63 = vadd.f32 1e-05, %v765_v57  ;;  %v631_v0 = vpop.xlane.xlu0 %630  ;;  %v844_v2 = vmul.f32 %v5481_v48, %v824_v58  ;;  %v5493_v15 = vmul.f32 0.015625, %v634_v60 }
 0x21d   : > { %v796_v3 = vadd.f32 1e-05, %v764_v59  ;;  %v865_v4 = vadd.f32 %v5486_v1, %v845_v61  ;;  %v5495_v21 = vmul.f32 0.015625, %v631_v0 }
 0x21e   : > { %4688 = vrsqrt.f32 %v797_v63  ;;  %v864_v8 = vadd.f32 %v5486_v1, %v844_v2  ;;  %v755_v29 = vmul.f32 %v5493_v15, %v5493_v15 }
 0x21f   : > { %4690 = vrsqrt.f32 %v796_v3  ;;  %v628_v11 = vpop.xlane.xlu1 %627  ;;  %v754_v10 = vmul.f32 %v5495_v21, %v5495_v21 }
 0x220   : > { %v625_v16 = vpop.xlane.xlu0 %624  ;;  %v888_v19 = vpack.c.bf16 %v865_v4, %v864_v8  ;;  %v5500_v25 = vmul.f32 0.015625, %v628_v11 }
 0x221   : > { %v5507_v30 = vmul.f32 0.015625, %v625_v16 }
 0x222   : > { %4347 = vmatprep.mubr.msk.bf16.mxu1 %vm598_vm0, %v888_v19  ;;  %v753_v42 = vmul.f32 %v5500_v25, %v5500_v25 }
 0x223   : > { %v715_v26 = vpop.xlane.xlu1 %714  ;;  %4348 = vmatmul.mubr.msk.bf16.vlgmr.msra.gmra.mrb[0].mxu1 %vm598_vm0, %v889_v24  ;;  %v752_v52 = vmul.f32 %v5507_v30, %v5507_v30 }
 0x224   : > { %v4685_v27 = vpop.eup %4684  ;;  %v739_v31 = vmul.f32 0.015625, %v715_v26  ;;  %v712_v34 = vpop.xlane.xlu0 %711 }
 0x225   : > { %v4687_v35 = vpop.eup %4686  ;;  %v738_v37 = vmul.f32 0.015625, %v712_v34  ;;  %v831_v38 = vmul.f32 %v4685_v27, %v783_v36  ;;  %v787_v34 = vsub.f32 %v5392_v40, %v5493_v15  ;;  %v785_v15 = vsub.f32 %v5402_v50, %v5500_v25 }
 0x226   : > { %v771_v39 = vsub.f32 %v739_v31, %v755_v29  ;;  %v830_v33 = vmul.f32 %v4687_v35, %v782_v28 }
 0x227   : > { %v770_v45 = vsub.f32 %v738_v37, %v754_v10  ;;  %v709_v49 = vpop.xlane.xlu1 %708  ;;  %v851_v58 = vmul.f32 %v5481_v48, %v831_v38  ;;  %v786_v37 = vsub.f32 %v5396_v43, %v5495_v21 }
 0x228   : > { %v4689_v53 = vpop.eup %4688  ;;  %v803_v56 = vadd.f32 1e-05, %v771_v39  ;;  %v737_v54 = vmul.f32 0.015625, %v709_v49  ;;  %v706_v57 = vpop.xlane.xlu0 %705  ;;  %v850_v23 = vmul.f32 %v5481_v48, %v830_v33 }
 0x229   : > { %v4691_v59 = vpop.eup %4690  ;;  %v802_v60 = vadd.f32 1e-05, %v770_v45  ;;  %v736_v22 = vmul.f32 0.015625, %v706_v57  ;;  %v829_v61 = vmul.f32 %v4689_v53, %v781_v41  ;;  %v871_v19 = vadd.f32 %v5486_v1, %v851_v58 }
 0x22a   : > { %4692 = vrsqrt.f32 %v803_v56  ;;  %v769_v62 = vsub.f32 %v737_v54, %v753_v42  ;;  %v828_v63 = vmul.f32 %v4691_v59, %v780_v32  ;;  %v870_v16 = vadd.f32 %v5486_v1, %v850_v23 }
 0x22b   : > { %4694 = vrsqrt.f32 %v802_v60  ;;  %v768_v0 = vsub.f32 %v736_v22, %v752_v52  ;;  %v646_v2 = vpop.xlane.xlu1 %645  ;;  %v849_v3 = vmul.f32 %v5481_v48, %v829_v61  ;;  %v784_v54 = vsub.f32 %v5405_v51, %v5507_v30 }
 0x22c   : > { %v801_v4 = vadd.f32 1e-05, %v769_v62  ;;  %v643_v5 = vpop.xlane.xlu0 %642  ;;  %v848_v8 = vmul.f32 %v5481_v48, %v828_v63  ;;  %v891_v31 = vpack.c.bf16 %v871_v19, %v870_v16  ;;  %v663_v32 = vmul.f32 0.015625, %v646_v2 }
 0x22d   : > { %v800_v11 = vadd.f32 1e-05, %v768_v0  ;;  %v869_v12 = vadd.f32 %v5486_v1, %v849_v3  ;;  %v662_v53 = vmul.f32 0.015625, %v643_v5 }
 0x22e   : > { %4696 = vrsqrt.f32 %v801_v4  ;;  %v868_v24 = vadd.f32 %v5486_v1, %v848_v8  ;;  %v759_v57 = vmul.f32 %v663_v32, %v663_v32 }
 0x22f   : > { %4698 = vrsqrt.f32 %v800_v11  ;;  %v640_v36 = vpop.xlane.xlu1 %639  ;;  %v758_v60 = vmul.f32 %v662_v53, %v662_v53 }
 0x230   : > { %v661_v26 = vmul.f32 0.015625, %v640_v36  ;;  %v637_v27 = vpop.xlane.xlu0 %636  ;;  %v890_v28 = vpack.c.bf16 %v869_v12, %v868_v24 }
 0x231   : > { %v660_v29 = vmul.f32 0.015625, %v637_v27 }
 0x232   : > { %4351 = vmatprep.mubr.msk.bf16.mxu1 %vm598_vm0, %v890_v28  ;;  %v757_v38 = vmul.f32 %v661_v26, %v661_v26 }
 0x233   : > { %v721_v35 = vpop.xlane.xlu1 %720  ;;  %4352 = vmatmul.mubr.msk.bf16.gmra.mrb[4].mxu1 %vm598_vm0, %v891_v31  ;;  %v756_v42 = vmul.f32 %v660_v29, %v660_v29 }
 0x234   : > { %v4693_v10 = vpop.eup %4692  ;;  %v741_v39 = vmul.f32 0.015625, %v721_v35  ;;  %v718_v33 = vpop.xlane.xlu0 %717 }
 0x235   : > { %v4695_v41 = vpop.eup %4694  ;;  %v740_v45 = vmul.f32 0.015625, %v718_v33  ;;  %v835_v49 = vmul.f32 %v4693_v10, %v787_v34  ;;  %v789_v34 = vsub.f32 %v5436_v14, %v661_v26  ;;  %v788_v10 = vsub.f32 %v5443_v20, %v660_v29 }
 0x236   : > { %v773_v52 = vsub.f32 %v741_v39, %v757_v38  ;;  %v834_v56 = vmul.f32 %v4695_v41, %v786_v37  ;;  %v791_v33 = vsub.f32 %v5428_v6, %v663_v32 }
 0x237   : > { %v772_v58 = vsub.f32 %v740_v45, %v756_v42  ;;  %v727_v21 = vpop.xlane.xlu1 %726  ;;  %v855_v62 = vmul.f32 %v5481_v48, %v835_v49  ;;  %v790_v45 = vsub.f32 %v5431_v9, %v662_v53 }
 0x238   : > { %v4697_v59 = vpop.eup %4696  ;;  %v805_v22 = vadd.f32 1e-05, %v773_v52  ;;  %v743_v61 = vmul.f32 0.015625, %v727_v21  ;;  %v724_v23 = vpop.xlane.xlu0 %723  ;;  %v854_v4 = vmul.f32 %v5481_v48, %v834_v56 }
 0x239   : > { %v4699_v63 = vpop.eup %4698  ;;  %v804_v0 = vadd.f32 1e-05, %v772_v58  ;;  %v742_v2 = vmul.f32 0.015625, %v724_v23  ;;  %v833_v3 = vmul.f32 %v4697_v59, %v785_v15  ;;  %v875_v36 = vadd.f32 %v5486_v1, %v855_v62 }
 0x23a   : > { %4700 = vrsqrt.f32 %v805_v22  ;;  %v775_v25 = vsub.f32 %v743_v61, %v759_v57  ;;  %v832_v5 = vmul.f32 %v4699_v63, %v784_v54  ;;  %v874_v24 = vadd.f32 %v5486_v1, %v854_v4 }
 0x23b   : > { %4702 = vrsqrt.f32 %v804_v0  ;;  %v774_v30 = vsub.f32 %v742_v2, %v758_v60  ;;  %v853_v8 = vmul.f32 %v5481_v48, %v833_v3  ;;  %v5561_v60 = vld [vmem:[#allocation2 + $0x4] ss:$0 sm:$0xff] }
 0x23c   : > { %v807_v11 = vadd.f32 1e-05, %v775_v25  ;;  %v852_v12 = vmul.f32 %v5481_v48, %v832_v5  ;;  %v893_v31 = vpack.c.bf16 %v875_v36, %v874_v24 }
 0x23d   : > { %v806_v16 = vadd.f32 1e-05, %v774_v30  ;;  %v873_v19 = vadd.f32 %v5486_v1, %v853_v8 }
 0x23e   : > { %4704 = vrsqrt.f32 %v807_v11  ;;  %v872_v27 = vadd.f32 %v5486_v1, %v852_v12 }
 0x23f   : > { %4706 = vrsqrt.f32 %v806_v16 }
 0x240   : > { %v892_v28 = vpack.c.bf16 %v873_v19, %v872_v27 }
 0x242   : > { %4355 = vmatprep.mubr.msk.bf16.mxu1 %vm598_vm0, %v892_v28 }
 0x243   : > { %4356 = vmatmul.mubr.msk.bf16.gmra.mrb[8].mxu1 %vm598_vm0, %v893_v31 }
 0x244   : > { %v4701_v35 = vpop.eup %4700 }
 0x245   : > { %v4703_v37 = vpop.eup %4702  ;;  %v837_v38 = vmul.f32 %v4701_v35, %v789_v34 }
 0x246   : > { %v836_v39 = vmul.f32 %v4703_v37, %v788_v10 }
 0x247   : > { %v857_v41 = vmul.f32 %v5481_v48, %v837_v38 }
 0x248   : > { %v4705_v42 = vpop.eup %4704  ;;  %v856_v49 = vmul.f32 %v5481_v48, %v836_v39 }
 0x249   : > { %v4707_v52 = vpop.eup %4706  ;;  %v877_v26 = vadd.f32 %v5486_v1, %v857_v41  ;;  %v839_v56 = vmul.f32 %v4705_v42, %v791_v33 }
 0x24a   : > { %v876_v15 = vadd.f32 %v5486_v1, %v856_v49  ;;  %v838_v54 = vmul.f32 %v4707_v52, %v790_v45  ;;  %v4636_v45 = vld [vmem:[#allocation6] sm:$0xff]  }
 0x24b   : > { %v859_v29 = vmul.f32 %v5481_v48, %v839_v56  ;;  %4363 = vmatprep.subr.bf16.mxu1 %v4636_v45 }
 0x24c   : > { %v894_v57 = vpack.c.bf16 %v877_v26, %v876_v15  ;;  %v858_v58 = vmul.f32 %v5481_v48, %v838_v54  ;;  %4364 = vmatpush3.bf16.msra.mxu1 %v4636_v45 }
 0x24d   : > { %v879_v32 = vadd.f32 %v5486_v1, %v859_v29 }
 0x24e   : > { %4359 = vmatprep.mubr.msk.bf16.mxu1 %vm598_vm0, %v894_v57  ;;  %v878_v53 = vadd.f32 %v5486_v1, %v858_v58 }
 0x250   : > { %v895_v21 = vpack.c.bf16 %v879_v32, %v878_v53 }
 0x252   : > { %4360 = vmatmul.mubr.msk.bf16.gmra.mrb[12].mxu1 %vm598_vm0, %v895_v21 }
 0x2f6   : > { %v4349_v59 = vpop.f32.mrb[0].mxu1 }
 0x2f7   : > { %v1043_v22 = vadd.f32 %v4349_v59, %v5322_v44  ;;  %v978_v61 = vpop.f32.mrb[1].mxu1 }
 0x2f8   : > { %v1041_v23 = vadd.f32 %v978_v61, %v5325_v46  ;;  %v4350_v62 = vpop.f32.mrb[2].mxu1 }
 0x2f9   : > { %v5566_v48 = vadd.f32 %v5561_v60, %v1043_v22  ;;  %v1044_v63 = vadd.f32 %v4350_v62, %v5328_v47  ;;  %v981_v0 = vpop.f32.mrb[3].mxu1 }
 0x2fa   : > { %v1042_v1 = vadd.f32 %v981_v0, %v5337_v55  ;;  %v5571_v2 = vadd.f32 %v5561_v60, %v1041_v23 }
 0x2fb   : > { %v5574_v3 = vadd.f32 %v5561_v60, %v1044_v63  ;;  %v1086_v44 = vsel %vm598_vm0, %v5566_v48, 0.0  ;;  %v1146_v55 = vmul.f32 %v5566_v48, %v5566_v48 }
 0x2fc   : > { %1087 = vadd.xlane.f32.xlu0 %v1086_v44  ;;  %v5579_v46 = vadd.f32 %v5561_v60, %v1042_v1  ;;  %v1080_v47 = vsel %vm598_vm0, %v5571_v2, 0.0  ;;  %v1144_v8 = vmul.f32 %v5571_v2, %v5571_v2 }
 0x2fd   : > { %v1089_v4 = vsel %vm598_vm0, %v5574_v3, 0.0  ;;  %v1147_v5 = vmul.f32 %v5574_v3, %v5574_v3  ;;  %v1166_v30 = vsel %vm598_vm0, %v1146_v55, 0.0 }
 0x2fe   : > { %1090 = vadd.xlane.f32.xlu1 %v1089_v4  ;;  %v1083_v25 = vsel %vm598_vm0, %v5579_v46, 0.0  ;;  %v1145_v12 = vmul.f32 %v5579_v46, %v5579_v46  ;;  %v1160_v36 = vsel %vm598_vm0, %v1144_v8, 0.0 }
 0x2ff   : > { %v1169_v11 = vsel %vm598_vm0, %v1147_v5, 0.0 }
 0x300   : > { %1081 = vadd.xlane.f32.xlu0 %v1080_v47  ;;  %v1163_v10 = vsel %vm598_vm0, %v1145_v12, 0.0  ;;  %v4637_v47 = vld [vmem:[#allocation6 + $0x8] sm:$0xff]  }
 0x301   : > { %4365 = vmatprep.subr.bf16.mxu1 %v4637_v47 }
 0x302   : > { %1084 = vadd.xlane.f32.xlu1 %v1083_v25  ;;  %4366 = vmatpush3.bf16.msra.mxu1 %v4637_v47 }
 0x304   : > { %1167 = vadd.xlane.f32.xlu0 %v1166_v30 }
 0x306   : > { %1170 = vadd.xlane.f32.xlu1 %v1169_v11  ;;  %v4353_v16 = vpop.f32.mrb[4].mxu1 }
 0x307   : > { %v1047_v19 = vadd.f32 %v4353_v16, %v5360_v13  ;;  %v994_v24 = vpop.f32.mrb[5].mxu1 }
 0x308   : > { %v1045_v27 = vadd.f32 %v994_v24, %v5369_v18  ;;  %1161 = vadd.xlane.f32.xlu0 %v1160_v36  ;;  %v4354_v28 = vpop.f32.mrb[6].mxu1 }
 0x309   : > { %v5601_v31 = vadd.f32 %v5561_v60, %v1047_v19  ;;  %v1048_v34 = vadd.f32 %v4354_v28, %v5356_v7  ;;  %v997_v35 = vpop.f32.mrb[7].mxu1  ;;  %v4638_v19 = vld [vmem:[#allocation6 + $0x10] sm:$0xff]  }
 0x30a   : > { %v1046_v37 = vadd.f32 %v997_v35, %v5366_v17  ;;  %1164 = vadd.xlane.f32.xlu1 %v1163_v10  ;;  %v5607_v13 = vadd.f32 %v5561_v60, %v1045_v27  ;;  %4367 = vmatprep.subr.bf16.mxu1 %v4638_v19  ;;  %v4639_v10 = vld [vmem:[#allocation6 + $0x18] sm:$0xff]  }
 0x30b   : > { %v5610_v38 = vadd.f32 %v5561_v60, %v1048_v34  ;;  %v1098_v18 = vsel %vm598_vm0, %v5601_v31, 0.0  ;;  %v1150_v33 = vmul.f32 %v5601_v31, %v5601_v31  ;;  %4368 = vmatpush3.bf16.msra.mxu1 %v4638_v19 }
 0x30c   : > { %1099 = vadd.xlane.f32.xlu0 %v1098_v18  ;;  %v5615_v39 = vadd.f32 %v5561_v60, %v1046_v37  ;;  %v1092_v17 = vsel %vm598_vm0, %v5607_v13, 0.0  ;;  %v1148_v52 = vmul.f32 %v5607_v13, %v5607_v13  ;;  %4369 = vmatprep.subr.bf16.mxu1 %v4639_v10 }
 0x30d   : > { %v1101_v7 = vsel %vm598_vm0, %v5610_v38, 0.0  ;;  %v1151_v42 = vmul.f32 %v5610_v38, %v5610_v38  ;;  %v1178_v49 = vsel %vm598_vm0, %v1150_v33, 0.0 }
 0x30e   : > { %1102 = vadd.xlane.f32.xlu1 %v1101_v7  ;;  %v1095_v41 = vsel %vm598_vm0, %v5615_v39, 0.0  ;;  %v1149_v56 = vmul.f32 %v5615_v39, %v5615_v39  ;;  %v1172_v57 = vsel %vm598_vm0, %v1148_v52, 0.0 }
 0x30f   : > { %v1181_v26 = vsel %vm598_vm0, %v1151_v42, 0.0  ;;  %4370 = vmatpush3.bf16.msra.mxu1 %v4639_v10 }
 0x310   : > { %1093 = vadd.xlane.f32.xlu0 %v1092_v17  ;;  %v1175_v22 = vsel %vm598_vm0, %v1149_v56, 0.0 }
 0x312   : > { %1096 = vadd.xlane.f32.xlu1 %v1095_v41 }
 0x314   : > { %1179 = vadd.xlane.f32.xlu0 %v1178_v49 }
 0x316   : > { %1182 = vadd.xlane.f32.xlu1 %v1181_v26  ;;  %v4357_v15 = vpop.f32.mrb[8].mxu1 }
 0x317   : > { %v1051_v54 = vadd.f32 %v4357_v15, %v5396_v43  ;;  %v1010_v29 = vpop.f32.mrb[9].mxu1 }
 0x318   : > { %v1049_v58 = vadd.f32 %v1010_v29, %v5405_v51  ;;  %1173 = vadd.xlane.f32.xlu0 %v1172_v57  ;;  %v4358_v32 = vpop.f32.mrb[10].mxu1 }
 0x319   : > { %v5637_v53 = vadd.f32 %v5561_v60, %v1051_v54  ;;  %v1052_v21 = vadd.f32 %v4358_v32, %v5392_v40  ;;  %v1013_v59 = vpop.f32.mrb[11].mxu1 }
 0x31a   : > { %v1050_v61 = vadd.f32 %v1013_v59, %v5402_v50  ;;  %1176 = vadd.xlane.f32.xlu1 %v1175_v22  ;;  %v5643_v43 = vadd.f32 %v5561_v60, %v1049_v58 }
 0x31b   : > { %v5646_v23 = vadd.f32 %v5561_v60, %v1052_v21  ;;  %v1110_v51 = vsel %vm598_vm0, %v5637_v53, 0.0  ;;  %v1154_v63 = vmul.f32 %v5637_v53, %v5637_v53 }
 0x31c   : > { %1111 = vadd.xlane.f32.xlu0 %v1110_v51  ;;  %v5651_v62 = vadd.f32 %v5561_v60, %v1050_v61  ;;  %v1104_v50 = vsel %vm598_vm0, %v5643_v43, 0.0  ;;  %v1152_v4 = vmul.f32 %v5643_v43, %v5643_v43 }
 0x31d   : > { %v1113_v40 = vsel %vm598_vm0, %v5646_v23, 0.0  ;;  %v1155_v1 = vmul.f32 %v5646_v23, %v5646_v23  ;;  %v1190_v44 = vsel %vm598_vm0, %v1154_v63, 0.0 }
 0x31e   : > { %1114 = vadd.xlane.f32.xlu1 %v1113_v40  ;;  %v1107_v0 = vsel %vm598_vm0, %v5651_v62, 0.0  ;;  %v1153_v5 = vmul.f32 %v5651_v62, %v5651_v62  ;;  %v1184_v16 = vsel %vm598_vm0, %v1152_v4, 0.0 }
 0x31f   : > { %v1193_v25 = vsel %vm598_vm0, %v1155_v1, 0.0 }
 0x320   : > { %1105 = vadd.xlane.f32.xlu0 %v1104_v50 }
 0x322   : > { %1108 = vadd.xlane.f32.xlu1 %v1107_v0 }
 0x324   : > { %1191 = vadd.xlane.f32.xlu0 %v1190_v44 }
 0x325   : > { %v4361_v55 = vpop.f32.mrb[12].mxu1 }
 0x326   : > { %v1055_v30 = vadd.f32 %v4361_v55, %v5431_v9  ;;  %1194 = vadd.xlane.f32.xlu1 %v1193_v25  ;;  %v1026_v8 = vpop.f32.mrb[13].mxu1  ;;  %v1187_v9 = vsel %vm598_vm0, %v1153_v5, 0.0 }
 0x327   : > { %v1053_v11 = vadd.f32 %v1026_v8, %v5443_v20  ;;  %v4362_v12 = vpop.f32.mrb[14].mxu1 }
 0x328   : > { %v5673_v24 = vadd.f32 %v5561_v60, %v1055_v30  ;;  %v1056_v36 = vadd.f32 %v4362_v12, %v5428_v6  ;;  %1185 = vadd.xlane.f32.xlu0 %v1184_v16  ;;  %v1029_v27 = vpop.f32.mrb[15].mxu1 }
 0x329   : > { %v1054_v28 = vadd.f32 %v1029_v27, %v5436_v14  ;;  %v5684_v35 = vadd.f32 %v5561_v60, %v1053_v11 }
 0x32a   : > { %v5679_v34 = vadd.f32 %v5561_v60, %v1056_v36  ;;  %1188 = vadd.xlane.f32.xlu1 %v1187_v9  ;;  %v1122_v20 = vsel %vm598_vm0, %v5673_v24, 0.0  ;;  %v1158_v33 = vmul.f32 %v5673_v24, %v5673_v24 }
 0x32b   : > { %v5689_v14 = vadd.f32 %v5561_v60, %v1054_v28  ;;  %v1116_v37 = vsel %vm598_vm0, %v5684_v35, 0.0  ;;  %v1156_v18 = vmul.f32 %v5684_v35, %v5684_v35 }
 0x32c   : > { %1123 = vadd.xlane.f32.xlu0 %v1122_v20  ;;  %v1125_v6 = vsel %vm598_vm0, %v5679_v34, 0.0  ;;  %v1159_v42 = vmul.f32 %v5679_v34, %v5679_v34  ;;  %v1202_v45 = vsel %vm598_vm0, %v1158_v33, 0.0 }
 0x32d   : > { %v1119_v7 = vsel %vm598_vm0, %v5689_v14, 0.0  ;;  %v1157_v17 = vmul.f32 %v5689_v14, %v5689_v14  ;;  %v1196_v60 = vsel %vm598_vm0, %v1156_v18, 0.0 }
 0x32e   : > { %1126 = vadd.xlane.f32.xlu1 %v1125_v6  ;;  %v1205_v49 = vsel %vm598_vm0, %v1159_v42, 0.0 }
 0x32f   : > { %v1199_v41 = vsel %vm598_vm0, %v1157_v17, 0.0 }
 0x330   : > { %1117 = vadd.xlane.f32.xlu0 %v1116_v37 }
 0x332   : > { %1120 = vadd.xlane.f32.xlu1 %v1119_v7 }
 0x334   : > { %1197 = vadd.xlane.f32.xlu0 %v1196_v60 }
 0x336   : > { %1200 = vadd.xlane.f32.xlu1 %v1199_v41 }
 0x338   : > { %1203 = vadd.xlane.f32.xlu0 %v1202_v45 }
 0x33a   : > { %1206 = vadd.xlane.f32.xlu1 %v1205_v49 }
 0x389   : > { %v1088_v52 = vpop.xlane.xlu0 %1087 }
 0x38a   : > { %v1130_v15 = vmul.f32 0.015625, %v1088_v52 }
 0x38b   : > { %v1091_v26 = vpop.xlane.xlu1 %1090 }
 0x38c   : > { %v1131_v29 = vmul.f32 0.015625, %v1091_v26  ;;  %v1226_v58 = vmul.f32 %v1130_v15, %v1130_v15  ;;  %v1258_v33 = vsub.f32 %v5566_v48, %v1130_v15  ;;  %v5725_v15 = vld [vmem:[#allocation2 + $0x5] ss:$0 sm:$0xff] }
 0x38d   : > { %v1082_v56 = vpop.xlane.xlu0 %1081 }
 0x38e   : > { %v1128_v32 = vmul.f32 0.015625, %v1082_v56  ;;  %v1227_v22 = vmul.f32 %v1131_v29, %v1131_v29  ;;  %v1259_v18 = vsub.f32 %v5574_v3, %v1131_v29 }
 0x38f   : > { %v1085_v54 = vpop.xlane.xlu1 %1084 }
 0x390   : > { %v1129_v61 = vmul.f32 0.015625, %v1085_v54  ;;  %v1224_v63 = vmul.f32 %v1128_v32, %v1128_v32  ;;  %v1256_v49 = vsub.f32 %v5571_v2, %v1128_v32 }
 0x391   : > { %v1168_v57 = vpop.xlane.xlu0 %1167 }
 0x392   : > { %v1210_v21 = vmul.f32 0.015625, %v1168_v57  ;;  %v1225_v47 = vmul.f32 %v1129_v61, %v1129_v61 }
 0x393   : > { %v1171_v59 = vpop.xlane.xlu1 %1170 }
 0x394   : > { %v1242_v51 = vsub.f32 %v1210_v21, %v1226_v58  ;;  %v1211_v40 = vmul.f32 0.015625, %v1171_v59  ;;  %v1257_v59 = vsub.f32 %v5579_v46, %v1129_v61 }
 0x395   : > { %v1162_v50 = vpop.xlane.xlu0 %1161 }
 0x396   : > { %v1274_v0 = vadd.f32 1e-05, %v1242_v51  ;;  %v1243_v1 = vsub.f32 %v1211_v40, %v1227_v22  ;;  %v1208_v44 = vmul.f32 0.015625, %v1162_v50 }
 0x397   : > { %v1165_v4 = vpop.xlane.xlu1 %1164 }
 0x398   : > { %v1275_v55 = vadd.f32 1e-05, %v1243_v1  ;;  %v1240_v25 = vsub.f32 %v1208_v44, %v1224_v63  ;;  %v1209_v5 = vmul.f32 0.015625, %v1165_v4  ;;  %4708 = vrsqrt.f32 %v1274_v0 }
 0x399   : > { %v1100_v30 = vpop.xlane.xlu0 %1099 }
 0x39a   : > { %4710 = vrsqrt.f32 %v1275_v55  ;;  %v1272_v8 = vadd.f32 1e-05, %v1240_v25  ;;  %v1241_v11 = vsub.f32 %v1209_v5, %v1225_v47  ;;  %v5707_v36 = vmul.f32 0.015625, %v1100_v30  ;;  %v5732_v30 = vld [vmem:[#allocation2 + $0x6] ss:$0 sm:$0xff] }
 0x39b   : > { %v1103_v12 = vpop.xlane.xlu1 %1102 }
 0x39c   : > { %4712 = vrsqrt.f32 %v1272_v8  ;;  %v1273_v16 = vadd.f32 1e-05, %v1241_v11  ;;  %v5709_v28 = vmul.f32 0.015625, %v1103_v12  ;;  %v1230_v6 = vmul.f32 %v5707_v36, %v5707_v36 }
 0x39d   : > { %v1094_v19 = vpop.xlane.xlu0 %1093 }
 0x39e   : > { %4714 = vrsqrt.f32 %v1273_v16  ;;  %v5711_v9 = vmul.f32 0.015625, %v1094_v19  ;;  %v1231_v41 = vmul.f32 %v5709_v28, %v5709_v28 }
 0x39f   : > { %v1097_v27 = vpop.xlane.xlu1 %1096 }
 0x3a0   : > { %v5716_v7 = vmul.f32 0.015625, %v1097_v27  ;;  %v1228_v26 = vmul.f32 %v5711_v9, %v5711_v9 }
 0x3a1   : > { %v1180_v20 = vpop.xlane.xlu0 %1179 }
 0x3a2   : > { %v1214_v10 = vmul.f32 0.015625, %v1180_v20  ;;  %v4709_v37 = vpop.eup %4708  ;;  %v1229_v22 = vmul.f32 %v5716_v7, %v5716_v7 }
 0x3a3   : > { %v1183_v17 = vpop.xlane.xlu1 %1182  ;;  %v1306_v29 = vmul.f32 %v4709_v37, %v1258_v33 }
 0x3a4   : > { %v4711_v60 = vpop.eup %4710  ;;  %v1246_v42 = vsub.f32 %v1214_v10, %v1230_v6  ;;  %v1215_v45 = vmul.f32 0.015625, %v1183_v17 }
 0x3a5   : > { %v1307_v52 = vmul.f32 %v4711_v60, %v1259_v18  ;;  %v1174_v56 = vpop.xlane.xlu0 %1173  ;;  %v1326_v61 = vmul.f32 %v5725_v15, %v1306_v29 }
 0x3a6   : > { %v4713_v54 = vpop.eup %4712  ;;  %v1278_v57 = vadd.f32 1e-05, %v1246_v42  ;;  %v1247_v58 = vsub.f32 %v1215_v45, %v1231_v41  ;;  %v1212_v21 = vmul.f32 0.015625, %v1174_v56 }
 0x3a7   : > { %v1177_v51 = vpop.xlane.xlu1 %1176  ;;  %v1304_v40 = vmul.f32 %v4713_v54, %v1256_v49  ;;  %v1327_v50 = vmul.f32 %v5725_v15, %v1307_v52  ;;  %v1346_v6 = vadd.f32 %v5732_v30, %v1326_v61  ;;  %v1263_v49 = vsub.f32 %v5610_v38, %v5709_v28 }
 0x3a8   : > { %v4715_v32 = vpop.eup %4714  ;;  %v1279_v63 = vadd.f32 1e-05, %v1247_v58  ;;  %v1244_v0 = vsub.f32 %v1212_v21, %v1228_v26  ;;  %v1213_v1 = vmul.f32 0.015625, %v1177_v51  ;;  %4716 = vrsqrt.f32 %v1278_v57 }
 0x3a9   : > { %v1112_v44 = vpop.xlane.xlu0 %1111  ;;  %v1305_v4 = vmul.f32 %v4715_v32, %v1257_v59  ;;  %v1324_v47 = vmul.f32 %v5725_v15, %v1304_v40  ;;  %v1347_v12 = vadd.f32 %v5732_v30, %v1327_v50  ;;  %v1262_v54 = vsub.f32 %v5601_v31, %v5707_v36 }
 0x3aa   : > { %4718 = vrsqrt.f32 %v1279_v63  ;;  %v1276_v55 = vadd.f32 1e-05, %v1244_v0  ;;  %v1245_v25 = vsub.f32 %v1213_v1, %v1229_v22  ;;  %v5738_v20 = vmul.f32 0.015625, %v1112_v44 }
 0x3ab   : > { %v1115_v5 = vpop.xlane.xlu1 %1114  ;;  %v1325_v8 = vmul.f32 %v5725_v15, %v1305_v4  ;;  %v1344_v19 = vadd.f32 %v5732_v30, %v1324_v47  ;;  %v1369_v17 = vpack.c.bf16 %v1347_v12, %v1346_v6  ;;  %v1260_v21 = vsub.f32 %v5607_v13, %v5711_v9 }
 0x3ac   : > { %4720 = vrsqrt.f32 %v1276_v55  ;;  %v1277_v11 = vadd.f32 1e-05, %v1245_v25  ;;  %v5741_v18 = vmul.f32 0.015625, %v1115_v5  ;;  %v1234_v41 = vmul.f32 %v5738_v20, %v5738_v20 }
 0x3ad   : > { %v1106_v16 = vpop.xlane.xlu0 %1105  ;;  %v1345_v27 = vadd.f32 %v5732_v30, %v1325_v8  ;;  %v1261_v36 = vsub.f32 %v5615_v39, %v5716_v7 }
 0x3ae   : > { %4722 = vrsqrt.f32 %v1277_v11  ;;  %v5743_v60 = vmul.f32 0.015625, %v1106_v16  ;;  %v1235_v29 = vmul.f32 %v5741_v18, %v5741_v18 }
 0x3af   : > { %v1109_v10 = vpop.xlane.xlu1 %1108  ;;  %v1368_v37 = vpack.c.bf16 %v1345_v27, %v1344_v19 }
 0x3b0   : > { %v5751_v52 = vmul.f32 0.015625, %v1109_v10  ;;  %v1232_v59 = vmul.f32 %v5743_v60, %v5743_v60 }
 0x3b1   : > { %4371 = vmatprep.mubr.msk.bf16.mxu1 %vm598_vm0, %v1368_v37  ;;  %v1192_v33 = vpop.xlane.xlu0 %1191 }
 0x3b2   : > { %v1218_v42 = vmul.f32 0.015625, %v1192_v33  ;;  %4372 = vmatmul.mubr.msk.bf16.vlgmr.msra.gmra.mrb[16].mxu1 %vm598_vm0, %v1369_v17  ;;  %v4717_v45 = vpop.eup %4716  ;;  %v1233_v0 = vmul.f32 %v5751_v52, %v5751_v52 }
 0x3b3   : > { %v1195_v26 = vpop.xlane.xlu1 %1194  ;;  %v1310_v63 = vmul.f32 %v4717_v45, %v1262_v54 }
 0x3b4   : > { %v4719_v56 = vpop.eup %4718  ;;  %v1250_v57 = vsub.f32 %v1218_v42, %v1234_v41  ;;  %v1219_v58 = vmul.f32 0.015625, %v1195_v26 }
 0x3b5   : > { %v1186_v22 = vpop.xlane.xlu0 %1185  ;;  %v1311_v28 = vmul.f32 %v4719_v56, %v1263_v49  ;;  %v1330_v7 = vmul.f32 %v5725_v15, %v1310_v63  ;;  %v1264_v63 = vsub.f32 %v5643_v43, %v5743_v60 }
 0x3b6   : > { %v4721_v51 = vpop.eup %4720  ;;  %v1282_v40 = vadd.f32 1e-05, %v1250_v57  ;;  %v1251_v32 = vsub.f32 %v1219_v58, %v1235_v29  ;;  %v1216_v50 = vmul.f32 0.015625, %v1186_v22 }
 0x3b7   : > { %v1189_v1 = vpop.xlane.xlu1 %1188  ;;  %v1308_v44 = vmul.f32 %v4721_v51, %v1260_v21  ;;  %v1331_v55 = vmul.f32 %v5725_v15, %v1311_v28  ;;  %v1350_v41 = vadd.f32 %v5732_v30, %v1330_v7  ;;  %v1267_v21 = vsub.f32 %v5646_v23, %v5741_v18 }
 0x3b8   : > { %v4723_v4 = vpop.eup %4722  ;;  %v1283_v9 = vadd.f32 1e-05, %v1251_v32  ;;  %v1248_v47 = vsub.f32 %v1216_v50, %v1232_v59  ;;  %v1217_v61 = vmul.f32 0.015625, %v1189_v1  ;;  %4724 = vrsqrt.f32 %v1282_v40 }
 0x3b9   : > { %v1124_v25 = vpop.xlane.xlu0 %1123  ;;  %v1309_v5 = vmul.f32 %v4723_v4, %v1261_v36  ;;  %v1328_v8 = vmul.f32 %v5725_v15, %v1308_v44  ;;  %v1351_v6 = vadd.f32 %v5732_v30, %v1331_v55  ;;  %v1266_v51 = vsub.f32 %v5637_v53, %v5738_v20 }
 0x3ba   : > { %4726 = vrsqrt.f32 %v1283_v9  ;;  %v1280_v11 = vadd.f32 1e-05, %v1248_v47  ;;  %v1249_v12 = vsub.f32 %v1217_v61, %v1233_v0  ;;  %v5773_v56 = vmul.f32 0.015625, %v1124_v25 }
 0x3bb   : > { %v1127_v16 = vpop.xlane.xlu1 %1126  ;;  %v1329_v19 = vmul.f32 %v5725_v15, %v1309_v5  ;;  %v1348_v37 = vadd.f32 %v5732_v30, %v1328_v8  ;;  %v1371_v26 = vpack.c.bf16 %v1351_v6, %v1350_v41  ;;  %v1265_v61 = vsub.f32 %v5651_v62, %v5751_v52 }
 0x3bc   : > { %4728 = vrsqrt.f32 %v1280_v11  ;;  %v1281_v27 = vadd.f32 1e-05, %v1249_v12  ;;  %v1143_v59 = vmul.f32 0.015625, %v1127_v16  ;;  %v1238_v36 = vmul.f32 %v5773_v56, %v5773_v56 }
 0x3bd   : > { %v1118_v10 = vpop.xlane.xlu0 %1117  ;;  %v1349_v17 = vadd.f32 %v5732_v30, %v1329_v19 }
 0x3be   : > { %4730 = vrsqrt.f32 %v1281_v27  ;;  %v1140_v33 = vmul.f32 0.015625, %v1118_v10  ;;  %v1239_v20 = vmul.f32 %v1143_v59, %v1143_v59 }
 0x3bf   : > { %v1121_v42 = vpop.xlane.xlu1 %1120  ;;  %v1370_v45 = vpack.c.bf16 %v1349_v17, %v1348_v37 }
 0x3c0   : > { %v1141_v49 = vmul.f32 0.015625, %v1121_v42  ;;  %v1236_v29 = vmul.f32 %v1140_v33, %v1140_v33 }
 0x3c1   : > { %4375 = vmatprep.mubr.msk.bf16.mxu1 %vm598_vm0, %v1370_v45  ;;  %v1198_v54 = vpop.xlane.xlu0 %1197 }
 0x3c2   : > { %v1220_v57 = vmul.f32 0.015625, %v1198_v54  ;;  %4376 = vmatmul.mubr.msk.bf16.gmra.mrb[20].mxu1 %vm598_vm0, %v1371_v26  ;;  %v4725_v58 = vpop.eup %4724  ;;  %v1237_v40 = vmul.f32 %v1141_v49, %v1141_v49  ;;  %v1268_v54 = vsub.f32 %v5684_v35, %v1140_v33 }
 0x3c3   : > { %v1201_v22 = vpop.xlane.xlu1 %1200  ;;  %v1314_v47 = vmul.f32 %v4725_v58, %v1266_v51 }
 0x3c4   : > { %v4727_v28 = vpop.eup %4726  ;;  %v1252_v32 = vsub.f32 %v1220_v57, %v1236_v29  ;;  %v1221_v50 = vmul.f32 0.015625, %v1201_v22  ;;  %v1269_v57 = vsub.f32 %v5689_v14, %v1141_v49  ;;  %v1270_v22 = vsub.f32 %v5673_v24, %v5773_v56 }
 0x3c5   : > { %v1204_v0 = vpop.xlane.xlu0 %1203  ;;  %v1315_v1 = vmul.f32 %v4727_v28, %v1267_v21  ;;  %v1334_v6 = vmul.f32 %v5725_v15, %v1314_v47  ;;  %v4641_v47 = vld [vmem:[%s6878_s5 + $0x8] sm:$0xff]  }
 0x3c6   : > { %v4729_v44 = vpop.eup %4728  ;;  %v1284_v4 = vadd.f32 1e-05, %v1252_v32  ;;  %v1253_v18 = vsub.f32 %v1221_v50, %v1237_v40  ;;  %v1222_v9 = vmul.f32 0.015625, %v1204_v0  ;;  %v1271_v32 = vsub.f32 %v5679_v34, %v1143_v59 }
 0x3c7   : > { %v1207_v55 = vpop.xlane.xlu1 %1206  ;;  %v1312_v25 = vmul.f32 %v4729_v44, %v1264_v63  ;;  %v1335_v5 = vmul.f32 %v5725_v15, %v1315_v1  ;;  %v1354_v42 = vadd.f32 %v5732_v30, %v1334_v6 }
 0x3c8   : > { %v4731_v8 = vpop.eup %4730  ;;  %4732 = vrsqrt.f32 %v1284_v4  ;;  %v1285_v60 = vadd.f32 1e-05, %v1253_v18  ;;  %v1254_v11 = vsub.f32 %v1222_v9, %v1238_v36  ;;  %v1223_v12 = vmul.f32 0.015625, %v1207_v55  ;;  %v4640_v9 = vld [vmem:[%s6878_s5] sm:$0xff]   ;;  %v4646_v55 = vld [vmem:[%s6878_s5 + $0x30] sm:$0xff]  }
 0x3c9   : > { %v1313_v7 = vmul.f32 %v4731_v8, %v1265_v61  ;;  %v1332_v16 = vmul.f32 %v5725_v15, %v1312_v25  ;;  %v1355_v37 = vadd.f32 %v5732_v30, %v1335_v5  ;;  %4387 = vmatprep.subr.bf16.mxu0 %v4640_v9  ;;  %v4644_v61 = vld [vmem:[%s6878_s5 + $0x20] sm:$0xff]   ;;  %v4647_v25 = vld [vmem:[%s6878_s5 + $0x38] sm:$0xff]  }
 0x3ca   : > { %4734 = vrsqrt.f32 %v1285_v60  ;;  %v1286_v19 = vadd.f32 1e-05, %v1254_v11  ;;  %v1255_v27 = vsub.f32 %v1223_v12, %v1239_v20  ;;  %4388 = vmatpush3.bf16.msra.mxu0 %v4640_v9  ;;  %v4645_v20 = vld [vmem:[%s6878_s5 + $0x28] sm:$0xff]   ;;  %v5836_v5 = vld [vmem:[#allocation2 + $0x7] ss:$0 sm:$0xff] }
 0x3cb   : > { %v1333_v52 = vmul.f32 %v5725_v15, %v1313_v7  ;;  %v1352_v17 = vadd.f32 %v5732_v30, %v1332_v16  ;;  %v1373_v26 = vpack.c.bf16 %v1355_v37, %v1354_v42  ;;  %4389 = vmatprep.subr.bf16.mxu0 %v4641_v47 }
 0x3cc   : > { %4736 = vrsqrt.f32 %v1286_v19  ;;  %v1287_v10 = vadd.f32 1e-05, %v1255_v27 }
 0x3cd   : > { %v1353_v41 = vadd.f32 %v5732_v30, %v1333_v52 }
 0x3ce   : > { %4738 = vrsqrt.f32 %v1287_v10  ;;  %4390 = vmatpush3.bf16.msra.mxu0 %v4641_v47 }
 0x3cf   : > { %v1372_v45 = vpack.c.bf16 %v1353_v41, %v1352_v17 }
 0x3d1   : > { %4379 = vmatprep.mubr.msk.bf16.mxu1 %vm598_vm0, %v1372_v45 }
 0x3d2   : > { %v4733_v29 = vpop.eup %4732  ;;  %4380 = vmatmul.mubr.msk.bf16.gmra.mrb[24].mxu1 %vm598_vm0, %v1373_v26 }
 0x3d3   : > { %v1316_v58 = vmul.f32 %v4733_v29, %v1268_v54 }
 0x3d4   : > { %v4735_v21 = vpop.eup %4734 }
 0x3d5   : > { %v1317_v28 = vmul.f32 %v4735_v21, %v1269_v57  ;;  %v1336_v51 = vmul.f32 %v5725_v15, %v1316_v58 }
 0x3d6   : > { %v4737_v40 = vpop.eup %4736 }
 0x3d7   : > { %v1337_v33 = vmul.f32 %v5725_v15, %v1317_v28  ;;  %v1318_v50 = vmul.f32 %v4737_v40, %v1270_v22  ;;  %v1356_v36 = vadd.f32 %v5732_v30, %v1336_v51 }
 0x3d8   : > { %v4739_v63 = vpop.eup %4738 }
 0x3d9   : > { %v1357_v0 = vadd.f32 %v5732_v30, %v1337_v33  ;;  %v1319_v49 = vmul.f32 %v4739_v63, %v1271_v32  ;;  %v1338_v1 = vmul.f32 %v5725_v15, %v1318_v50 }
 0x3db   : > { %v1374_v44 = vpack.c.bf16 %v1357_v0, %v1356_v36  ;;  %v1339_v56 = vmul.f32 %v5725_v15, %v1319_v49  ;;  %v1358_v4 = vadd.f32 %v5732_v30, %v1338_v1  ;;  %v4642_v15 = vld [vmem:[%s6878_s5 + $0x10] sm:$0xff]  }
 0x3dc   : > { %4391 = vmatprep.subr.bf16.mxu0 %v4642_v15 }
 0x3dd   : > { %4383 = vmatprep.mubr.msk.bf16.mxu1 %vm598_vm0, %v1374_v44  ;;  %v1359_v59 = vadd.f32 %v5732_v30, %v1339_v56  ;;  %4392 = vmatpush3.bf16.msra.mxu0 %v4642_v15  ;;  %v4643_v30 = vld [vmem:[%s6878_s5 + $0x18] sm:$0xff]  }
 0x3de   : > { %4393 = vmatprep.subr.bf16.mxu0 %v4643_v30 }
 0x3df   : > { %v1375_v18 = vpack.c.bf16 %v1359_v59, %v1358_v4 }
 0x3e1   : > { %4384 = vmatmul.mubr.msk.bf16.gmra.mrb[28].mxu1 %vm598_vm0, %v1375_v18  ;;  %4394 = vmatpush3.bf16.msra.mxu0 %v4643_v30 }
 0x3e2   : > { %4395 = vmatprep.subr.bf16.mxu0 %v4644_v61 }
 0x3e5   : > { %4396 = vmatpush3.bf16.msra.mxu0 %v4644_v61 }
 0x3e6   : > { %4397 = vmatprep.subr.bf16.mxu0 %v4645_v20 }
 0x3e9   : > { %4398 = vmatpush3.bf16.msra.mxu0 %v4645_v20 }
 0x3ea   : > { %4399 = vmatprep.subr.bf16.mxu0 %v4646_v55 }
 0x3ed   : > { %4400 = vmatpush3.bf16.msra.mxu0 %v4646_v55 }
 0x3ee   : > { %4401 = vmatprep.subr.bf16.mxu0 %v4647_v25 }
 0x3f1   : > { %4402 = vmatpush3.bf16.msra.mxu0 %v4647_v25 }
 0x485   : > { %v4373_v8 = vpop.f32.mrb[16].mxu1 }
 0x486   : > { %v1472_v60 = vadd.f32 %v4373_v8, %v5836_v5  ;;  %v1463_v11 = vpop.f32.mrb[17].mxu1 }
 0x487   : > { %v1464_v12 = vadd.f32 %v5836_v5, %v1463_v11  ;;  %v4374_v7 = vpop.f32.mrb[18].mxu1 }
 0x488   : > { %v1544_v16 = vmul.f32 0.044715, %v1472_v60  ;;  %v1475_v19 = vadd.f32 %v4374_v7, %v5836_v5  ;;  %v1466_v27 = vpop.f32.mrb[19].mxu1  ;;  %v1528_v25 = vmul.f32 0.5, %v1472_v60 }
 0x489   : > { %v1542_v6 = vmul.f32 0.044715, %v1464_v12  ;;  %v1467_v52 = vadd.f32 %v5836_v5, %v1466_v27 }
 0x48a   : > { %v1560_v10 = vmul.f32 %v1544_v16, %v1472_v60  ;;  %v1545_v37 = vmul.f32 0.044715, %v1475_v19 }
 0x48b   : > { %v1558_v17 = vmul.f32 %v1542_v6, %v1464_v12  ;;  %v1543_v41 = vmul.f32 0.044715, %v1467_v52  ;;  %v1526_v6 = vmul.f32 0.5, %v1464_v12 }
 0x48c   : > { %v1576_v42 = vmul.f32 %v1560_v10, %v1472_v60  ;;  %v1561_v45 = vmul.f32 %v1545_v37, %v1475_v19 }
 0x48d   : > { %v1574_v26 = vmul.f32 %v1558_v17, %v1464_v12  ;;  %v1559_v54 = vmul.f32 %v1543_v41, %v1467_v52  ;;  %v1529_v41 = vmul.f32 0.5, %v1475_v19 }
 0x48e   : > { %v1592_v29 = vadd.f32 %v1576_v42, %v1472_v60  ;;  %v1577_v57 = vmul.f32 %v1561_v45, %v1475_v19  ;;  %v1527_v60 = vmul.f32 0.5, %v1467_v52 }
 0x48f   : > { %v1575_v58 = vmul.f32 %v1559_v54, %v1467_v52  ;;  %v1590_v21 = vadd.f32 %v1574_v26, %v1464_v12 }
 0x490   : > { %v1608_v22 = vmul.f32 0.7978846, %v1592_v29  ;;  %v1593_v28 = vadd.f32 %v1577_v57, %v1475_v19 }
 0x491   : > { %v1591_v51 = vadd.f32 %v1575_v58, %v1467_v52  ;;  %v1606_v40 = vmul.f32 0.7978846, %v1590_v21 }
 0x492   : > { %4740 = vtanh.f32 %v1608_v22  ;;  %v1609_v32 = vmul.f32 0.7978846, %v1593_v28 }
 0x493   : > { %v1607_v33 = vmul.f32 0.7978846, %v1591_v51  ;;  %4742 = vtanh.f32 %v1606_v40 }
 0x494   : > { %4744 = vtanh.f32 %v1609_v32 }
 0x495   : > { %v4377_v50 = vpop.f32.mrb[20].mxu1  ;;  %4746 = vtanh.f32 %v1607_v33 }
 0x496   : > { %v5843_v63 = vadd.f32 %v4377_v50, %v5836_v5  ;;  %v1479_v36 = vpop.f32.mrb[21].mxu1 }
 0x497   : > { %v5846_v0 = vadd.f32 %v5836_v5, %v1479_v36  ;;  %v4378_v49 = vpop.f32.mrb[22].mxu1 }
 0x498   : > { %v1548_v1 = vmul.f32 0.044715, %v5843_v63  ;;  %v5850_v44 = vadd.f32 %v4378_v49, %v5836_v5  ;;  %v1482_v56 = vpop.f32.mrb[23].mxu1 }
 0x499   : > { %v1546_v4 = vmul.f32 0.044715, %v5846_v0  ;;  %v5854_v59 = vadd.f32 %v5836_v5, %v1482_v56 }
 0x49a   : > { %v1564_v18 = vmul.f32 %v1548_v1, %v5843_v63  ;;  %v1549_v9 = vmul.f32 0.044715, %v5850_v44 }
 0x49b   : > { %v1562_v47 = vmul.f32 %v1546_v4, %v5846_v0  ;;  %v1547_v15 = vmul.f32 0.044715, %v5854_v59 }
 0x49c   : > { %v4741_v30 = vpop.eup %4740  ;;  %v1580_v61 = vmul.f32 %v1564_v18, %v5843_v63  ;;  %v1565_v20 = vmul.f32 %v1549_v9, %v5850_v44 }
 0x49d   : > { %v4743_v55 = vpop.eup %4742  ;;  %v1578_v8 = vmul.f32 %v1562_v47, %v5846_v0  ;;  %v1563_v11 = vmul.f32 %v1547_v15, %v5854_v59  ;;  %v1640_v7 = vadd.f32 1.0, %v4741_v30 }
 0x49e   : > { %v4745_v16 = vpop.eup %4744  ;;  %v1581_v27 = vmul.f32 %v1565_v20, %v5850_v44  ;;  %v1638_v10 = vadd.f32 1.0, %v4743_v55  ;;  %v1596_v37 = vadd.f32 %v1580_v61, %v5843_v63 }
 0x49f   : > { %v4747_v17 = vpop.eup %4746  ;;  %v1579_v42 = vmul.f32 %v1563_v11, %v5854_v59  ;;  %v1641_v45 = vadd.f32 1.0, %v4745_v16  ;;  %v1594_v26 = vadd.f32 %v1578_v8, %v5846_v0  ;;  %v1656_v58 = vmul.f32 %v1640_v7, %v1528_v25 }
 0x4a0   : > { %v1639_v54 = vadd.f32 1.0, %v4747_v17  ;;  %v1597_v29 = vadd.f32 %v1581_v27, %v5850_v44  ;;  %v1612_v57 = vmul.f32 0.7978846, %v1596_v37  ;;  %v1654_v28 = vmul.f32 %v1638_v10, %v1526_v6 }
 0x4a1   : > { %v1657_v21 = vmul.f32 %v1641_v45, %v1529_v41  ;;  %v1595_v22 = vadd.f32 %v1579_v42, %v5854_v59  ;;  %v1610_v12 = vmul.f32 0.7978846, %v1594_v26  ;;  %v1532_v27 = vmul.f32 0.5, %v5843_v63 }
 0x4a2   : > { %v1655_v51 = vmul.f32 %v1639_v54, %v1527_v60  ;;  %v1613_v40 = vmul.f32 0.7978846, %v1597_v29  ;;  %4748 = vtanh.f32 %v1612_v57  ;;  %v1530_v17 = vmul.f32 0.5, %v5846_v0 }
 0x4a3   : > { %v1687_v19 = vpack.c.bf16 %v1657_v21, %v1656_v58  ;;  %v1611_v32 = vmul.f32 0.7978846, %v1595_v22  ;;  %4750 = vtanh.f32 %v1610_v12  ;;  %v1533_v60 = vmul.f32 0.5, %v5850_v44 }
 0x4a4   : > { %v1686_v33 = vpack.c.bf16 %v1655_v51, %v1654_v28  ;;  %4752 = vtanh.f32 %v1613_v40  ;;  %v1531_v57 = vmul.f32 0.5, %v5854_v59 }
 0x4a5   : > { %v4381_v50 = vpop.f32.mrb[24].mxu1  ;;  %4754 = vtanh.f32 %v1611_v32 }
 0x4a6   : > { %v5871_v52 = vadd.f32 %v4381_v50, %v5836_v5  ;;  %v1495_v36 = vpop.f32.mrb[25].mxu1  ;;  %4403 = vmatprep.mubr.bf16.mxu0 %v1686_v33 }
 0x4a7   : > { %v5874_v49 = vadd.f32 %v5836_v5, %v1495_v36  ;;  %v4382_v1 = vpop.f32.mrb[26].mxu1  ;;  %4404 = vmatmul.mubr.bf16.vlgmr.msra.gmra.mrb[16].mxu0 %v1687_v19 }
 0x4a8   : > { %v1552_v56 = vmul.f32 0.044715, %v5871_v52  ;;  %v5878_v4 = vadd.f32 %v4382_v1, %v5836_v5  ;;  %v1498_v18 = vpop.f32.mrb[27].mxu1 }
 0x4a9   : > { %v1550_v9 = vmul.f32 0.044715, %v5874_v49  ;;  %v5882_v47 = vadd.f32 %v5836_v5, %v1498_v18 }
 0x4aa   : > { %v1568_v15 = vmul.f32 %v1552_v56, %v5871_v52  ;;  %v1553_v30 = vmul.f32 0.044715, %v5878_v4 }
 0x4ab   : > { %v1566_v61 = vmul.f32 %v1550_v9, %v5874_v49  ;;  %v1551_v20 = vmul.f32 0.044715, %v5882_v47 }
 0x4ac   : > { %v4749_v55 = vpop.eup %4748  ;;  %v1584_v25 = vmul.f32 %v1568_v15, %v5871_v52  ;;  %v1569_v8 = vmul.f32 %v1553_v30, %v5878_v4 }
 0x4ad   : > { %v4751_v11 = vpop.eup %4750  ;;  %v1582_v7 = vmul.f32 %v1566_v61, %v5874_v49  ;;  %v1567_v16 = vmul.f32 %v1551_v20, %v5882_v47  ;;  %v1644_v6 = vadd.f32 1.0, %v4749_v55 }
 0x4ae   : > { %v4753_v10 = vpop.eup %4752  ;;  %v1585_v37 = vmul.f32 %v1569_v8, %v5878_v4  ;;  %v1642_v41 = vadd.f32 1.0, %v4751_v11  ;;  %v1600_v42 = vadd.f32 %v1584_v25, %v5871_v52 }
 0x4af   : > { %v4755_v45 = vpop.eup %4754  ;;  %v1583_v26 = vmul.f32 %v1567_v16, %v5882_v47  ;;  %v1645_v54 = vadd.f32 1.0, %v4753_v10  ;;  %v1598_v29 = vadd.f32 %v1582_v7, %v5874_v49  ;;  %v1660_v22 = vmul.f32 %v1644_v6, %v1532_v27 }
 0x4b0   : > { %v1643_v63 = vadd.f32 1.0, %v4755_v45  ;;  %v1601_v58 = vadd.f32 %v1585_v37, %v5878_v4  ;;  %v1616_v21 = vmul.f32 0.7978846, %v1600_v42  ;;  %v1658_v51 = vmul.f32 %v1642_v41, %v1530_v17 }
 0x4b1   : > { %v1661_v12 = vmul.f32 %v1645_v54, %v1533_v60  ;;  %v1599_v0 = vadd.f32 %v1583_v26, %v5882_v47  ;;  %v1614_v28 = vmul.f32 0.7978846, %v1598_v29  ;;  %v1536_v17 = vmul.f32 0.5, %v5871_v52 }
 0x4b2   : > { %v1659_v40 = vmul.f32 %v1643_v63, %v1531_v57  ;;  %v1617_v19 = vmul.f32 0.7978846, %v1601_v58  ;;  %4756 = vtanh.f32 %v1616_v21  ;;  %v1534_v60 = vmul.f32 0.5, %v5874_v49 }
 0x4b3   : > { %v1689_v32 = vpack.c.bf16 %v1661_v12, %v1660_v22  ;;  %v1615_v44 = vmul.f32 0.7978846, %v1599_v0  ;;  %4758 = vtanh.f32 %v1614_v28  ;;  %v1537_v57 = vmul.f32 0.5, %v5878_v4 }
 0x4b4   : > { %v4385_v33 = vpop.f32.mrb[28].mxu1  ;;  %v1688_v50 = vpack.c.bf16 %v1659_v40, %v1658_v51  ;;  %4760 = vtanh.f32 %v1617_v19  ;;  %v1535_v22 = vmul.f32 0.5, %v5882_v47 }
 0x4b5   : > { %v1520_v59 = vadd.f32 %v4385_v33, %v5836_v5  ;;  %v1511_v36 = vpop.f32.mrb[29].mxu1  ;;  %4762 = vtanh.f32 %v1615_v44 }
 0x4b6   : > { %v1512_v1 = vadd.f32 %v5836_v5, %v1511_v36  ;;  %v4386_v56 = vpop.f32.mrb[30].mxu1  ;;  %4407 = vmatprep.mubr.bf16.mxu0 %v1688_v50 }
 0x4b7   : > { %v1556_v18 = vmul.f32 0.044715, %v1520_v59  ;;  %v1523_v9 = vadd.f32 %v4386_v56, %v5836_v5  ;;  %v1514_v15 = vpop.f32.mrb[31].mxu1  ;;  %4408 = vmatmul.mubr.bf16.gmra.mrb[20].mxu0 %v1689_v32 }
 0x4b8   : > { %v1554_v30 = vmul.f32 0.044715, %v1512_v1  ;;  %v1515_v61 = vadd.f32 %v5836_v5, %v1514_v15  ;;  %v1540_v15 = vmul.f32 0.5, %v1520_v59 }
 0x4b9   : > { %v1572_v20 = vmul.f32 %v1556_v18, %v1520_v59  ;;  %v1557_v55 = vmul.f32 0.044715, %v1523_v9 }
 0x4ba   : > { %v1570_v25 = vmul.f32 %v1554_v30, %v1512_v1  ;;  %v1555_v8 = vmul.f32 0.044715, %v1515_v61  ;;  %v1541_v30 = vmul.f32 0.5, %v1523_v9 }
 0x4bb   : > { %v1588_v11 = vmul.f32 %v1572_v20, %v1520_v59  ;;  %v1573_v7 = vmul.f32 %v1557_v55, %v1523_v9  ;;  %v1538_v55 = vmul.f32 0.5, %v1512_v1 }
 0x4bc   : > { %v4757_v16 = vpop.eup %4756  ;;  %v1586_v27 = vmul.f32 %v1570_v25, %v1512_v1  ;;  %v1571_v6 = vmul.f32 %v1555_v8, %v1515_v61  ;;  %v1539_v25 = vmul.f32 0.5, %v1515_v61 }
 0x4bd   : > { %v4759_v10 = vpop.eup %4758  ;;  %v1589_v37 = vmul.f32 %v1573_v7, %v1523_v9  ;;  %v1648_v41 = vadd.f32 1.0, %v4757_v16  ;;  %v1604_v42 = vadd.f32 %v1588_v11, %v1520_v59 }
 0x4be   : > { %v4761_v45 = vpop.eup %4760  ;;  %v1587_v26 = vmul.f32 %v1571_v6, %v1515_v61  ;;  %v1646_v5 = vadd.f32 1.0, %v4759_v10  ;;  %v1602_v54 = vadd.f32 %v1586_v27, %v1512_v1 }
 0x4bf   : > { %v4763_v29 = vpop.eup %4762  ;;  %v1649_v63 = vadd.f32 1.0, %v4761_v45  ;;  %v1605_v58 = vadd.f32 %v1589_v37, %v1523_v9  ;;  %v1620_v21 = vmul.f32 0.7978846, %v1604_v42  ;;  %v1664_v52 = vmul.f32 %v1648_v41, %v1536_v17  ;;  %v5910_v17 = vld [vmem:[#allocation2 + $0x8] ss:$0 sm:$0xff] }
 0x4c0   : > { %v1647_v12 = vadd.f32 1.0, %v4763_v29  ;;  %v1603_v0 = vadd.f32 %v1587_v26, %v1515_v61  ;;  %v1618_v28 = vmul.f32 0.7978846, %v1602_v54  ;;  %v1662_v19 = vmul.f32 %v1646_v5, %v1534_v60 }
 0x4c1   : > { %v1665_v51 = vmul.f32 %v1649_v63, %v1537_v57  ;;  %v1621_v40 = vmul.f32 0.7978846, %v1605_v58  ;;  %4764 = vtanh.f32 %v1620_v21 }
 0x4c2   : > { %v1663_v32 = vmul.f32 %v1647_v12, %v1535_v22  ;;  %v1619_v49 = vmul.f32 0.7978846, %v1603_v0  ;;  %4766 = vtanh.f32 %v1618_v28 }
 0x4c3   : > { %v1691_v44 = vpack.c.bf16 %v1665_v51, %v1664_v52  ;;  %4768 = vtanh.f32 %v1621_v40 }
 0x4c4   : > { %v1690_v33 = vpack.c.bf16 %v1663_v32, %v1662_v19  ;;  %4770 = vtanh.f32 %v1619_v49 }
 0x4c6   : > { %4411 = vmatprep.mubr.bf16.mxu0 %v1690_v33 }
 0x4c7   : > { %4412 = vmatmul.mubr.bf16.gmra.mrb[24].mxu0 %v1691_v44 }
 0x4cb   : > { %v4765_v4 = vpop.eup %4764 }
 0x4cc   : > { %v4767_v50 = vpop.eup %4766  ;;  %v1652_v47 = vadd.f32 1.0, %v4765_v4 }
 0x4cd   : > { %v4769_v36 = vpop.eup %4768  ;;  %v1650_v56 = vadd.f32 1.0, %v4767_v50 }
 0x4ce   : > { %v4771_v18 = vpop.eup %4770  ;;  %v1653_v20 = vadd.f32 1.0, %v4769_v36  ;;  %v1668_v11 = vmul.f32 %v1652_v47, %v1540_v15 }
 0x4cf   : > { %v1651_v8 = vadd.f32 1.0, %v4771_v18  ;;  %v1666_v16 = vmul.f32 %v1650_v56, %v1538_v55  ;;  %v4648_v18 = vld [vmem:[#allocation4 + $0x20] sm:$0xff]  }
 0x4d0   : > { %v1669_v7 = vmul.f32 %v1653_v20, %v1541_v30  ;;  %4419 = vmatprep.subr.bf16.mxu1 %v4648_v18 }
 0x4d1   : > { %v1667_v27 = vmul.f32 %v1651_v8, %v1539_v25  ;;  %4420 = vmatpush3.bf16.msra.mxu1 %v4648_v18 }
 0x4d2   : > { %v1693_v6 = vpack.c.bf16 %v1669_v7, %v1668_v11 }
 0x4d3   : > { %v1692_v10 = vpack.c.bf16 %v1667_v27, %v1666_v16 }
 0x4d5   : > { %4415 = vmatprep.mubr.bf16.mxu0 %v1692_v10 }
 0x4d6   : > { %4416 = vmatmul.mubr.bf16.gmra.mrb[28].mxu0 %v1693_v6 }
 0x57a   : > { %v4405_v37 = vpop.f32.mrb[16].mxu0 }
 0x57b   : > { %v1841_v41 = vadd.f32 %v4405_v37, %v5566_v48  ;;  %v1776_v42 = vpop.f32.mrb[17].mxu0 }
 0x57c   : > { %v1839_v59 = vadd.f32 %v1776_v42, %v5571_v2  ;;  %v4406_v9 = vpop.f32.mrb[18].mxu0 }
 0x57d   : > { %v5915_v1 = vadd.f32 %v5910_v17, %v1841_v41  ;;  %v1842_v61 = vadd.f32 %v4406_v9, %v5574_v3  ;;  %v1779_v45 = vpop.f32.mrb[19].mxu0 }
 0x57e   : > { %v1840_v26 = vadd.f32 %v1779_v45, %v5579_v46  ;;  %v5920_v60 = vadd.f32 %v5910_v17, %v1839_v59 }
 0x57f   : > { %v5923_v5 = vadd.f32 %v5910_v17, %v1842_v61  ;;  %v1884_v48 = vsel %vm598_vm0, %v5915_v1, 0.0  ;;  %v1944_v46 = vmul.f32 %v5915_v1, %v5915_v1 }
 0x580   : > { %1885 = vadd.xlane.f32.xlu0 %v1884_v48  ;;  %v5928_v2 = vadd.f32 %v5910_v17, %v1840_v26  ;;  %v1878_v3 = vsel %vm598_vm0, %v5920_v60, 0.0  ;;  %v1942_v58 = vmul.f32 %v5920_v60, %v5920_v60 }
 0x581   : > { %v1887_v54 = vsel %vm598_vm0, %v5923_v5, 0.0  ;;  %v1945_v57 = vmul.f32 %v5923_v5, %v5923_v5  ;;  %v1964_v63 = vsel %vm598_vm0, %v1944_v46, 0.0 }
 0x582   : > { %1888 = vadd.xlane.f32.xlu1 %v1887_v54  ;;  %v1881_v29 = vsel %vm598_vm0, %v5928_v2, 0.0  ;;  %v1943_v22 = vmul.f32 %v5928_v2, %v5928_v2  ;;  %v1958_v52 = vsel %vm598_vm0, %v1942_v58, 0.0 }
 0x583   : > { %v1967_v21 = vsel %vm598_vm0, %v1945_v57, 0.0  ;;  %v4649_v57 = vld [vmem:[#allocation4 + $0x28] sm:$0xff]  }
 0x584   : > { %1879 = vadd.xlane.f32.xlu0 %v1878_v3  ;;  %v1961_v44 = vsel %vm598_vm0, %v1943_v22, 0.0  ;;  %4421 = vmatprep.subr.bf16.mxu1 %v4649_v57 }
 0x585   : > { %4422 = vmatpush3.bf16.msra.mxu1 %v4649_v57 }
 0x586   : > { %1882 = vadd.xlane.f32.xlu1 %v1881_v29 }
 0x588   : > { %1965 = vadd.xlane.f32.xlu0 %v1964_v63 }
 0x58a   : > { %1968 = vadd.xlane.f32.xlu1 %v1967_v21  ;;  %v4409_v12 = vpop.f32.mrb[20].mxu0 }
 0x58b   : > { %v1845_v0 = vadd.f32 %v4409_v12, %v5601_v31  ;;  %v1792_v28 = vpop.f32.mrb[21].mxu0 }
 0x58c   : > { %v1843_v51 = vadd.f32 %v1792_v28, %v5607_v13  ;;  %1959 = vadd.xlane.f32.xlu0 %v1958_v52  ;;  %v4410_v40 = vpop.f32.mrb[22].mxu0 }
 0x58d   : > { %v5950_v19 = vadd.f32 %v5910_v17, %v1845_v0  ;;  %v1846_v32 = vadd.f32 %v4410_v40, %v5610_v38  ;;  %v1795_v49 = vpop.f32.mrb[23].mxu0  ;;  %v4650_v40 = vld [vmem:[#allocation4 + $0x30] sm:$0xff]  }
 0x58e   : > { %v1844_v33 = vadd.f32 %v1795_v49, %v5615_v39  ;;  %1962 = vadd.xlane.f32.xlu1 %v1961_v44  ;;  %v5956_v31 = vadd.f32 %v5910_v17, %v1843_v51  ;;  %4423 = vmatprep.subr.bf16.mxu1 %v4650_v40  ;;  %v4651_v44 = vld [vmem:[#allocation4 + $0x38] sm:$0xff]  }
 0x58f   : > { %v5959_v4 = vadd.f32 %v5910_v17, %v1846_v32  ;;  %v1896_v13 = vsel %vm598_vm0, %v5950_v19, 0.0  ;;  %v1948_v47 = vmul.f32 %v5950_v19, %v5950_v19  ;;  %4424 = vmatpush3.bf16.msra.mxu1 %v4650_v40 }
 0x590   : > { %1897 = vadd.xlane.f32.xlu0 %v1896_v13  ;;  %v5964_v50 = vadd.f32 %v5910_v17, %v1844_v33  ;;  %v1890_v39 = vsel %vm598_vm0, %v5956_v31, 0.0  ;;  %v1946_v30 = vmul.f32 %v5956_v31, %v5956_v31  ;;  %4425 = vmatprep.subr.bf16.mxu1 %v4651_v44 }
 0x591   : > { %v1899_v38 = vsel %vm598_vm0, %v5959_v4, 0.0  ;;  %v1949_v56 = vmul.f32 %v5959_v4, %v5959_v4  ;;  %v1976_v15 = vsel %vm598_vm0, %v1948_v47, 0.0 }
 0x592   : > { %1900 = vadd.xlane.f32.xlu1 %v1899_v38  ;;  %v1893_v36 = vsel %vm598_vm0, %v5964_v50, 0.0  ;;  %v1947_v55 = vmul.f32 %v5964_v50, %v5964_v50  ;;  %v1970_v7 = vsel %vm598_vm0, %v1946_v30, 0.0 }
 0x593   : > { %v1979_v20 = vsel %vm598_vm0, %v1949_v56, 0.0  ;;  %4426 = vmatpush3.bf16.msra.mxu1 %v4651_v44 }
 0x594   : > { %1891 = vadd.xlane.f32.xlu0 %v1890_v39  ;;  %v1973_v41 = vsel %vm598_vm0, %v1947_v55, 0.0 }
 0x596   : > { %1894 = vadd.xlane.f32.xlu1 %v1893_v36 }
 0x598   : > { %1977 = vadd.xlane.f32.xlu0 %v1976_v15 }
 0x59a   : > { %1980 = vadd.xlane.f32.xlu1 %v1979_v20  ;;  %v4413_v25 = vpop.f32.mrb[24].mxu0 }
 0x59b   : > { %v1849_v8 = vadd.f32 %v4413_v25, %v5637_v53  ;;  %v1808_v11 = vpop.f32.mrb[25].mxu0 }
 0x59c   : > { %v1847_v16 = vadd.f32 %v1808_v11, %v5643_v43  ;;  %1971 = vadd.xlane.f32.xlu0 %v1970_v7  ;;  %v4414_v27 = vpop.f32.mrb[26].mxu0 }
 0x59d   : > { %v5986_v6 = vadd.f32 %v5910_v17, %v1849_v8  ;;  %v1850_v10 = vadd.f32 %v4414_v27, %v5646_v23  ;;  %v1811_v37 = vpop.f32.mrb[27].mxu0 }
 0x59e   : > { %v1848_v42 = vadd.f32 %v1811_v37, %v5651_v62  ;;  %1974 = vadd.xlane.f32.xlu1 %v1973_v41  ;;  %v5992_v53 = vadd.f32 %v5910_v17, %v1847_v16 }
 0x59f   : > { %v5995_v59 = vadd.f32 %v5910_v17, %v1850_v10  ;;  %v1908_v43 = vsel %vm598_vm0, %v5986_v6, 0.0  ;;  %v1952_v61 = vmul.f32 %v5986_v6, %v5986_v6 }
 0x5a0   : > { %1909 = vadd.xlane.f32.xlu0 %v1908_v43  ;;  %v6000_v9 = vadd.f32 %v5910_v17, %v1848_v42  ;;  %v1902_v62 = vsel %vm598_vm0, %v5992_v53, 0.0  ;;  %v1950_v54 = vmul.f32 %v5992_v53, %v5992_v53 }
 0x5a1   : > { %v1911_v23 = vsel %vm598_vm0, %v5995_v59, 0.0  ;;  %v1953_v26 = vmul.f32 %v5995_v59, %v5995_v59  ;;  %v1988_v48 = vsel %vm598_vm0, %v1952_v61, 0.0 }
 0x5a2   : > { %1912 = vadd.xlane.f32.xlu1 %v1911_v23  ;;  %v1905_v45 = vsel %vm598_vm0, %v6000_v9, 0.0  ;;  %v1951_v29 = vmul.f32 %v6000_v9, %v6000_v9  ;;  %v1982_v12 = vsel %vm598_vm0, %v1950_v54, 0.0 }
 0x5a3   : > { %v1991_v46 = vsel %vm598_vm0, %v1953_v26, 0.0 }
 0x5a4   : > { %1903 = vadd.xlane.f32.xlu0 %v1902_v62 }
 0x5a6   : > { %1906 = vadd.xlane.f32.xlu1 %v1905_v45 }
 0x5a8   : > { %1989 = vadd.xlane.f32.xlu0 %v1988_v48 }
 0x5a9   : > { %v4417_v3 = vpop.f32.mrb[28].mxu0 }
 0x5aa   : > { %v1853_v63 = vadd.f32 %v4417_v3, %v5673_v24  ;;  %1992 = vadd.xlane.f32.xlu1 %v1991_v46  ;;  %v1824_v58 = vpop.f32.mrb[29].mxu0  ;;  %v1985_v24 = vsel %vm598_vm0, %v1951_v29, 0.0 }
 0x5ab   : > { %v1851_v21 = vadd.f32 %v1824_v58, %v5684_v35  ;;  %v4418_v22 = vpop.f32.mrb[30].mxu0 }
 0x5ac   : > { %v6022_v0 = vadd.f32 %v5910_v17, %v1853_v63  ;;  %v1854_v28 = vadd.f32 %v4418_v22, %v5679_v34  ;;  %1983 = vadd.xlane.f32.xlu0 %v1982_v12  ;;  %v1827_v52 = vpop.f32.mrb[31].mxu0 }
 0x5ad   : > { %v1852_v51 = vadd.f32 %v1827_v52, %v5689_v14  ;;  %v6033_v49 = vadd.f32 %v5910_v17, %v1851_v21 }
 0x5ae   : > { %v6028_v32 = vadd.f32 %v5910_v17, %v1854_v28  ;;  %1986 = vadd.xlane.f32.xlu1 %v1985_v24  ;;  %v1920_v35 = vsel %vm598_vm0, %v6022_v0, 0.0  ;;  %v1956_v47 = vmul.f32 %v6022_v0, %v6022_v0 }
 0x5af   : > { %v6038_v14 = vadd.f32 %v5910_v17, %v1852_v51  ;;  %v1914_v33 = vsel %vm598_vm0, %v6033_v49, 0.0  ;;  %v1954_v13 = vmul.f32 %v6033_v49, %v6033_v49 }
 0x5b0   : > { %1921 = vadd.xlane.f32.xlu0 %v1920_v35  ;;  %v1923_v34 = vsel %vm598_vm0, %v6028_v32, 0.0  ;;  %v1957_v56 = vmul.f32 %v6028_v32, %v6028_v32  ;;  %v2000_v18 = vsel %vm598_vm0, %v1956_v47, 0.0 }
 0x5b1   : > { %v1917_v38 = vsel %vm598_vm0, %v6038_v14, 0.0  ;;  %v1955_v39 = vmul.f32 %v6038_v14, %v6038_v14  ;;  %v1994_v17 = vsel %vm598_vm0, %v1954_v13, 0.0 }
 0x5b2   : > { %1924 = vadd.xlane.f32.xlu1 %v1923_v34  ;;  %v2003_v15 = vsel %vm598_vm0, %v1957_v56, 0.0 }
 0x5b3   : > { %v1997_v36 = vsel %vm598_vm0, %v1955_v39, 0.0 }
 0x5b4   : > { %1915 = vadd.xlane.f32.xlu0 %v1914_v33 }
 0x5b6   : > { %1918 = vadd.xlane.f32.xlu1 %v1917_v38 }
 0x5b8   : > { %1995 = vadd.xlane.f32.xlu0 %v1994_v17 }
 0x5ba   : > { %1998 = vadd.xlane.f32.xlu1 %v1997_v36 }
 0x5bc   : > { %2001 = vadd.xlane.f32.xlu0 %v2000_v18 }
 0x5be   : > { %2004 = vadd.xlane.f32.xlu1 %v2003_v15 }
 0x60d   : > { %v1886_v30 = vpop.xlane.xlu0 %1885 }
 0x60e   : > { %v1928_v25 = vmul.f32 0.015625, %v1886_v30 }
 0x60f   : > { %v1889_v20 = vpop.xlane.xlu1 %1888 }
 0x610   : > { %v1929_v11 = vmul.f32 0.015625, %v1889_v20  ;;  %v2024_v16 = vmul.f32 %v1928_v25, %v1928_v25  ;;  %v2056_v47 = vsub.f32 %v5915_v1, %v1928_v25  ;;  %v6074_v25 = vld [vmem:[#allocation2 + $0x9] ss:$0 sm:$0xff] }
 0x611   : > { %v1880_v55 = vpop.xlane.xlu0 %1879 }
 0x612   : > { %v1926_v27 = vmul.f32 0.015625, %v1880_v55  ;;  %v2025_v41 = vmul.f32 %v1929_v11, %v1929_v11  ;;  %v2057_v13 = vsub.f32 %v5923_v5, %v1929_v11 }
 0x613   : > { %v1883_v8 = vpop.xlane.xlu1 %1882 }
 0x614   : > { %v1927_v42 = vmul.f32 0.015625, %v1883_v8  ;;  %v2022_v61 = vmul.f32 %v1926_v27, %v1926_v27  ;;  %v2054_v15 = vsub.f32 %v5920_v60, %v1926_v27 }
 0x615   : > { %v1966_v7 = vpop.xlane.xlu0 %1965 }
 0x616   : > { %v2008_v10 = vmul.f32 0.015625, %v1966_v7  ;;  %v2023_v3 = vmul.f32 %v1927_v42, %v1927_v42 }
 0x617   : > { %v1969_v37 = vpop.xlane.xlu1 %1968 }
 0x618   : > { %v2040_v43 = vsub.f32 %v2008_v10, %v2024_v16  ;;  %v2009_v23 = vmul.f32 0.015625, %v1969_v37  ;;  %v2055_v37 = vsub.f32 %v5928_v2, %v1927_v42 }
 0x619   : > { %v1960_v62 = vpop.xlane.xlu0 %1959 }
 0x61a   : > { %v2072_v45 = vadd.f32 1e-05, %v2040_v43  ;;  %v2041_v26 = vsub.f32 %v2009_v23, %v2025_v41  ;;  %v2006_v48 = vmul.f32 0.015625, %v1960_v62 }
 0x61b   : > { %v1963_v54 = vpop.xlane.xlu1 %1962 }
 0x61c   : > { %v2073_v46 = vadd.f32 1e-05, %v2041_v26  ;;  %v2038_v29 = vsub.f32 %v2006_v48, %v2022_v61  ;;  %v2007_v57 = vmul.f32 0.015625, %v1963_v54  ;;  %4772 = vrsqrt.f32 %v2072_v45 }
 0x61d   : > { %v1898_v63 = vpop.xlane.xlu0 %1897 }
 0x61e   : > { %4774 = vrsqrt.f32 %v2073_v46  ;;  %v2070_v58 = vadd.f32 1e-05, %v2038_v29  ;;  %v2039_v21 = vsub.f32 %v2007_v57, %v2023_v3  ;;  %v6056_v52 = vmul.f32 0.015625, %v1898_v63  ;;  %v6081_v57 = vld [vmem:[#allocation2 + $0xa] ss:$0 sm:$0xff] }
 0x61f   : > { %v1901_v22 = vpop.xlane.xlu1 %1900 }
 0x620   : > { %4776 = vrsqrt.f32 %v2070_v58  ;;  %v2071_v12 = vadd.f32 1e-05, %v2039_v21  ;;  %v6058_v24 = vmul.f32 0.015625, %v1901_v22  ;;  %v2028_v34 = vmul.f32 %v6056_v52, %v6056_v52 }
 0x621   : > { %v1892_v28 = vpop.xlane.xlu0 %1891 }
 0x622   : > { %4778 = vrsqrt.f32 %v2071_v12  ;;  %v6060_v40 = vmul.f32 0.015625, %v1892_v28  ;;  %v2029_v36 = vmul.f32 %v6058_v24, %v6058_v24 }
 0x623   : > { %v1895_v51 = vpop.xlane.xlu1 %1894 }
 0x624   : > { %v6065_v38 = vmul.f32 0.015625, %v1895_v51  ;;  %v2026_v20 = vmul.f32 %v6060_v40, %v6060_v40 }
 0x625   : > { %v1978_v35 = vpop.xlane.xlu0 %1977 }
 0x626   : > { %v2012_v44 = vmul.f32 0.015625, %v1978_v35  ;;  %v4773_v33 = vpop.eup %4772  ;;  %v2027_v41 = vmul.f32 %v6065_v38, %v6065_v38 }
 0x627   : > { %v1981_v39 = vpop.xlane.xlu1 %1980  ;;  %v2104_v11 = vmul.f32 %v4773_v33, %v2056_v47 }
 0x628   : > { %v4775_v17 = vpop.eup %4774  ;;  %v2044_v56 = vsub.f32 %v2012_v44, %v2028_v34  ;;  %v2013_v18 = vmul.f32 0.015625, %v1981_v39 }
 0x629   : > { %v2105_v30 = vmul.f32 %v4775_v17, %v2057_v13  ;;  %v1972_v55 = vpop.xlane.xlu0 %1971  ;;  %v2124_v42 = vmul.f32 %v6074_v25, %v2104_v11 }
 0x62a   : > { %v4777_v8 = vpop.eup %4776  ;;  %v2076_v7 = vadd.f32 1e-05, %v2044_v56  ;;  %v2045_v16 = vsub.f32 %v2013_v18, %v2029_v36  ;;  %v2010_v10 = vmul.f32 0.015625, %v1972_v55 }
 0x62b   : > { %v1975_v43 = vpop.xlane.xlu1 %1974  ;;  %v2102_v23 = vmul.f32 %v4777_v8, %v2054_v15  ;;  %v2125_v62 = vmul.f32 %v6074_v25, %v2105_v30  ;;  %v2144_v35 = vadd.f32 %v6081_v57, %v2124_v42  ;;  %v2061_v15 = vsub.f32 %v5959_v4, %v6058_v24 }
 0x62c   : > { %v4779_v27 = vpop.eup %4778  ;;  %v2077_v61 = vadd.f32 1e-05, %v2045_v16  ;;  %v2042_v45 = vsub.f32 %v2010_v10, %v2026_v20  ;;  %v2011_v26 = vmul.f32 0.015625, %v1975_v43  ;;  %4780 = vrsqrt.f32 %v2076_v7 }
 0x62d   : > { %v1910_v48 = vpop.xlane.xlu0 %1909  ;;  %v2103_v54 = vmul.f32 %v4779_v27, %v2055_v37  ;;  %v2122_v3 = vmul.f32 %v6074_v25, %v2102_v23  ;;  %v2145_v21 = vadd.f32 %v6081_v57, %v2125_v62  ;;  %v2060_v8 = vsub.f32 %v5950_v19, %v6056_v52 }
 0x62e   : > { %4782 = vrsqrt.f32 %v2077_v61  ;;  %v2074_v46 = vadd.f32 1e-05, %v2042_v45  ;;  %v2043_v29 = vsub.f32 %v2011_v26, %v2027_v41  ;;  %v6088_v34 = vmul.f32 0.015625, %v1910_v48 }
 0x62f   : > { %v1913_v63 = vpop.xlane.xlu1 %1912  ;;  %v2123_v58 = vmul.f32 %v6074_v25, %v2103_v54  ;;  %v2142_v28 = vadd.f32 %v6081_v57, %v2122_v3  ;;  %v2168_v39 = vpack.c.bf16 %v2145_v21, %v2144_v35  ;;  %v2058_v10 = vsub.f32 %v5956_v31, %v6060_v40 }
 0x630   : > { %4784 = vrsqrt.f32 %v2074_v46  ;;  %v2075_v22 = vadd.f32 1e-05, %v2043_v29  ;;  %v6090_v13 = vmul.f32 0.015625, %v1913_v63  ;;  %v2032_v36 = vmul.f32 %v6088_v34, %v6088_v34 }
 0x631   : > { %v1904_v12 = vpop.xlane.xlu0 %1903  ;;  %v2143_v51 = vadd.f32 %v6081_v57, %v2123_v58  ;;  %v2059_v52 = vsub.f32 %v5964_v50, %v6065_v38 }
 0x632   : > { %4786 = vrsqrt.f32 %v2075_v22  ;;  %v6092_v17 = vmul.f32 0.015625, %v1904_v12  ;;  %v2033_v11 = vmul.f32 %v6090_v13, %v6090_v13 }
 0x633   : > { %v1907_v44 = vpop.xlane.xlu1 %1906  ;;  %v2167_v33 = vpack.c.bf16 %v2143_v51, %v2142_v28 }
 0x634   : > { %v6100_v30 = vmul.f32 0.015625, %v1907_v44  ;;  %v2030_v37 = vmul.f32 %v6092_v17, %v6092_v17 }
 0x635   : > { %4427 = vmatprep.mubr.msk.bf16.mxu1 %vm598_vm0, %v2167_v33  ;;  %v1990_v47 = vpop.xlane.xlu0 %1989 }
 0x636   : > { %v2016_v56 = vmul.f32 0.015625, %v1990_v47  ;;  %4428 = vmatmul.mubr.msk.bf16.vlgmr.msra.gmra.mrb[32].mxu1 %vm598_vm0, %v2168_v39  ;;  %v4781_v18 = vpop.eup %4780  ;;  %v2031_v45 = vmul.f32 %v6100_v30, %v6100_v30 }
 0x637   : > { %v1993_v20 = vpop.xlane.xlu1 %1992  ;;  %v2108_v61 = vmul.f32 %v4781_v18, %v2060_v8 }
 0x638   : > { %v4783_v55 = vpop.eup %4782  ;;  %v2048_v7 = vsub.f32 %v2016_v56, %v2032_v36  ;;  %v2017_v16 = vmul.f32 0.015625, %v1993_v20 }
 0x639   : > { %v1984_v41 = vpop.xlane.xlu0 %1983  ;;  %v2109_v24 = vmul.f32 %v4783_v55, %v2061_v15  ;;  %v2128_v38 = vmul.f32 %v6074_v25, %v2108_v61  ;;  %v2062_v61 = vsub.f32 %v5992_v53, %v6092_v17 }
 0x63a   : > { %v4785_v43 = vpop.eup %4784  ;;  %v2080_v23 = vadd.f32 1e-05, %v2048_v7  ;;  %v2049_v27 = vsub.f32 %v2017_v16, %v2033_v11  ;;  %v2014_v62 = vmul.f32 0.015625, %v1984_v41 }
 0x63b   : > { %v1987_v26 = vpop.xlane.xlu1 %1986  ;;  %v2106_v48 = vmul.f32 %v4785_v43, %v2058_v10  ;;  %v2129_v46 = vmul.f32 %v6074_v25, %v2109_v24  ;;  %v2148_v36 = vadd.f32 %v6081_v57, %v2128_v38  ;;  %v2065_v10 = vsub.f32 %v5995_v59, %v6090_v13 }
 0x63c   : > { %v4787_v54 = vpop.eup %4786  ;;  %v2081_v40 = vadd.f32 1e-05, %v2049_v27  ;;  %v2046_v3 = vsub.f32 %v2014_v62, %v2030_v37  ;;  %v2015_v42 = vmul.f32 0.015625, %v1987_v26  ;;  %4788 = vrsqrt.f32 %v2080_v23 }
 0x63d   : > { %v1922_v29 = vpop.xlane.xlu0 %1921  ;;  %v2107_v63 = vmul.f32 %v4787_v54, %v2059_v52  ;;  %v2126_v58 = vmul.f32 %v6074_v25, %v2106_v48  ;;  %v2149_v35 = vadd.f32 %v6081_v57, %v2129_v46  ;;  %v2064_v43 = vsub.f32 %v5986_v6, %v6088_v34 }
 0x63e   : > { %4790 = vrsqrt.f32 %v2081_v40  ;;  %v2078_v21 = vadd.f32 1e-05, %v2046_v3  ;;  %v2047_v22 = vsub.f32 %v2015_v42, %v2031_v45  ;;  %v6122_v55 = vmul.f32 0.015625, %v1922_v29 }
 0x63f   : > { %v1925_v12 = vpop.xlane.xlu1 %1924  ;;  %v2127_v28 = vmul.f32 %v6074_v25, %v2107_v63  ;;  %v2146_v33 = vadd.f32 %v6081_v57, %v2126_v58  ;;  %v2170_v20 = vpack.c.bf16 %v2149_v35, %v2148_v36  ;;  %v2063_v42 = vsub.f32 %v6000_v9, %v6100_v30 }
 0x640   : > { %4792 = vrsqrt.f32 %v2078_v21  ;;  %v2079_v51 = vadd.f32 1e-05, %v2047_v22  ;;  %v1941_v37 = vmul.f32 0.015625, %v1925_v12  ;;  %v2036_v52 = vmul.f32 %v6122_v55, %v6122_v55 }
 0x641   : > { %v1916_v44 = vpop.xlane.xlu0 %1915  ;;  %v2147_v39 = vadd.f32 %v6081_v57, %v2127_v28 }
 0x642   : > { %4794 = vrsqrt.f32 %v2079_v51  ;;  %v1938_v47 = vmul.f32 0.015625, %v1916_v44  ;;  %v2037_v34 = vmul.f32 %v1941_v37, %v1941_v37 }
 0x643   : > { %v1919_v56 = vpop.xlane.xlu1 %1918  ;;  %v2169_v18 = vpack.c.bf16 %v2147_v39, %v2146_v33 }
 0x644   : > { %v1939_v15 = vmul.f32 0.015625, %v1919_v56  ;;  %v2034_v11 = vmul.f32 %v1938_v47, %v1938_v47 }
 0x645   : > { %4431 = vmatprep.mubr.msk.bf16.mxu1 %vm598_vm0, %v2169_v18  ;;  %v1996_v8 = vpop.xlane.xlu0 %1995 }
 0x646   : > { %v2018_v7 = vmul.f32 0.015625, %v1996_v8  ;;  %4432 = vmatmul.mubr.msk.bf16.gmra.mrb[36].mxu1 %vm598_vm0, %v2170_v20  ;;  %v4789_v16 = vpop.eup %4788  ;;  %v2035_v23 = vmul.f32 %v1939_v15, %v1939_v15  ;;  %v2066_v8 = vsub.f32 %v6033_v49, %v1938_v47 }
 0x647   : > { %v1999_v41 = vpop.xlane.xlu1 %1998  ;;  %v2112_v3 = vmul.f32 %v4789_v16, %v2064_v43 }
 0x648   : > { %v4791_v24 = vpop.eup %4790  ;;  %v2050_v27 = vsub.f32 %v2018_v7, %v2034_v11  ;;  %v2019_v62 = vmul.f32 0.015625, %v1999_v41  ;;  %v2067_v7 = vsub.f32 %v6038_v14, %v1939_v15  ;;  %v2068_v41 = vsub.f32 %v6022_v0, %v6122_v55 }
 0x649   : > { %v2002_v45 = vpop.xlane.xlu0 %2001  ;;  %v2113_v26 = vmul.f32 %v4791_v24, %v2065_v10  ;;  %v2132_v35 = vmul.f32 %v6074_v25, %v2112_v3  ;;  %v6161_v3 = vld [vmem:[#allocation2 + $0xb] ss:$0 sm:$0xff] }
 0x64a   : > { %v4793_v48 = vpop.eup %4792  ;;  %v2082_v54 = vadd.f32 1e-05, %v2050_v27  ;;  %v2051_v13 = vsub.f32 %v2019_v62, %v2035_v23  ;;  %v2020_v40 = vmul.f32 0.015625, %v2002_v45  ;;  %v2069_v27 = vsub.f32 %v6028_v32, %v1941_v37 }
 0x64b   : > { %v2005_v46 = vpop.xlane.xlu1 %2004  ;;  %v2110_v29 = vmul.f32 %v4793_v48, %v2062_v61  ;;  %v2133_v63 = vmul.f32 %v6074_v25, %v2113_v26  ;;  %v2152_v56 = vadd.f32 %v6081_v57, %v2132_v35 }
 0x64c   : > { %v4795_v58 = vpop.eup %4794  ;;  %4796 = vrsqrt.f32 %v2082_v54  ;;  %v2083_v17 = vadd.f32 1e-05, %v2051_v13  ;;  %v2052_v21 = vsub.f32 %v2020_v40, %v2036_v52  ;;  %v2021_v22 = vmul.f32 0.015625, %v2005_v46 }
 0x64d   : > { %v2111_v38 = vmul.f32 %v4795_v58, %v2063_v42  ;;  %v2130_v12 = vmul.f32 %v6074_v25, %v2110_v29  ;;  %v2153_v33 = vadd.f32 %v6081_v57, %v2133_v63 }
 0x64e   : > { %4798 = vrsqrt.f32 %v2083_v17  ;;  %v2084_v28 = vadd.f32 1e-05, %v2052_v21  ;;  %v2053_v51 = vsub.f32 %v2021_v22, %v2037_v34 }
 0x64f   : > { %v2131_v30 = vmul.f32 %v6074_v25, %v2111_v38  ;;  %v2150_v39 = vadd.f32 %v6081_v57, %v2130_v12  ;;  %v2172_v20 = vpack.c.bf16 %v2153_v33, %v2152_v56 }
 0x650   : > { %4800 = vrsqrt.f32 %v2084_v28  ;;  %v2085_v44 = vadd.f32 1e-05, %v2053_v51 }
 0x651   : > { %v2151_v36 = vadd.f32 %v6081_v57, %v2131_v30 }
 0x652   : > { %4802 = vrsqrt.f32 %v2085_v44 }
 0x653   : > { %v2171_v18 = vpack.c.bf16 %v2151_v36, %v2150_v39 }
 0x655   : > { %4435 = vmatprep.mubr.msk.bf16.mxu1 %vm598_vm0, %v2171_v18 }
 0x656   : > { %v4797_v11 = vpop.eup %4796  ;;  %4436 = vmatmul.mubr.msk.bf16.gmra.mrb[40].mxu1 %vm598_vm0, %v2172_v20 }
 0x657   : > { %v2114_v16 = vmul.f32 %v4797_v11, %v2066_v8 }
 0x658   : > { %v4799_v10 = vpop.eup %4798 }
 0x659   : > { %v2115_v24 = vmul.f32 %v4799_v10, %v2067_v7  ;;  %v2134_v43 = vmul.f32 %v6074_v25, %v2114_v16 }
 0x65a   : > { %v4801_v23 = vpop.eup %4800 }
 0x65b   : > { %v2135_v47 = vmul.f32 %v6074_v25, %v2115_v24  ;;  %v2116_v62 = vmul.f32 %v4801_v23, %v2068_v41  ;;  %v2154_v52 = vadd.f32 %v6081_v57, %v2134_v43 }
 0x65c   : > { %v4803_v61 = vpop.eup %4802 }
 0x65d   : > { %v2155_v45 = vadd.f32 %v6081_v57, %v2135_v47  ;;  %v2117_v15 = vmul.f32 %v4803_v61, %v2069_v27  ;;  %v2136_v26 = vmul.f32 %v6074_v25, %v2116_v62  ;;  %v4652_v27 = vld [vmem:[#allocation6 + $0x20] sm:$0xff]  }
 0x65e   : > { %4443 = vmatprep.subr.bf16.mxu0 %v4652_v27 }
 0x65f   : > { %v2173_v48 = vpack.c.bf16 %v2155_v45, %v2154_v52  ;;  %v2137_v55 = vmul.f32 %v6074_v25, %v2117_v15  ;;  %v2156_v54 = vadd.f32 %v6081_v57, %v2136_v26  ;;  %4444 = vmatpush3.bf16.msra.mxu0 %v4652_v27 }
 0x661   : > { %4439 = vmatprep.mubr.msk.bf16.mxu1 %vm598_vm0, %v2173_v48  ;;  %v2157_v37 = vadd.f32 %v6081_v57, %v2137_v55 }
 0x663   : > { %v2174_v13 = vpack.c.bf16 %v2157_v37, %v2156_v54 }
 0x665   : > { %4440 = vmatmul.mubr.msk.bf16.gmra.mrb[44].mxu1 %vm598_vm0, %v2174_v13 }
 0x709   : > { %v4429_v40 = vpop.f32.mrb[32].mxu1 }
 0x70a   : > { %v2322_v42 = vadd.f32 %v4429_v40, %v5915_v1  ;;  %v2257_v34 = vpop.f32.mrb[33].mxu1 }
 0x70b   : > { %v2320_v46 = vadd.f32 %v2257_v34, %v5920_v60  ;;  %v4430_v29 = vpop.f32.mrb[34].mxu1 }
 0x70c   : > { %v6166_v25 = vadd.f32 %v6161_v3, %v2322_v42  ;;  %v2323_v63 = vadd.f32 %v4430_v29, %v5923_v5  ;;  %v2260_v58 = vpop.f32.mrb[35].mxu1 }
 0x70d   : > { %v2321_v57 = vadd.f32 %v2260_v58, %v5928_v2  ;;  %v6171_v17 = vadd.f32 %v6161_v3, %v2320_v46 }
 0x70e   : > { %v6174_v21 = vadd.f32 %v6161_v3, %v2323_v63  ;;  %v2365_v1 = vsel %vm598_vm0, %v6166_v25, 0.0  ;;  %v2425_v2 = vmul.f32 %v6166_v25, %v6166_v25 }
 0x70f   : > { %2366 = vadd.xlane.f32.xlu0 %v2365_v1  ;;  %v6179_v60 = vadd.f32 %v6161_v3, %v2321_v57  ;;  %v2359_v5 = vsel %vm598_vm0, %v6171_v17, 0.0  ;;  %v2423_v51 = vmul.f32 %v6171_v17, %v6171_v17 }
 0x710   : > { %v2368_v22 = vsel %vm598_vm0, %v6174_v21, 0.0  ;;  %v2426_v12 = vmul.f32 %v6174_v21, %v6174_v21  ;;  %v2445_v28 = vsel %vm598_vm0, %v2425_v2, 0.0 }
 0x711   : > { %2369 = vadd.xlane.f32.xlu1 %v2368_v22  ;;  %v2362_v38 = vsel %vm598_vm0, %v6179_v60, 0.0  ;;  %v2424_v30 = vmul.f32 %v6179_v60, %v6179_v60  ;;  %v2439_v36 = vsel %vm598_vm0, %v2423_v51, 0.0 }
 0x712   : > { %v2448_v35 = vsel %vm598_vm0, %v2426_v12, 0.0  ;;  %v4653_v12 = vld [vmem:[#allocation6 + $0x28] sm:$0xff]  }
 0x713   : > { %2360 = vadd.xlane.f32.xlu0 %v2359_v5  ;;  %v2442_v7 = vsel %vm598_vm0, %v2424_v30, 0.0  ;;  %4445 = vmatprep.subr.bf16.mxu0 %v4653_v12 }
 0x714   : > { %4446 = vmatpush3.bf16.msra.mxu0 %v4653_v12 }
 0x715   : > { %2363 = vadd.xlane.f32.xlu1 %v2362_v38 }
 0x717   : > { %2446 = vadd.xlane.f32.xlu0 %v2445_v28 }
 0x719   : > { %2449 = vadd.xlane.f32.xlu1 %v2448_v35  ;;  %v4433_v44 = vpop.f32.mrb[36].mxu1 }
 0x71a   : > { %v2326_v33 = vadd.f32 %v4433_v44, %v5950_v19  ;;  %v2273_v39 = vpop.f32.mrb[37].mxu1 }
 0x71b   : > { %v2324_v56 = vadd.f32 %v2273_v39, %v5956_v31  ;;  %2440 = vadd.xlane.f32.xlu0 %v2439_v36  ;;  %v4434_v18 = vpop.f32.mrb[38].mxu1 }
 0x71c   : > { %v6201_v20 = vadd.f32 %v6161_v3, %v2326_v33  ;;  %v2327_v8 = vadd.f32 %v4434_v18, %v5959_v4  ;;  %v2276_v11 = vpop.f32.mrb[39].mxu1  ;;  %v4654_v18 = vld [vmem:[#allocation6 + $0x30] sm:$0xff]  }
 0x71d   : > { %v2325_v16 = vadd.f32 %v2276_v11, %v5964_v50  ;;  %2443 = vadd.xlane.f32.xlu1 %v2442_v7  ;;  %v6207_v19 = vadd.f32 %v6161_v3, %v2324_v56  ;;  %4447 = vmatprep.subr.bf16.mxu0 %v4654_v18  ;;  %v4655_v7 = vld [vmem:[#allocation6 + $0x38] sm:$0xff]  }
 0x71e   : > { %v6210_v10 = vadd.f32 %v6161_v3, %v2327_v8  ;;  %v2377_v31 = vsel %vm598_vm0, %v6201_v20, 0.0  ;;  %v2429_v24 = vmul.f32 %v6201_v20, %v6201_v20  ;;  %4448 = vmatpush3.bf16.msra.mxu0 %v4654_v18 }
 0x71f   : > { %2378 = vadd.xlane.f32.xlu0 %v2377_v31  ;;  %v6215_v41 = vadd.f32 %v6161_v3, %v2325_v16  ;;  %v2371_v50 = vsel %vm598_vm0, %v6207_v19, 0.0  ;;  %v2427_v62 = vmul.f32 %v6207_v19, %v6207_v19  ;;  %4449 = vmatprep.subr.bf16.mxu0 %v4655_v7 }
 0x720   : > { %v2380_v4 = vsel %vm598_vm0, %v6210_v10, 0.0  ;;  %v2430_v23 = vmul.f32 %v6210_v10, %v6210_v10  ;;  %v2457_v47 = vsel %vm598_vm0, %v2429_v24, 0.0 }
 0x721   : > { %2381 = vadd.xlane.f32.xlu1 %v2380_v4  ;;  %v2374_v43 = vsel %vm598_vm0, %v6215_v41, 0.0  ;;  %v2428_v52 = vmul.f32 %v6215_v41, %v6215_v41  ;;  %v2451_v48 = vsel %vm598_vm0, %v2427_v62, 0.0 }
 0x722   : > { %v2460_v61 = vsel %vm598_vm0, %v2430_v23, 0.0  ;;  %4450 = vmatpush3.bf16.msra.mxu0 %v4655_v7 }
 0x723   : > { %2372 = vadd.xlane.f32.xlu0 %v2371_v50  ;;  %v2454_v42 = vsel %vm598_vm0, %v2428_v52, 0.0 }
 0x725   : > { %2375 = vadd.xlane.f32.xlu1 %v2374_v43 }
 0x727   : > { %2458 = vadd.xlane.f32.xlu0 %v2457_v47 }
 0x729   : > { %2461 = vadd.xlane.f32.xlu1 %v2460_v61  ;;  %v4437_v45 = vpop.f32.mrb[40].mxu1 }
 0x72a   : > { %v2330_v15 = vadd.f32 %v4437_v45, %v5986_v6  ;;  %v2289_v26 = vpop.f32.mrb[41].mxu1 }
 0x72b   : > { %v2328_v55 = vadd.f32 %v2289_v26, %v5992_v53  ;;  %2452 = vadd.xlane.f32.xlu0 %v2451_v48  ;;  %v4438_v54 = vpop.f32.mrb[42].mxu1 }
 0x72c   : > { %v6237_v37 = vadd.f32 %v6161_v3, %v2330_v15  ;;  %v2331_v13 = vadd.f32 %v4438_v54, %v5995_v59  ;;  %v2292_v40 = vpop.f32.mrb[43].mxu1 }
 0x72d   : > { %v2329_v34 = vadd.f32 %v2292_v40, %v6000_v9  ;;  %2455 = vadd.xlane.f32.xlu1 %v2454_v42  ;;  %v6243_v6 = vadd.f32 %v6161_v3, %v2328_v55 }
 0x72e   : > { %v6246_v46 = vadd.f32 %v6161_v3, %v2331_v13  ;;  %v2389_v53 = vsel %vm598_vm0, %v6237_v37, 0.0  ;;  %v2433_v63 = vmul.f32 %v6237_v37, %v6237_v37 }
 0x72f   : > { %2390 = vadd.xlane.f32.xlu0 %v2389_v53  ;;  %v6251_v29 = vadd.f32 %v6161_v3, %v2329_v34  ;;  %v2383_v9 = vsel %vm598_vm0, %v6243_v6, 0.0  ;;  %v2431_v22 = vmul.f32 %v6243_v6, %v6243_v6 }
 0x730   : > { %v2392_v59 = vsel %vm598_vm0, %v6246_v46, 0.0  ;;  %v2434_v57 = vmul.f32 %v6246_v46, %v6246_v46  ;;  %v2469_v1 = vsel %vm598_vm0, %v2433_v63, 0.0 }
 0x731   : > { %2393 = vadd.xlane.f32.xlu1 %v2392_v59  ;;  %v2386_v58 = vsel %vm598_vm0, %v6251_v29, 0.0  ;;  %v2432_v38 = vmul.f32 %v6251_v29, %v6251_v29  ;;  %v2463_v44 = vsel %vm598_vm0, %v2431_v22, 0.0 }
 0x732   : > { %v2472_v2 = vsel %vm598_vm0, %v2434_v57, 0.0 }
 0x733   : > { %2384 = vadd.xlane.f32.xlu0 %v2383_v9 }
 0x735   : > { %2387 = vadd.xlane.f32.xlu1 %v2386_v58 }
 0x737   : > { %2470 = vadd.xlane.f32.xlu0 %v2469_v1 }
 0x738   : > { %v4441_v5 = vpop.f32.mrb[44].mxu1 }
 0x739   : > { %v2334_v28 = vadd.f32 %v4441_v5, %v6022_v0  ;;  %2473 = vadd.xlane.f32.xlu1 %v2472_v2  ;;  %v2305_v51 = vpop.f32.mrb[45].mxu1  ;;  %v2466_v0 = vsel %vm598_vm0, %v2432_v38, 0.0 }
 0x73a   : > { %v2332_v35 = vadd.f32 %v2305_v51, %v6033_v49  ;;  %v4442_v30 = vpop.f32.mrb[46].mxu1 }
 0x73b   : > { %v6273_v33 = vadd.f32 %v6161_v3, %v2334_v28  ;;  %v2335_v39 = vadd.f32 %v4442_v30, %v6028_v32  ;;  %2464 = vadd.xlane.f32.xlu0 %v2463_v44  ;;  %v2308_v36 = vpop.f32.mrb[47].mxu1 }
 0x73c   : > { %v2333_v56 = vadd.f32 %v2308_v36, %v6038_v14  ;;  %v6284_v11 = vadd.f32 %v6161_v3, %v2332_v35 }
 0x73d   : > { %v6279_v8 = vadd.f32 %v6161_v3, %v2335_v39  ;;  %2467 = vadd.xlane.f32.xlu1 %v2466_v0  ;;  %v2401_v49 = vsel %vm598_vm0, %v6273_v33, 0.0  ;;  %v2437_v24 = vmul.f32 %v6273_v33, %v6273_v33 }
 0x73e   : > { %v6289_v14 = vadd.f32 %v6161_v3, %v2333_v56  ;;  %v2395_v16 = vsel %vm598_vm0, %v6284_v11, 0.0  ;;  %v2435_v31 = vmul.f32 %v6284_v11, %v6284_v11 }
 0x73f   : > { %2402 = vadd.xlane.f32.xlu0 %v2401_v49  ;;  %v2404_v32 = vsel %vm598_vm0, %v6279_v8, 0.0  ;;  %v2438_v23 = vmul.f32 %v6279_v8, %v6279_v8  ;;  %v2481_v27 = vsel %vm598_vm0, %v2437_v24, 0.0 }
 0x740   : > { %v2398_v4 = vsel %vm598_vm0, %v6289_v14, 0.0  ;;  %v2436_v50 = vmul.f32 %v6289_v14, %v6289_v14  ;;  %v2475_v3 = vsel %vm598_vm0, %v2435_v31, 0.0 }
 0x741   : > { %2405 = vadd.xlane.f32.xlu1 %v2404_v32  ;;  %v2484_v47 = vsel %vm598_vm0, %v2438_v23, 0.0 }
 0x742   : > { %v2478_v43 = vsel %vm598_vm0, %v2436_v50, 0.0 }
 0x743   : > { %2396 = vadd.xlane.f32.xlu0 %v2395_v16 }
 0x745   : > { %2399 = vadd.xlane.f32.xlu1 %v2398_v4 }
 0x747   : > { %2476 = vadd.xlane.f32.xlu0 %v2475_v3 }
 0x749   : > { %2479 = vadd.xlane.f32.xlu1 %v2478_v43 }
 0x74b   : > { %2482 = vadd.xlane.f32.xlu0 %v2481_v27 }
 0x74d   : > { %2485 = vadd.xlane.f32.xlu1 %v2484_v47 }
 0x79c   : > { %v2367_v62 = vpop.xlane.xlu0 %2366 }
 0x79d   : > { %v2409_v45 = vmul.f32 0.015625, %v2367_v62 }
 0x79e   : > { %v2370_v61 = vpop.xlane.xlu1 %2369 }
 0x79f   : > { %v2410_v26 = vmul.f32 0.015625, %v2370_v61  ;;  %v2505_v55 = vmul.f32 %v2409_v45, %v2409_v45  ;;  %v2537_v24 = vsub.f32 %v6166_v25, %v2409_v45  ;;  %v6325_v45 = vld [vmem:[#allocation2 + $0xc] ss:$0 sm:$0xff] }
 0x7a0   : > { %v2361_v52 = vpop.xlane.xlu0 %2360 }
 0x7a1   : > { %v2407_v54 = vmul.f32 0.015625, %v2361_v52  ;;  %v2506_v42 = vmul.f32 %v2410_v26, %v2410_v26  ;;  %v2538_v31 = vsub.f32 %v6174_v21, %v2410_v26 }
 0x7a2   : > { %v2364_v15 = vpop.xlane.xlu1 %2363 }
 0x7a3   : > { %v2408_v34 = vmul.f32 0.015625, %v2364_v15  ;;  %v2503_v63 = vmul.f32 %v2407_v54, %v2407_v54  ;;  %v2535_v47 = vsub.f32 %v6171_v17, %v2407_v54 }
 0x7a4   : > { %v2447_v48 = vpop.xlane.xlu0 %2446 }
 0x7a5   : > { %v2489_v13 = vmul.f32 0.015625, %v2447_v48  ;;  %v2504_v5 = vmul.f32 %v2408_v34, %v2408_v34 }
 0x7a6   : > { %v2450_v40 = vpop.xlane.xlu1 %2449 }
 0x7a7   : > { %v2521_v53 = vsub.f32 %v2489_v13, %v2505_v55  ;;  %v2490_v59 = vmul.f32 0.015625, %v2450_v40  ;;  %v2536_v40 = vsub.f32 %v6179_v60, %v2408_v34 }
 0x7a8   : > { %v2441_v9 = vpop.xlane.xlu0 %2440 }
 0x7a9   : > { %v2553_v58 = vadd.f32 1e-05, %v2521_v53  ;;  %v2522_v57 = vsub.f32 %v2490_v59, %v2506_v42  ;;  %v2487_v1 = vmul.f32 0.015625, %v2441_v9 }
 0x7aa   : > { %v2444_v22 = vpop.xlane.xlu1 %2443 }
 0x7ab   : > { %v2554_v2 = vadd.f32 1e-05, %v2522_v57  ;;  %v2519_v38 = vsub.f32 %v2487_v1, %v2503_v63  ;;  %v2488_v12 = vmul.f32 0.015625, %v2444_v22  ;;  %4804 = vrsqrt.f32 %v2553_v58 }
 0x7ac   : > { %v2379_v28 = vpop.xlane.xlu0 %2378 }
 0x7ad   : > { %4806 = vrsqrt.f32 %v2554_v2  ;;  %v2551_v51 = vadd.f32 1e-05, %v2519_v38  ;;  %v2520_v35 = vsub.f32 %v2488_v12, %v2504_v5  ;;  %v6307_v36 = vmul.f32 0.015625, %v2379_v28  ;;  %v6332_v12 = vld [vmem:[#allocation2 + $0xd] ss:$0 sm:$0xff] }
 0x7ae   : > { %v2382_v30 = vpop.xlane.xlu1 %2381 }
 0x7af   : > { %4808 = vrsqrt.f32 %v2551_v51  ;;  %v2552_v44 = vadd.f32 1e-05, %v2520_v35  ;;  %v6309_v0 = vmul.f32 0.015625, %v2382_v30  ;;  %v2509_v32 = vmul.f32 %v6307_v36, %v6307_v36 }
 0x7b0   : > { %v2373_v39 = vpop.xlane.xlu0 %2372 }
 0x7b1   : > { %4810 = vrsqrt.f32 %v2552_v44  ;;  %v6311_v18 = vmul.f32 0.015625, %v2373_v39  ;;  %v2510_v43 = vmul.f32 %v6309_v0, %v6309_v0 }
 0x7b2   : > { %v2376_v56 = vpop.xlane.xlu1 %2375 }
 0x7b3   : > { %v6316_v4 = vmul.f32 0.015625, %v2376_v56  ;;  %v2507_v61 = vmul.f32 %v6311_v18, %v6311_v18 }
 0x7b4   : > { %v2459_v49 = vpop.xlane.xlu0 %2458 }
 0x7b5   : > { %v2493_v7 = vmul.f32 0.015625, %v2459_v49  ;;  %v4805_v16 = vpop.eup %4804  ;;  %v2508_v42 = vmul.f32 %v6316_v4, %v6316_v4 }
 0x7b6   : > { %v2462_v50 = vpop.xlane.xlu1 %2461  ;;  %v2585_v26 = vmul.f32 %v4805_v16, %v2537_v24 }
 0x7b7   : > { %v4807_v3 = vpop.eup %4806  ;;  %v2525_v23 = vsub.f32 %v2493_v7, %v2509_v32  ;;  %v2494_v27 = vmul.f32 0.015625, %v2462_v50 }
 0x7b8   : > { %v2586_v62 = vmul.f32 %v4807_v3, %v2538_v31  ;;  %v2453_v52 = vpop.xlane.xlu0 %2452  ;;  %v2605_v34 = vmul.f32 %v6325_v45, %v2585_v26 }
 0x7b9   : > { %v4809_v15 = vpop.eup %4808  ;;  %v2557_v48 = vadd.f32 1e-05, %v2525_v23  ;;  %v2526_v55 = vsub.f32 %v2494_v27, %v2510_v43  ;;  %v2491_v13 = vmul.f32 0.015625, %v2453_v52 }
 0x7ba   : > { %v2456_v53 = vpop.xlane.xlu1 %2455  ;;  %v2583_v59 = vmul.f32 %v4809_v15, %v2535_v47  ;;  %v2606_v9 = vmul.f32 %v6325_v45, %v2586_v62  ;;  %v2625_v49 = vadd.f32 %v6332_v12, %v2605_v34  ;;  %v2542_v47 = vsub.f32 %v6210_v10, %v6309_v0 }
 0x7bb   : > { %v4811_v54 = vpop.eup %4810  ;;  %v2558_v63 = vadd.f32 1e-05, %v2526_v55  ;;  %v2523_v58 = vsub.f32 %v2491_v13, %v2507_v61  ;;  %v2492_v57 = vmul.f32 0.015625, %v2456_v53  ;;  %4812 = vrsqrt.f32 %v2557_v48 }
 0x7bc   : > { %v2391_v1 = vpop.xlane.xlu0 %2390  ;;  %v2584_v22 = vmul.f32 %v4811_v54, %v2536_v40  ;;  %v2603_v5 = vmul.f32 %v6325_v45, %v2583_v59  ;;  %v2626_v35 = vadd.f32 %v6332_v12, %v2606_v9  ;;  %v2541_v15 = vsub.f32 %v6201_v20, %v6307_v36 }
 0x7bd   : > { %4814 = vrsqrt.f32 %v2558_v63  ;;  %v2555_v2 = vadd.f32 1e-05, %v2523_v58  ;;  %v2524_v38 = vsub.f32 %v2492_v57, %v2508_v42  ;;  %v6339_v32 = vmul.f32 0.015625, %v2391_v1 }
 0x7be   : > { %v2394_v28 = vpop.xlane.xlu1 %2393  ;;  %v2604_v51 = vmul.f32 %v6325_v45, %v2584_v22  ;;  %v2623_v39 = vadd.f32 %v6332_v12, %v2603_v5  ;;  %v2649_v50 = vpack.c.bf16 %v2626_v35, %v2625_v49  ;;  %v2539_v13 = vsub.f32 %v6207_v19, %v6311_v18 }
 0x7bf   : > { %4816 = vrsqrt.f32 %v2555_v2  ;;  %v2556_v30 = vadd.f32 1e-05, %v2524_v38  ;;  %v6341_v31 = vmul.f32 0.015625, %v2394_v28  ;;  %v2513_v43 = vmul.f32 %v6339_v32, %v6339_v32 }
 0x7c0   : > { %v2385_v44 = vpop.xlane.xlu0 %2384  ;;  %v2624_v56 = vadd.f32 %v6332_v12, %v2604_v51  ;;  %v2540_v36 = vsub.f32 %v6215_v41, %v6316_v4 }
 0x7c1   : > { %4818 = vrsqrt.f32 %v2556_v30  ;;  %v6343_v3 = vmul.f32 0.015625, %v2385_v44  ;;  %v2514_v26 = vmul.f32 %v6341_v31, %v6341_v31 }
 0x7c2   : > { %v2388_v7 = vpop.xlane.xlu1 %2387  ;;  %v2648_v16 = vpack.c.bf16 %v2624_v56, %v2623_v39 }
 0x7c3   : > { %v6351_v62 = vmul.f32 0.015625, %v2388_v7  ;;  %v2511_v40 = vmul.f32 %v6343_v3, %v6343_v3 }
 0x7c4   : > { %4451 = vmatprep.mubr.msk.bf16.mxu0 %vm598_vm0, %v2648_v16  ;;  %v2471_v24 = vpop.xlane.xlu0 %2470 }
 0x7c5   : > { %v2497_v23 = vmul.f32 0.015625, %v2471_v24  ;;  %4452 = vmatmul.mubr.msk.bf16.vlgmr.msra.gmra.mrb[32].mxu0 %vm598_vm0, %v2649_v50  ;;  %v4813_v27 = vpop.eup %4812  ;;  %v2512_v58 = vmul.f32 %v6351_v62, %v6351_v62 }
 0x7c6   : > { %v2474_v61 = vpop.xlane.xlu1 %2473  ;;  %v2589_v63 = vmul.f32 %v4813_v27, %v2541_v15 }
 0x7c7   : > { %v4815_v52 = vpop.eup %4814  ;;  %v2529_v48 = vsub.f32 %v2497_v23, %v2513_v43  ;;  %v2498_v55 = vmul.f32 0.015625, %v2474_v61 }
 0x7c8   : > { %v2465_v42 = vpop.xlane.xlu0 %2464  ;;  %v2590_v0 = vmul.f32 %v4815_v52, %v2542_v47  ;;  %v2609_v4 = vmul.f32 %v6325_v45, %v2589_v63  ;;  %v2543_v63 = vsub.f32 %v6243_v6, %v6343_v3 }
 0x7c9   : > { %v4817_v53 = vpop.eup %4816  ;;  %v2561_v59 = vadd.f32 1e-05, %v2529_v48  ;;  %v2530_v54 = vsub.f32 %v2498_v55, %v2514_v26  ;;  %v2495_v9 = vmul.f32 0.015625, %v2465_v42 }
 0x7ca   : > { %v2468_v57 = vpop.xlane.xlu1 %2467  ;;  %v2587_v1 = vmul.f32 %v4817_v53, %v2539_v13  ;;  %v2610_v2 = vmul.f32 %v6325_v45, %v2590_v0  ;;  %v2629_v43 = vadd.f32 %v6332_v12, %v2609_v4  ;;  %v2546_v13 = vsub.f32 %v6246_v46, %v6341_v31 }
 0x7cb   : > { %v4819_v22 = vpop.eup %4818  ;;  %v2562_v18 = vadd.f32 1e-05, %v2530_v54  ;;  %v2527_v5 = vsub.f32 %v2495_v9, %v2511_v40  ;;  %v2496_v34 = vmul.f32 0.015625, %v2468_v57  ;;  %4820 = vrsqrt.f32 %v2561_v59 }
 0x7cc   : > { %v2403_v38 = vpop.xlane.xlu0 %2402  ;;  %v2588_v28 = vmul.f32 %v4819_v22, %v2540_v36  ;;  %v2607_v51 = vmul.f32 %v6325_v45, %v2587_v1  ;;  %v2630_v49 = vadd.f32 %v6332_v12, %v2610_v2  ;;  %v2545_v53 = vsub.f32 %v6237_v37, %v6339_v32 }
 0x7cd   : > { %4822 = vrsqrt.f32 %v2562_v18  ;;  %v2559_v35 = vadd.f32 1e-05, %v2527_v5  ;;  %v2528_v30 = vsub.f32 %v2496_v34, %v2512_v58  ;;  %v6373_v52 = vmul.f32 0.015625, %v2403_v38 }
 0x7ce   : > { %v2406_v44 = vpop.xlane.xlu1 %2405  ;;  %v2608_v39 = vmul.f32 %v6325_v45, %v2588_v28  ;;  %v2627_v16 = vadd.f32 %v6332_v12, %v2607_v51  ;;  %v2651_v61 = vpack.c.bf16 %v2630_v49, %v2629_v43  ;;  %v2544_v34 = vsub.f32 %v6251_v29, %v6351_v62 }
 0x7cf   : > { %4824 = vrsqrt.f32 %v2559_v35  ;;  %v2560_v56 = vadd.f32 1e-05, %v2528_v30  ;;  %v2422_v40 = vmul.f32 0.015625, %v2406_v44  ;;  %v2517_v36 = vmul.f32 %v6373_v52, %v6373_v52 }
 0x7d0   : > { %v2397_v7 = vpop.xlane.xlu0 %2396  ;;  %v2628_v50 = vadd.f32 %v6332_v12, %v2608_v39 }
 0x7d1   : > { %4826 = vrsqrt.f32 %v2560_v56  ;;  %v2419_v24 = vmul.f32 0.015625, %v2397_v7  ;;  %v2518_v32 = vmul.f32 %v2422_v40, %v2422_v40 }
 0x7d2   : > { %v2400_v23 = vpop.xlane.xlu1 %2399  ;;  %v2650_v27 = vpack.c.bf16 %v2628_v50, %v2627_v16 }
 0x7d3   : > { %v2420_v47 = vmul.f32 0.015625, %v2400_v23  ;;  %v2515_v26 = vmul.f32 %v2419_v24, %v2419_v24 }
 0x7d4   : > { %4455 = vmatprep.mubr.msk.bf16.mxu0 %vm598_vm0, %v2650_v27  ;;  %v2477_v15 = vpop.xlane.xlu0 %2476 }
 0x7d5   : > { %v2499_v48 = vmul.f32 0.015625, %v2477_v15  ;;  %4456 = vmatmul.mubr.msk.bf16.gmra.mrb[36].mxu0 %vm598_vm0, %v2651_v61  ;;  %v4821_v55 = vpop.eup %4820  ;;  %v2516_v59 = vmul.f32 %v2420_v47, %v2420_v47  ;;  %v2547_v15 = vsub.f32 %v6284_v11, %v2419_v24 }
 0x7d6   : > { %v2480_v42 = vpop.xlane.xlu1 %2479  ;;  %v2593_v5 = vmul.f32 %v4821_v55, %v2545_v53 }
 0x7d7   : > { %v4823_v0 = vpop.eup %4822  ;;  %v2531_v54 = vsub.f32 %v2499_v48, %v2515_v26  ;;  %v2500_v9 = vmul.f32 0.015625, %v2480_v42  ;;  %v2548_v48 = vsub.f32 %v6289_v14, %v2420_v47  ;;  %v2549_v42 = vsub.f32 %v6273_v33, %v6373_v52 }
 0x7d8   : > { %v2483_v58 = vpop.xlane.xlu0 %2482  ;;  %v2594_v57 = vmul.f32 %v4823_v0, %v2546_v13  ;;  %v2613_v49 = vmul.f32 %v6325_v45, %v2593_v5  ;;  %v4657_v5 = vld [vmem:[%s6878_s5 + $0x48] sm:$0xff]  }
 0x7d9   : > { %v4825_v1 = vpop.eup %4824  ;;  %v2563_v22 = vadd.f32 1e-05, %v2531_v54  ;;  %v2532_v31 = vsub.f32 %v2500_v9, %v2516_v59  ;;  %v2501_v18 = vmul.f32 0.015625, %v2483_v58  ;;  %v2550_v54 = vsub.f32 %v6279_v8, %v2422_v40 }
 0x7da   : > { %v2486_v2 = vpop.xlane.xlu1 %2485  ;;  %v2591_v38 = vmul.f32 %v4825_v1, %v2543_v63  ;;  %v2614_v28 = vmul.f32 %v6325_v45, %v2594_v57  ;;  %v2633_v23 = vadd.f32 %v6332_v12, %v2613_v49 }
 0x7db   : > { %v4827_v51 = vpop.eup %4826  ;;  %4828 = vrsqrt.f32 %v2563_v22  ;;  %v2564_v3 = vadd.f32 1e-05, %v2532_v31  ;;  %v2533_v35 = vsub.f32 %v2501_v18, %v2517_v36  ;;  %v2502_v30 = vmul.f32 0.015625, %v2486_v2  ;;  %v4656_v18 = vld [vmem:[%s6878_s5 + $0x40] sm:$0xff]   ;;  %v4662_v2 = vld [vmem:[%s6878_s5 + $0x70] sm:$0xff]  }
 0x7dc   : > { %v2592_v4 = vmul.f32 %v4827_v51, %v2544_v34  ;;  %v2611_v44 = vmul.f32 %v6325_v45, %v2591_v38  ;;  %v2634_v16 = vadd.f32 %v6332_v12, %v2614_v28  ;;  %4467 = vmatprep.subr.bf16.mxu1 %v4656_v18  ;;  %v4660_v34 = vld [vmem:[%s6878_s5 + $0x60] sm:$0xff]   ;;  %v4663_v38 = vld [vmem:[%s6878_s5 + $0x78] sm:$0xff]   ;;  %v6436_v28 = vld [vmem:[#allocation2 + $0xe] ss:$0 sm:$0xff] }
 0x7dd   : > { %4830 = vrsqrt.f32 %v2564_v3  ;;  %v2565_v39 = vadd.f32 1e-05, %v2533_v35  ;;  %v2534_v56 = vsub.f32 %v2502_v30, %v2518_v32  ;;  %4468 = vmatpush3.bf16.msra.mxu1 %v4656_v18  ;;  %v4661_v32 = vld [vmem:[%s6878_s5 + $0x68] sm:$0xff]  }
 0x7de   : > { %v2612_v62 = vmul.f32 %v6325_v45, %v2592_v4  ;;  %v2631_v50 = vadd.f32 %v6332_v12, %v2611_v44  ;;  %v2653_v61 = vpack.c.bf16 %v2634_v16, %v2633_v23  ;;  %4469 = vmatprep.subr.bf16.mxu1 %v4657_v5 }
 0x7df   : > { %4832 = vrsqrt.f32 %v2565_v39  ;;  %v2566_v7 = vadd.f32 1e-05, %v2534_v56 }
 0x7e0   : > { %v2632_v43 = vadd.f32 %v6332_v12, %v2612_v62 }
 0x7e1   : > { %4834 = vrsqrt.f32 %v2566_v7  ;;  %4470 = vmatpush3.bf16.msra.mxu1 %v4657_v5 }
 0x7e2   : > { %v2652_v27 = vpack.c.bf16 %v2632_v43, %v2631_v50 }
 0x7e4   : > { %4459 = vmatprep.mubr.msk.bf16.mxu0 %vm598_vm0, %v2652_v27 }
 0x7e5   : > { %v4829_v26 = vpop.eup %4828  ;;  %4460 = vmatmul.mubr.msk.bf16.gmra.mrb[40].mxu0 %vm598_vm0, %v2653_v61 }
 0x7e6   : > { %v2595_v55 = vmul.f32 %v4829_v26, %v2547_v15 }
 0x7e7   : > { %v4831_v13 = vpop.eup %4830 }
 0x7e8   : > { %v2596_v0 = vmul.f32 %v4831_v13, %v2548_v48  ;;  %v2615_v53 = vmul.f32 %v6325_v45, %v2595_v55 }
 0x7e9   : > { %v4833_v59 = vpop.eup %4832 }
 0x7ea   : > { %v2616_v24 = vmul.f32 %v6325_v45, %v2596_v0  ;;  %v2597_v9 = vmul.f32 %v4833_v59, %v2549_v42  ;;  %v2635_v36 = vadd.f32 %v6332_v12, %v2615_v53 }
 0x7eb   : > { %v4835_v63 = vpop.eup %4834 }
 0x7ec   : > { %v2636_v58 = vadd.f32 %v6332_v12, %v2616_v24  ;;  %v2598_v47 = vmul.f32 %v4835_v63, %v2550_v54  ;;  %v2617_v57 = vmul.f32 %v6325_v45, %v2597_v9 }
 0x7ee   : > { %v2654_v1 = vpack.c.bf16 %v2636_v58, %v2635_v36  ;;  %v2618_v52 = vmul.f32 %v6325_v45, %v2598_v47  ;;  %v2637_v22 = vadd.f32 %v6332_v12, %v2617_v57  ;;  %v4658_v45 = vld [vmem:[%s6878_s5 + $0x50] sm:$0xff]  }
 0x7ef   : > { %4471 = vmatprep.subr.bf16.mxu1 %v4658_v45 }
 0x7f0   : > { %4463 = vmatprep.mubr.msk.bf16.mxu0 %vm598_vm0, %v2654_v1  ;;  %v2638_v40 = vadd.f32 %v6332_v12, %v2618_v52  ;;  %4472 = vmatpush3.bf16.msra.mxu1 %v4658_v45  ;;  %v4659_v12 = vld [vmem:[%s6878_s5 + $0x58] sm:$0xff]  }
 0x7f1   : > { %4473 = vmatprep.subr.bf16.mxu1 %v4659_v12 }
 0x7f2   : > { %v2655_v31 = vpack.c.bf16 %v2638_v40, %v2637_v22 }
 0x7f4   : > { %4464 = vmatmul.mubr.msk.bf16.gmra.mrb[44].mxu0 %vm598_vm0, %v2655_v31  ;;  %4474 = vmatpush3.bf16.msra.mxu1 %v4659_v12 }
 0x7f5   : > { %4475 = vmatprep.subr.bf16.mxu1 %v4660_v34 }
 0x7f8   : > { %4476 = vmatpush3.bf16.msra.mxu1 %v4660_v34 }
 0x7f9   : > { %4477 = vmatprep.subr.bf16.mxu1 %v4661_v32 }
 0x7fc   : > { %4478 = vmatpush3.bf16.msra.mxu1 %v4661_v32 }
 0x7fd   : > { %4479 = vmatprep.subr.bf16.mxu1 %v4662_v2 }
 0x800   : > { %4480 = vmatpush3.bf16.msra.mxu1 %v4662_v2 }
 0x801   : > { %4481 = vmatprep.subr.bf16.mxu1 %v4663_v38 }
 0x804   : > { %4482 = vmatpush3.bf16.msra.mxu1 %v4663_v38 }
 0x898   : > { %v4453_v51 = vpop.f32.mrb[32].mxu0 }
 0x899   : > { %v2752_v3 = vadd.f32 %v4453_v51, %v6436_v28  ;;  %v2743_v35 = vpop.f32.mrb[33].mxu0 }
 0x89a   : > { %v2744_v30 = vadd.f32 %v6436_v28, %v2743_v35  ;;  %v4454_v4 = vpop.f32.mrb[34].mxu0 }
 0x89b   : > { %v2824_v44 = vmul.f32 0.044715, %v2752_v3  ;;  %v2755_v39 = vadd.f32 %v4454_v4, %v6436_v28  ;;  %v2746_v56 = vpop.f32.mrb[35].mxu0  ;;  %v2808_v38 = vmul.f32 0.5, %v2752_v3 }
 0x89c   : > { %v2822_v49 = vmul.f32 0.044715, %v2744_v30  ;;  %v2747_v62 = vadd.f32 %v6436_v28, %v2746_v56 }
 0x89d   : > { %v2840_v7 = vmul.f32 %v2824_v44, %v2752_v3  ;;  %v2825_v16 = vmul.f32 0.044715, %v2755_v39 }
 0x89e   : > { %v2838_v50 = vmul.f32 %v2822_v49, %v2744_v30  ;;  %v2823_v43 = vmul.f32 0.044715, %v2747_v62  ;;  %v2806_v49 = vmul.f32 0.5, %v2744_v30 }
 0x89f   : > { %v2856_v23 = vmul.f32 %v2840_v7, %v2752_v3  ;;  %v2841_v27 = vmul.f32 %v2825_v16, %v2755_v39 }
 0x8a0   : > { %v2854_v61 = vmul.f32 %v2838_v50, %v2744_v30  ;;  %v2839_v15 = vmul.f32 %v2823_v43, %v2747_v62  ;;  %v2809_v43 = vmul.f32 0.5, %v2755_v39 }
 0x8a1   : > { %v2872_v26 = vadd.f32 %v2856_v23, %v2752_v3  ;;  %v2857_v48 = vmul.f32 %v2841_v27, %v2755_v39  ;;  %v2807_v3 = vmul.f32 0.5, %v2747_v62 }
 0x8a2   : > { %v2855_v55 = vmul.f32 %v2839_v15, %v2747_v62  ;;  %v2870_v13 = vadd.f32 %v2854_v61, %v2744_v30 }
 0x8a3   : > { %v2888_v42 = vmul.f32 0.7978846, %v2872_v26  ;;  %v2873_v0 = vadd.f32 %v2857_v48, %v2755_v39 }
 0x8a4   : > { %v2871_v53 = vadd.f32 %v2855_v55, %v2747_v62  ;;  %v2886_v59 = vmul.f32 0.7978846, %v2870_v13 }
 0x8a5   : > { %4836 = vtanh.f32 %v2888_v42  ;;  %v2889_v54 = vmul.f32 0.7978846, %v2873_v0 }
 0x8a6   : > { %v2887_v24 = vmul.f32 0.7978846, %v2871_v53  ;;  %4838 = vtanh.f32 %v2886_v59 }
 0x8a7   : > { %4840 = vtanh.f32 %v2889_v54 }
 0x8a8   : > { %v4457_v9 = vpop.f32.mrb[36].mxu0  ;;  %4842 = vtanh.f32 %v2887_v24 }
 0x8a9   : > { %v6443_v63 = vadd.f32 %v4457_v9, %v6436_v28  ;;  %v2759_v36 = vpop.f32.mrb[37].mxu0 }
 0x8aa   : > { %v6446_v58 = vadd.f32 %v6436_v28, %v2759_v36  ;;  %v4458_v47 = vpop.f32.mrb[38].mxu0 }
 0x8ab   : > { %v2828_v57 = vmul.f32 0.044715, %v6443_v63  ;;  %v6450_v1 = vadd.f32 %v4458_v47, %v6436_v28  ;;  %v2762_v52 = vpop.f32.mrb[39].mxu0 }
 0x8ac   : > { %v2826_v22 = vmul.f32 0.044715, %v6446_v58  ;;  %v6454_v40 = vadd.f32 %v6436_v28, %v2762_v52 }
 0x8ad   : > { %v2844_v31 = vmul.f32 %v2828_v57, %v6443_v63  ;;  %v2829_v18 = vmul.f32 0.044715, %v6450_v1 }
 0x8ae   : > { %v2842_v5 = vmul.f32 %v2826_v22, %v6446_v58  ;;  %v2827_v45 = vmul.f32 0.044715, %v6454_v40 }
 0x8af   : > { %v4837_v12 = vpop.eup %4836  ;;  %v2860_v34 = vmul.f32 %v2844_v31, %v6443_v63  ;;  %v2845_v32 = vmul.f32 %v2829_v18, %v6450_v1 }
 0x8b0   : > { %v4839_v2 = vpop.eup %4838  ;;  %v2858_v51 = vmul.f32 %v2842_v5, %v6446_v58  ;;  %v2843_v35 = vmul.f32 %v2827_v45, %v6454_v40  ;;  %v2920_v4 = vadd.f32 1.0, %v4837_v12 }
 0x8b1   : > { %v4841_v44 = vpop.eup %4840  ;;  %v2861_v56 = vmul.f32 %v2845_v32, %v6450_v1  ;;  %v2918_v7 = vadd.f32 1.0, %v4839_v2  ;;  %v2876_v16 = vadd.f32 %v2860_v34, %v6443_v63 }
 0x8b2   : > { %v4843_v50 = vpop.eup %4842  ;;  %v2859_v23 = vmul.f32 %v2843_v35, %v6454_v40  ;;  %v2921_v27 = vadd.f32 1.0, %v4841_v44  ;;  %v2874_v61 = vadd.f32 %v2858_v51, %v6446_v58  ;;  %v2936_v55 = vmul.f32 %v2920_v4, %v2808_v38 }
 0x8b3   : > { %v2919_v15 = vadd.f32 1.0, %v4843_v50  ;;  %v2877_v26 = vadd.f32 %v2861_v56, %v6450_v1  ;;  %v2892_v48 = vmul.f32 0.7978846, %v2876_v16  ;;  %v2934_v0 = vmul.f32 %v2918_v7, %v2806_v49 }
 0x8b4   : > { %v2937_v13 = vmul.f32 %v2921_v27, %v2809_v43  ;;  %v2875_v42 = vadd.f32 %v2859_v23, %v6454_v40  ;;  %v2890_v30 = vmul.f32 0.7978846, %v2874_v61  ;;  %v2812_v56 = vmul.f32 0.5, %v6443_v63 }
 0x8b5   : > { %v2935_v53 = vmul.f32 %v2919_v15, %v2807_v3  ;;  %v2893_v59 = vmul.f32 0.7978846, %v2877_v26  ;;  %4844 = vtanh.f32 %v2892_v48  ;;  %v2810_v50 = vmul.f32 0.5, %v6446_v58 }
 0x8b6   : > { %v2968_v39 = vpack.c.bf16 %v2937_v13, %v2936_v55  ;;  %v2891_v54 = vmul.f32 0.7978846, %v2875_v42  ;;  %4846 = vtanh.f32 %v2890_v30  ;;  %v2813_v3 = vmul.f32 0.5, %v6450_v1 }
 0x8b7   : > { %v2967_v24 = vpack.c.bf16 %v2935_v53, %v2934_v0  ;;  %4848 = vtanh.f32 %v2893_v59  ;;  %v2811_v48 = vmul.f32 0.5, %v6454_v40 }
 0x8b8   : > { %v4461_v9 = vpop.f32.mrb[40].mxu0  ;;  %4850 = vtanh.f32 %v2891_v54 }
 0x8b9   : > { %v6471_v62 = vadd.f32 %v4461_v9, %v6436_v28  ;;  %v2775_v36 = vpop.f32.mrb[41].mxu0  ;;  %4483 = vmatprep.mubr.bf16.mxu1 %v2967_v24 }
 0x8ba   : > { %v6474_v47 = vadd.f32 %v6436_v28, %v2775_v36  ;;  %v4462_v57 = vpop.f32.mrb[42].mxu0  ;;  %4484 = vmatmul.mubr.bf16.vlgmr.msra.gmra.mrb[48].mxu1 %v2968_v39 }
 0x8bb   : > { %v2832_v52 = vmul.f32 0.044715, %v6471_v62  ;;  %v6478_v22 = vadd.f32 %v4462_v57, %v6436_v28  ;;  %v2778_v31 = vpop.f32.mrb[43].mxu0 }
 0x8bc   : > { %v2830_v18 = vmul.f32 0.044715, %v6474_v47  ;;  %v6482_v5 = vadd.f32 %v6436_v28, %v2778_v31 }
 0x8bd   : > { %v2848_v45 = vmul.f32 %v2832_v52, %v6471_v62  ;;  %v2833_v12 = vmul.f32 0.044715, %v6478_v22 }
 0x8be   : > { %v2846_v34 = vmul.f32 %v2830_v18, %v6474_v47  ;;  %v2831_v32 = vmul.f32 0.044715, %v6482_v5 }
 0x8bf   : > { %v4845_v2 = vpop.eup %4844  ;;  %v2864_v38 = vmul.f32 %v2848_v45, %v6471_v62  ;;  %v2849_v51 = vmul.f32 %v2833_v12, %v6478_v22 }
 0x8c0   : > { %v4847_v35 = vpop.eup %4846  ;;  %v2862_v4 = vmul.f32 %v2846_v34, %v6474_v47  ;;  %v2847_v44 = vmul.f32 %v2831_v32, %v6482_v5  ;;  %v2924_v49 = vadd.f32 1.0, %v4845_v2 }
 0x8c1   : > { %v4849_v7 = vpop.eup %4848  ;;  %v2865_v16 = vmul.f32 %v2849_v51, %v6478_v22  ;;  %v2922_v43 = vadd.f32 1.0, %v4847_v35  ;;  %v2880_v23 = vadd.f32 %v2864_v38, %v6471_v62 }
 0x8c2   : > { %v4851_v27 = vpop.eup %4850  ;;  %v2863_v61 = vmul.f32 %v2847_v44, %v6482_v5  ;;  %v2925_v15 = vadd.f32 1.0, %v4849_v7  ;;  %v2878_v26 = vadd.f32 %v2862_v4, %v6474_v47  ;;  %v2940_v42 = vmul.f32 %v2924_v49, %v2812_v56 }
 0x8c3   : > { %v2923_v63 = vadd.f32 1.0, %v4851_v27  ;;  %v2881_v55 = vadd.f32 %v2865_v16, %v6478_v22  ;;  %v2896_v13 = vmul.f32 0.7978846, %v2880_v23  ;;  %v2938_v53 = vmul.f32 %v2922_v43, %v2810_v50 }
 0x8c4   : > { %v2941_v30 = vmul.f32 %v2925_v15, %v2813_v3  ;;  %v2879_v58 = vadd.f32 %v2863_v61, %v6482_v5  ;;  %v2894_v0 = vmul.f32 0.7978846, %v2878_v26  ;;  %v2816_v50 = vmul.f32 0.5, %v6471_v62 }
 0x8c5   : > { %v2939_v59 = vmul.f32 %v2923_v63, %v2811_v48  ;;  %v2897_v39 = vmul.f32 0.7978846, %v2881_v55  ;;  %4852 = vtanh.f32 %v2896_v13  ;;  %v2814_v3 = vmul.f32 0.5, %v6474_v47 }
 0x8c6   : > { %v2970_v54 = vpack.c.bf16 %v2941_v30, %v2940_v42  ;;  %v2895_v1 = vmul.f32 0.7978846, %v2879_v58  ;;  %4854 = vtanh.f32 %v2894_v0  ;;  %v2817_v48 = vmul.f32 0.5, %v6478_v22 }
 0x8c7   : > { %v4465_v24 = vpop.f32.mrb[44].mxu0  ;;  %v2969_v9 = vpack.c.bf16 %v2939_v59, %v2938_v53  ;;  %4856 = vtanh.f32 %v2897_v39  ;;  %v2815_v42 = vmul.f32 0.5, %v6482_v5 }
 0x8c8   : > { %v2800_v40 = vadd.f32 %v4465_v24, %v6436_v28  ;;  %v2791_v36 = vpop.f32.mrb[45].mxu0  ;;  %4858 = vtanh.f32 %v2895_v1 }
 0x8c9   : > { %v2792_v57 = vadd.f32 %v6436_v28, %v2791_v36  ;;  %v4466_v52 = vpop.f32.mrb[46].mxu0  ;;  %4487 = vmatprep.mubr.bf16.mxu1 %v2969_v9 }
 0x8ca   : > { %v2836_v31 = vmul.f32 0.044715, %v2800_v40  ;;  %v2803_v18 = vadd.f32 %v4466_v52, %v6436_v28  ;;  %v2794_v45 = vpop.f32.mrb[47].mxu0  ;;  %4488 = vmatmul.mubr.bf16.gmra.mrb[52].mxu1 %v2970_v54 }
 0x8cb   : > { %v2834_v12 = vmul.f32 0.044715, %v2792_v57  ;;  %v2795_v34 = vadd.f32 %v6436_v28, %v2794_v45  ;;  %v2820_v45 = vmul.f32 0.5, %v2800_v40 }
 0x8cc   : > { %v2852_v32 = vmul.f32 %v2836_v31, %v2800_v40  ;;  %v2837_v2 = vmul.f32 0.044715, %v2803_v18 }
 0x8cd   : > { %v2850_v38 = vmul.f32 %v2834_v12, %v2792_v57  ;;  %v2835_v51 = vmul.f32 0.044715, %v2795_v34  ;;  %v2821_v12 = vmul.f32 0.5, %v2803_v18 }
 0x8ce   : > { %v2868_v35 = vmul.f32 %v2852_v32, %v2800_v40  ;;  %v2853_v4 = vmul.f32 %v2837_v2, %v2803_v18  ;;  %v2818_v2 = vmul.f32 0.5, %v2792_v57 }
 0x8cf   : > { %v4853_v44 = vpop.eup %4852  ;;  %v2866_v56 = vmul.f32 %v2850_v38, %v2792_v57  ;;  %v2851_v49 = vmul.f32 %v2835_v51, %v2795_v34  ;;  %v2819_v38 = vmul.f32 0.5, %v2795_v34 }
 0x8d0   : > { %v4855_v7 = vpop.eup %4854  ;;  %v2869_v16 = vmul.f32 %v2853_v4, %v2803_v18  ;;  %v2928_v43 = vadd.f32 1.0, %v4853_v44  ;;  %v2884_v23 = vadd.f32 %v2868_v35, %v2800_v40 }
 0x8d1   : > { %v4857_v27 = vpop.eup %4856  ;;  %v2867_v61 = vmul.f32 %v2851_v49, %v2795_v34  ;;  %v2926_v28 = vadd.f32 1.0, %v4855_v7  ;;  %v2882_v15 = vadd.f32 %v2866_v56, %v2792_v57 }
 0x8d2   : > { %v4859_v26 = vpop.eup %4858  ;;  %v2929_v63 = vadd.f32 1.0, %v4857_v27  ;;  %v2885_v55 = vadd.f32 %v2869_v16, %v2803_v18  ;;  %v2900_v13 = vmul.f32 0.7978846, %v2884_v23  ;;  %v2944_v62 = vmul.f32 %v2928_v43, %v2816_v50  ;;  %v6510_v50 = vld [vmem:[#allocation2 + $0xf] ss:$0 sm:$0xff] }
 0x8d3   : > { %v2927_v30 = vadd.f32 1.0, %v4859_v26  ;;  %v2883_v58 = vadd.f32 %v2867_v61, %v2795_v34  ;;  %v2898_v0 = vmul.f32 0.7978846, %v2882_v15  ;;  %v2942_v39 = vmul.f32 %v2926_v28, %v2814_v3 }
 0x8d4   : > { %v2945_v53 = vmul.f32 %v2929_v63, %v2817_v48  ;;  %v2901_v59 = vmul.f32 0.7978846, %v2885_v55  ;;  %4860 = vtanh.f32 %v2900_v13 }
 0x8d5   : > { %v2943_v54 = vmul.f32 %v2927_v30, %v2815_v42  ;;  %v2899_v47 = vmul.f32 0.7978846, %v2883_v58  ;;  %4862 = vtanh.f32 %v2898_v0 }
 0x8d6   : > { %v2972_v1 = vpack.c.bf16 %v2945_v53, %v2944_v62  ;;  %4864 = vtanh.f32 %v2901_v59 }
 0x8d7   : > { %v2971_v24 = vpack.c.bf16 %v2943_v54, %v2942_v39  ;;  %4866 = vtanh.f32 %v2899_v47 }
 0x8d9   : > { %4491 = vmatprep.mubr.bf16.mxu1 %v2971_v24 }
 0x8da   : > { %4492 = vmatmul.mubr.bf16.gmra.mrb[56].mxu1 %v2972_v1 }
 0x8de   : > { %v4861_v22 = vpop.eup %4860 }
 0x8df   : > { %v4863_v9 = vpop.eup %4862  ;;  %v2932_v5 = vadd.f32 1.0, %v4861_v22 }
 0x8e0   : > { %v4865_v36 = vpop.eup %4864  ;;  %v2930_v52 = vadd.f32 1.0, %v4863_v9 }
 0x8e1   : > { %v4867_v31 = vpop.eup %4866  ;;  %v2933_v32 = vadd.f32 1.0, %v4865_v36  ;;  %v2948_v35 = vmul.f32 %v2932_v5, %v2820_v45 }
 0x8e2   : > { %v2931_v51 = vadd.f32 1.0, %v4867_v31  ;;  %v2946_v44 = vmul.f32 %v2930_v52, %v2818_v2 }
 0x8e3   : > { %v2949_v4 = vmul.f32 %v2933_v32, %v2821_v12 }
 0x8e4   : > { %v2947_v56 = vmul.f32 %v2931_v51, %v2819_v38 }
 0x8e5   : > { %v2974_v49 = vpack.c.bf16 %v2949_v4, %v2948_v35 }
 0x8e6   : > { %v2973_v7 = vpack.c.bf16 %v2947_v56, %v2946_v44 }
 0x8e8   : > { %4495 = vmatprep.mubr.bf16.mxu1 %v2973_v7 }
 0x8e9   : > { %4496 = vmatmul.mubr.bf16.gmra.mrb[60].mxu1 %v2974_v49 }
 0x98d   : > { %v4485_v16 = vpop.f32.mrb[48].mxu1 }
 0x98e   : > { %v3122_v43 = vadd.f32 %v4485_v16, %v6166_v25  ;;  %v3057_v23 = vpop.f32.mrb[49].mxu1 }
 0x98f   : > { %v3120_v40 = vadd.f32 %v3057_v23, %v6171_v17  ;;  %v4486_v18 = vpop.f32.mrb[50].mxu1 }
 0x990   : > { %v6515_v57 = vadd.f32 %v6510_v50, %v3122_v43  ;;  %v3123_v34 = vadd.f32 %v4486_v18, %v6174_v21  ;;  %v3060_v27 = vpop.f32.mrb[51].mxu1 }
 0x991   : > { %v3121_v61 = vadd.f32 %v3060_v27, %v6179_v60  ;;  %v6520_v3 = vadd.f32 %v6510_v50, %v3120_v40 }
 0x992   : > { %v6523_v28 = vadd.f32 %v6510_v50, %v3123_v34  ;;  %v3165_v25 = vsel %vm598_vm0, %v6515_v57, 0.0  ;;  %v3225_v60 = vmul.f32 %v6515_v57, %v6515_v57 }
 0x993   : > { %3166 = vadd.xlane.f32.xlu0 %v3165_v25  ;;  %v6528_v17 = vadd.f32 %v6510_v50, %v3121_v61  ;;  %v3159_v21 = vsel %vm598_vm0, %v6520_v3, 0.0  ;;  %v3223_v55 = vmul.f32 %v6520_v3, %v6520_v3  ;;  %v4664_v61 = vld [vmem:[%s6879_s6] sm:$0xff]  }
 0x994   : > { %v3168_v15 = vsel %vm598_vm0, %v6523_v28, 0.0  ;;  %v3226_v48 = vmul.f32 %v6523_v28, %v6523_v28  ;;  %v3245_v63 = vsel %vm598_vm0, %v3225_v60, 0.0  ;;  %4499 = vmatprep.subr.bf16.mxu0 %v4664_v61 }
 0x995   : > { %3169 = vadd.xlane.f32.xlu1 %v3168_v15  ;;  %v3162_v26 = vsel %vm598_vm0, %v6528_v17, 0.0  ;;  %v3224_v42 = vmul.f32 %v6528_v17, %v6528_v17  ;;  %v3239_v62 = vsel %vm598_vm0, %v3223_v55, 0.0  ;;  %4500 = vmatpush3.bf16.msra.mxu0 %v4664_v61 }
 0x996   : > { %v3248_v13 = vsel %vm598_vm0, %v3226_v48, 0.0  ;;  %v4665_v48 = vld [vmem:[%s6879_s6 + $0x8] sm:$0xff]  }
 0x997   : > { %3160 = vadd.xlane.f32.xlu0 %v3159_v21  ;;  %v3242_v1 = vsel %vm598_vm0, %v3224_v42, 0.0  ;;  %4501 = vmatprep.subr.bf16.mxu0 %v4665_v48 }
 0x999   : > { %3163 = vadd.xlane.f32.xlu1 %v3162_v26  ;;  %4502 = vmatpush3.bf16.msra.mxu0 %v4665_v48 }
 0x99b   : > { %3246 = vadd.xlane.f32.xlu0 %v3245_v63 }
 0x99d   : > { %3249 = vadd.xlane.f32.xlu1 %v3248_v13  ;;  %v4489_v30 = vpop.f32.mrb[52].mxu1 }
 0x99e   : > { %v3126_v58 = vadd.f32 %v4489_v30, %v6201_v20  ;;  %v3073_v0 = vpop.f32.mrb[53].mxu1 }
 0x99f   : > { %v3124_v53 = vadd.f32 %v3073_v0, %v6207_v19  ;;  %3240 = vadd.xlane.f32.xlu0 %v3239_v62  ;;  %v4490_v59 = vpop.f32.mrb[54].mxu1 }
 0x9a0   : > { %v6550_v39 = vadd.f32 %v6510_v50, %v3126_v58  ;;  %v3127_v54 = vadd.f32 %v4490_v59, %v6210_v10  ;;  %v3076_v47 = vpop.f32.mrb[55].mxu1 }
 0x9a1   : > { %v3125_v24 = vadd.f32 %v3076_v47, %v6215_v41  ;;  %3243 = vadd.xlane.f32.xlu1 %v3242_v1  ;;  %v6556_v20 = vadd.f32 %v6510_v50, %v3124_v53  ;;  %v4667_v1 = vld [vmem:[%s6879_s6 + $0x18] sm:$0xff]  }
 0x9a2   : > { %v6559_v22 = vadd.f32 %v6510_v50, %v3127_v54  ;;  %v3177_v19 = vsel %vm598_vm0, %v6550_v39, 0.0  ;;  %v3229_v5 = vmul.f32 %v6550_v39, %v6550_v39 }
 0x9a3   : > { %3178 = vadd.xlane.f32.xlu0 %v3177_v19  ;;  %v6564_v9 = vadd.f32 %v6510_v50, %v3125_v24  ;;  %v3171_v41 = vsel %vm598_vm0, %v6556_v20, 0.0  ;;  %v3227_v45 = vmul.f32 %v6556_v20, %v6556_v20 }
 0x9a4   : > { %v3180_v10 = vsel %vm598_vm0, %v6559_v22, 0.0  ;;  %v3230_v52 = vmul.f32 %v6559_v22, %v6559_v22  ;;  %v3257_v31 = vsel %vm598_vm0, %v3229_v5, 0.0 }
 0x9a5   : > { %3181 = vadd.xlane.f32.xlu1 %v3180_v10  ;;  %v3174_v36 = vsel %vm598_vm0, %v6564_v9, 0.0  ;;  %v3228_v32 = vmul.f32 %v6564_v9, %v6564_v9  ;;  %v3251_v35 = vsel %vm598_vm0, %v3227_v45, 0.0 }
 0x9a6   : > { %v3260_v12 = vsel %vm598_vm0, %v3230_v52, 0.0 }
 0x9a7   : > { %3172 = vadd.xlane.f32.xlu0 %v3171_v41  ;;  %v3254_v16 = vsel %vm598_vm0, %v3228_v32, 0.0 }
 0x9a9   : > { %3175 = vadd.xlane.f32.xlu1 %v3174_v36 }
 0x9ab   : > { %3258 = vadd.xlane.f32.xlu0 %v3257_v31 }
 0x9ad   : > { %3261 = vadd.xlane.f32.xlu1 %v3260_v12  ;;  %v4493_v2 = vpop.f32.mrb[56].mxu1 }
 0x9ae   : > { %v3130_v38 = vadd.f32 %v4493_v2, %v6237_v37  ;;  %v3089_v51 = vpop.f32.mrb[57].mxu1 }
 0x9af   : > { %v3128_v4 = vadd.f32 %v3089_v51, %v6243_v6  ;;  %3252 = vadd.xlane.f32.xlu0 %v3251_v35  ;;  %v4494_v44 = vpop.f32.mrb[58].mxu1 }
 0x9b0   : > { %v6586_v56 = vadd.f32 %v6510_v50, %v3130_v38  ;;  %v3131_v49 = vadd.f32 %v4494_v44, %v6246_v46  ;;  %v3092_v7 = vpop.f32.mrb[59].mxu1 }
 0x9b1   : > { %v3129_v43 = vadd.f32 %v3092_v7, %v6251_v29  ;;  %3255 = vadd.xlane.f32.xlu1 %v3254_v16  ;;  %v6592_v37 = vadd.f32 %v6510_v50, %v3128_v4 }
 0x9b2   : > { %v6595_v23 = vadd.f32 %v6510_v50, %v3131_v49  ;;  %v3189_v6 = vsel %vm598_vm0, %v6586_v56, 0.0  ;;  %v3233_v18 = vmul.f32 %v6586_v56, %v6586_v56 }
 0x9b3   : > { %3190 = vadd.xlane.f32.xlu0 %v3189_v6  ;;  %v6600_v40 = vadd.f32 %v6510_v50, %v3129_v43  ;;  %v3183_v29 = vsel %vm598_vm0, %v6592_v37, 0.0  ;;  %v3231_v15 = vmul.f32 %v6592_v37, %v6592_v37 }
 0x9b4   : > { %v3192_v46 = vsel %vm598_vm0, %v6595_v23, 0.0  ;;  %v3234_v27 = vmul.f32 %v6595_v23, %v6595_v23  ;;  %v3269_v25 = vsel %vm598_vm0, %v3233_v18, 0.0 }
 0x9b5   : > { %3193 = vadd.xlane.f32.xlu1 %v3192_v46  ;;  %v3186_v34 = vsel %vm598_vm0, %v6600_v40, 0.0  ;;  %v3232_v26 = vmul.f32 %v6600_v40, %v6600_v40  ;;  %v3263_v30 = vsel %vm598_vm0, %v3231_v15, 0.0 }
 0x9b6   : > { %v3272_v60 = vsel %vm598_vm0, %v3234_v27, 0.0 }
 0x9b7   : > { %3184 = vadd.xlane.f32.xlu0 %v3183_v29 }
 0x9b9   : > { %3187 = vadd.xlane.f32.xlu1 %v3186_v34 }
 0x9bb   : > { %3270 = vadd.xlane.f32.xlu0 %v3269_v25 }
 0x9bc   : > { %v4497_v21 = vpop.f32.mrb[60].mxu1 }
 0x9bd   : > { %v3134_v63 = vadd.f32 %v4497_v21, %v6273_v33  ;;  %3273 = vadd.xlane.f32.xlu1 %v3272_v60  ;;  %v3105_v55 = vpop.f32.mrb[61].mxu1  ;;  %v3266_v33 = vsel %vm598_vm0, %v3232_v26, 0.0 }
 0x9be   : > { %v3132_v13 = vadd.f32 %v3105_v55, %v6284_v11  ;;  %v4498_v42 = vpop.f32.mrb[62].mxu1  ;;  %v4666_v11 = vld [vmem:[%s6879_s6 + $0x10] sm:$0xff]  }
 0x9bf   : > { %v6628_v58 = vadd.f32 %v6510_v50, %v3134_v63  ;;  %v3135_v0 = vadd.f32 %v4498_v42, %v6279_v8  ;;  %3264 = vadd.xlane.f32.xlu0 %v3263_v30  ;;  %v3108_v62 = vpop.f32.mrb[63].mxu1  ;;  %4503 = vmatprep.subr.bf16.mxu0 %v4666_v11 }
 0x9c0   : > { %v3133_v53 = vadd.f32 %v3108_v62, %v6289_v14  ;;  %v6642_v8 = vadd.f32 %v6510_v50, %v3132_v13  ;;  %4504 = vmatpush3.bf16.msra.mxu0 %v4666_v11 }
 0x9c1   : > { %v6637_v59 = vadd.f32 %v6510_v50, %v3135_v0  ;;  %3267 = vadd.xlane.f32.xlu1 %v3266_v33  ;;  %v3201_v54 = vsel %vm598_vm0, %v6628_v58, 0.0  ;;  %4505 = vmatprep.subr.bf16.mxu0 %v4667_v1  ;;  %v3237_v5 = vmul.f32 %v6628_v58, %v6628_v58 }
 0x9c2   : > { %v6647_v47 = vadd.f32 %v6510_v50, %v3133_v53  ;;  %v3195_v24 = vsel %vm598_vm0, %v6642_v8, 0.0  ;;  %v3235_v19 = vmul.f32 %v6642_v8, %v6642_v8 }
 0x9c3   : > { %3202 = vadd.xlane.f32.xlu0 %v3201_v54  ;;  %v3204_v14 = vsel %vm598_vm0, %v6637_v59, 0.0  ;;  %v3238_v52 = vmul.f32 %v6637_v59, %v6637_v59  ;;  %v3281_v31 = vsel %vm598_vm0, %v3237_v5, 0.0 }
 0x9c4   : > { %4506 = vmatpush3.bf16.msra.mxu0 %v4667_v1  ;;  %v3198_v10 = vsel %vm598_vm0, %v6647_v47, 0.0  ;;  %v3236_v50 = vmul.f32 %v6647_v47, %v6647_v47  ;;  %v3275_v41 = vsel %vm598_vm0, %v3235_v19, 0.0 }
 0x9c5   : > { %3205 = vadd.xlane.f32.xlu1 %v3204_v14  ;;  %v3284_v45 = vsel %vm598_vm0, %v3238_v52, 0.0 }
 0x9c6   : > { %v3278_v36 = vsel %vm598_vm0, %v3236_v50, 0.0 }
 0x9c7   : > { %3196 = vadd.xlane.f32.xlu0 %v3195_v24 }
 0x9c9   : > { %3199 = vadd.xlane.f32.xlu1 %v3198_v10 }
 0x9cb   : > { %3276 = vadd.xlane.f32.xlu0 %v3275_v41 }
 0x9cd   : > { %3279 = vadd.xlane.f32.xlu1 %v3278_v36 }
 0x9cf   : > { %3282 = vadd.xlane.f32.xlu0 %v3281_v31 }
 0x9d1   : > { %3285 = vadd.xlane.f32.xlu1 %v3284_v45 }
 0xa20   : > { %v3167_v12 = vpop.xlane.xlu0 %3166 }
 0xa21   : > { %v3209_v38 = vmul.f32 0.015625, %v3167_v12 }
 0xa22   : > { %v3170_v32 = vpop.xlane.xlu1 %3169 }
 0xa23   : > { %v3210_v35 = vmul.f32 0.015625, %v3170_v32  ;;  %v3305_v44 = vmul.f32 %v3209_v38, %v3209_v38  ;;  %v3337_v5 = vsub.f32 %v6515_v57, %v3209_v38  ;;  %v6686_v57 = vld [vmem:[#allocation2 + $0x10] ss:$0 sm:$0xff] }
 0xa24   : > { %v3161_v2 = vpop.xlane.xlu0 %3160 }
 0xa25   : > { %v3207_v49 = vmul.f32 0.015625, %v3161_v2  ;;  %v3306_v43 = vmul.f32 %v3210_v35, %v3210_v35  ;;  %v3338_v19 = vsub.f32 %v6523_v28, %v3210_v35 }
 0xa26   : > { %v3164_v51 = vpop.xlane.xlu1 %3163 }
 0xa27   : > { %v3208_v6 = vmul.f32 0.015625, %v3164_v51  ;;  %v3303_v34 = vmul.f32 %v3207_v49, %v3207_v49  ;;  %v3335_v45 = vsub.f32 %v6520_v3, %v3207_v49 }
 0xa28   : > { %v3247_v4 = vpop.xlane.xlu0 %3246 }
 0xa29   : > { %v3289_v7 = vmul.f32 0.015625, %v3247_v4  ;;  %v3304_v21 = vmul.f32 %v3208_v6, %v3208_v6 }
 0xa2a   : > { %v3250_v16 = vpop.xlane.xlu1 %3249 }
 0xa2b   : > { %v3321_v46 = vsub.f32 %v3289_v7, %v3305_v44  ;;  %v3290_v29 = vmul.f32 0.015625, %v3250_v16  ;;  %v3336_v7 = vsub.f32 %v6528_v17, %v3208_v6 }
 0xa2c   : > { %v3241_v18 = vpop.xlane.xlu0 %3240 }
 0xa2d   : > { %v3353_v27 = vadd.f32 1e-05, %v3321_v46  ;;  %v3322_v61 = vsub.f32 %v3290_v29, %v3306_v43  ;;  %v3287_v25 = vmul.f32 0.015625, %v3241_v18 }
 0xa2e   : > { %v3244_v15 = vpop.xlane.xlu1 %3243 }
 0xa2f   : > { %v3354_v60 = vadd.f32 1e-05, %v3322_v61  ;;  %v3319_v26 = vsub.f32 %v3287_v25, %v3303_v34  ;;  %v3288_v48 = vmul.f32 0.015625, %v3244_v15  ;;  %4868 = vrsqrt.f32 %v3353_v27  ;;  %v6693_v15 = vld [vmem:[#allocation2 + $0x11] ss:$0 sm:$0xff] }
 0xa30   : > { %v3179_v63 = vpop.xlane.xlu0 %3178 }
 0xa31   : > { %4870 = vrsqrt.f32 %v3354_v60  ;;  %v3351_v55 = vadd.f32 1e-05, %v3319_v26  ;;  %v3320_v13 = vsub.f32 %v3288_v48, %v3304_v21  ;;  %v6668_v62 = vmul.f32 0.015625, %v3179_v63 }
 0xa32   : > { %v3182_v42 = vpop.xlane.xlu1 %3181 }
 0xa33   : > { %4872 = vrsqrt.f32 %v3351_v55  ;;  %v3352_v30 = vadd.f32 1e-05, %v3320_v13  ;;  %v6670_v33 = vmul.f32 0.015625, %v3182_v42  ;;  %v3309_v14 = vmul.f32 %v6668_v62, %v6668_v62 }
 0xa34   : > { %v3173_v0 = vpop.xlane.xlu0 %3172 }
 0xa35   : > { %4874 = vrsqrt.f32 %v3352_v30  ;;  %v6672_v11 = vmul.f32 0.015625, %v3173_v0  ;;  %v3310_v36 = vmul.f32 %v6670_v33, %v6670_v33 }
 0xa36   : > { %v3176_v53 = vpop.xlane.xlu1 %3175 }
 0xa37   : > { %v6677_v10 = vmul.f32 0.015625, %v3176_v53  ;;  %v3307_v32 = vmul.f32 %v6672_v11, %v6672_v11 }
 0xa38   : > { %v3259_v54 = vpop.xlane.xlu0 %3258 }
 0xa39   : > { %v3293_v1 = vmul.f32 0.015625, %v3259_v54  ;;  %v4869_v24 = vpop.eup %4868  ;;  %v3308_v38 = vmul.f32 %v6677_v10, %v6677_v10 }
 0xa3a   : > { %v3262_v50 = vpop.xlane.xlu1 %3261  ;;  %v3385_v28 = vmul.f32 %v4869_v24, %v3337_v5  ;;  %v3342_v5 = vsub.f32 %v6559_v22, %v6670_v33 }
 0xa3b   : > { %v4871_v41 = vpop.eup %4870  ;;  %v3325_v52 = vsub.f32 %v3293_v1, %v3309_v14  ;;  %v3294_v31 = vmul.f32 0.015625, %v3262_v50 }
 0xa3c   : > { %v3386_v12 = vmul.f32 %v4871_v41, %v3338_v19  ;;  %v3253_v2 = vpop.xlane.xlu0 %3252  ;;  %v3405_v17 = vmul.f32 %v6686_v57, %v3385_v28 }
 0xa3d   : > { %v4873_v51 = vpop.eup %4872  ;;  %v3357_v35 = vadd.f32 1e-05, %v3325_v52  ;;  %v3326_v4 = vsub.f32 %v3294_v31, %v3310_v36  ;;  %v3291_v44 = vmul.f32 0.015625, %v3253_v2 }
 0xa3e   : > { %v3256_v16 = vpop.xlane.xlu1 %3255  ;;  %v3383_v43 = vmul.f32 %v4873_v51, %v3335_v45  ;;  %v3406_v49 = vmul.f32 %v6686_v57, %v3386_v12  ;;  %v3425_v42 = vadd.f32 %v6693_v15, %v3405_v17  ;;  %v3341_v45 = vsub.f32 %v6550_v39, %v6668_v62 }
 0xa3f   : > { %v4875_v3 = vpop.eup %4874  ;;  %v3358_v46 = vadd.f32 1e-05, %v3326_v4  ;;  %v3323_v29 = vsub.f32 %v3291_v44, %v3307_v32  ;;  %v3292_v18 = vmul.f32 0.015625, %v3256_v16  ;;  %4876 = vrsqrt.f32 %v3357_v35 }
 0xa40   : > { %v3191_v34 = vpop.xlane.xlu0 %3190  ;;  %v3384_v27 = vmul.f32 %v4875_v3, %v3336_v7  ;;  %v3403_v61 = vmul.f32 %v6686_v57, %v3383_v43  ;;  %v3426_v26 = vadd.f32 %v6693_v15, %v3406_v49  ;;  %v3339_v51 = vsub.f32 %v6556_v20, %v6672_v11 }
 0xa41   : > { %4878 = vrsqrt.f32 %v3358_v46  ;;  %v3355_v6 = vadd.f32 1e-05, %v3323_v29  ;;  %v3324_v25 = vsub.f32 %v3292_v18, %v3308_v38  ;;  %v6700_v30 = vmul.f32 0.015625, %v3191_v34 }
 0xa42   : > { %v3194_v21 = vpop.xlane.xlu1 %3193  ;;  %v3404_v60 = vmul.f32 %v6686_v57, %v3384_v27  ;;  %v3423_v55 = vadd.f32 %v6693_v15, %v3403_v61  ;;  %v3448_v14 = vpack.c.bf16 %v3426_v26, %v3425_v42  ;;  %v3340_v39 = vsub.f32 %v6564_v9, %v6677_v10 }
 0xa43   : > { %4880 = vrsqrt.f32 %v3355_v6  ;;  %v3356_v48 = vadd.f32 1e-05, %v3324_v25  ;;  %v6702_v54 = vmul.f32 0.015625, %v3194_v21  ;;  %v3313_v19 = vmul.f32 %v6700_v30, %v6700_v30 }
 0xa44   : > { %v3185_v63 = vpop.xlane.xlu0 %3184  ;;  %v3424_v13 = vadd.f32 %v6693_v15, %v3404_v60 }
 0xa45   : > { %4882 = vrsqrt.f32 %v3356_v48  ;;  %v6704_v1 = vmul.f32 0.015625, %v3185_v63  ;;  %v3314_v12 = vmul.f32 %v6702_v54, %v6702_v54 }
 0xa46   : > { %v3188_v0 = vpop.xlane.xlu1 %3187  ;;  %v3447_v53 = vpack.c.bf16 %v3424_v13, %v3423_v55 }
 0xa47   : > { %v6712_v36 = vmul.f32 0.015625, %v3188_v0  ;;  %v3311_v28 = vmul.f32 %v6704_v1, %v6704_v1 }
 0xa48   : > { %4507 = vmatprep.mubr.msk.bf16.mxu0 %vm598_vm0, %v3447_v53  ;;  %v3271_v24 = vpop.xlane.xlu0 %3270 }
 0xa49   : > { %v3297_v50 = vmul.f32 0.015625, %v3271_v24  ;;  %4508 = vmatmul.mubr.msk.bf16.vlgmr.msra.gmra.mrb[48].mxu0 %vm598_vm0, %v3448_v14  ;;  %v4877_v41 = vpop.eup %4876  ;;  %v3312_v62 = vmul.f32 %v6712_v36, %v6712_v36 }
 0xa4a   : > { %v3274_v52 = vpop.xlane.xlu1 %3273  ;;  %v3389_v38 = vmul.f32 %v4877_v41, %v3341_v45  ;;  %v3346_v41 = vsub.f32 %v6595_v23, %v6702_v54  ;;  %v3345_v45 = vsub.f32 %v6586_v56, %v6700_v30 }
 0xa4b   : > { %v4879_v31 = vpop.eup %4878  ;;  %v3329_v32 = vsub.f32 %v3297_v50, %v3313_v19  ;;  %v3298_v2 = vmul.f32 0.015625, %v3274_v52 }
 0xa4c   : > { %v3265_v35 = vpop.xlane.xlu0 %3264  ;;  %v3390_v22 = vmul.f32 %v4879_v31, %v3342_v5  ;;  %v3409_v9 = vmul.f32 %v6686_v57, %v3389_v38 }
 0xa4d   : > { %v4881_v33 = vpop.eup %4880  ;;  %v3361_v4 = vadd.f32 1e-05, %v3329_v32  ;;  %v3330_v44 = vsub.f32 %v3298_v2, %v3314_v12  ;;  %v3295_v7 = vmul.f32 0.015625, %v3265_v35 }
 0xa4e   : > { %v3268_v16 = vpop.xlane.xlu1 %3267  ;;  %v3387_v43 = vmul.f32 %v4881_v33, %v3339_v51  ;;  %v3410_v46 = vmul.f32 %v6686_v57, %v3390_v22  ;;  %v3429_v63 = vadd.f32 %v6693_v15, %v3409_v9  ;;  %v3343_v51 = vsub.f32 %v6592_v37, %v6704_v1 }
 0xa4f   : > { %v4883_v3 = vpop.eup %4882  ;;  %v3362_v20 = vadd.f32 1e-05, %v3330_v44  ;;  %v3327_v11 = vsub.f32 %v3295_v7, %v3311_v28  ;;  %v3296_v49 = vmul.f32 0.015625, %v3268_v16  ;;  %4884 = vrsqrt.f32 %v3361_v4 }
 0xa50   : > { %v3203_v29 = vpop.xlane.xlu0 %3202  ;;  %v3388_v18 = vmul.f32 %v4883_v3, %v3340_v39  ;;  %v3407_v34 = vmul.f32 %v6686_v57, %v3387_v43  ;;  %v3430_v25 = vadd.f32 %v6693_v15, %v3410_v46  ;;  %v3344_v7 = vsub.f32 %v6600_v40, %v6712_v36 }
 0xa51   : > { %4886 = vrsqrt.f32 %v3362_v20  ;;  %v3359_v27 = vadd.f32 1e-05, %v3327_v11  ;;  %v3328_v61 = vsub.f32 %v3296_v49, %v3312_v62  ;;  %v6734_v53 = vmul.f32 0.015625, %v3203_v29 }
 0xa52   : > { %v3206_v10 = vpop.xlane.xlu1 %3205  ;;  %v3408_v17 = vmul.f32 %v6686_v57, %v3388_v18  ;;  %v3427_v60 = vadd.f32 %v6693_v15, %v3407_v34  ;;  %v3450_v0 = vpack.c.bf16 %v3430_v25, %v3429_v63 }
 0xa53   : > { %4888 = vrsqrt.f32 %v3359_v27  ;;  %v3360_v6 = vadd.f32 1e-05, %v3328_v61  ;;  %v3222_v5 = vmul.f32 0.015625, %v3206_v10  ;;  %v3317_v28 = vmul.f32 %v6734_v53, %v6734_v53 }
 0xa54   : > { %v3197_v21 = vpop.xlane.xlu0 %3196  ;;  %v3428_v26 = vadd.f32 %v6693_v15, %v3408_v17 }
 0xa55   : > { %4890 = vrsqrt.f32 %v3360_v6  ;;  %v3219_v48 = vmul.f32 0.015625, %v3197_v21  ;;  %v3318_v56 = vmul.f32 %v3222_v5, %v3222_v5  ;;  %v3349_v21 = vsub.f32 %v6628_v58, %v6734_v53 }
 0xa56   : > { %v3200_v55 = vpop.xlane.xlu1 %3199  ;;  %v3449_v13 = vpack.c.bf16 %v3428_v26, %v3427_v60 }
 0xa57   : > { %v3220_v42 = vmul.f32 0.015625, %v3200_v55  ;;  %v3315_v24 = vmul.f32 %v3219_v48, %v3219_v48  ;;  %v3347_v9 = vsub.f32 %v6642_v8, %v3219_v48  ;;  %v3350_v55 = vsub.f32 %v6637_v59, %v3222_v5  ;;  %v4671_v5 = vld [vmem:[#allocation7 + $0x18] sm:$0xff]  }
 0xa58   : > { %4511 = vmatprep.mubr.msk.bf16.mxu0 %vm598_vm0, %v3449_v13  ;;  %v3277_v14 = vpop.xlane.xlu0 %3276 }
 0xa59   : > { %v3299_v19 = vmul.f32 0.015625, %v3277_v14  ;;  %4512 = vmatmul.mubr.msk.bf16.gmra.mrb[52].mxu0 %vm598_vm0, %v3450_v0  ;;  %v4885_v50 = vpop.eup %4884  ;;  %v3316_v12 = vmul.f32 %v3220_v42, %v3220_v42  ;;  %v3348_v17 = vsub.f32 %v6647_v47, %v3220_v42 }
 0xa5a   : > { %v3280_v52 = vpop.xlane.xlu1 %3279  ;;  %v3393_v44 = vmul.f32 %v4885_v50, %v3345_v45  ;;  %v4668_v50 = vld [vmem:[#allocation7] sm:$0xff]   ;;  %v4675_v45 = vld [vmem:[#allocation7 + $0x38] sm:$0xff]  }
 0xa5b   : > { %v4887_v31 = vpop.eup %4886  ;;  %v3331_v32 = vsub.f32 %v3299_v19, %v3315_v24  ;;  %v3300_v2 = vmul.f32 0.015625, %v3280_v52  ;;  %4523 = vmatprep.subr.bf16.mxu0 %v4668_v50  ;;  %4555 = vmatprep.subr.bf16.mxu1 %v4668_v50  ;;  %v4673_v52 = vld [vmem:[#allocation7 + $0x28] sm:$0xff]  }
 0xa5c   : > { %v3283_v35 = vpop.xlane.xlu0 %3282  ;;  %v3394_v22 = vmul.f32 %v4887_v31, %v3346_v41  ;;  %v3413_v49 = vmul.f32 %v6686_v57, %v3393_v44  ;;  %4524 = vmatpush3.bf16.msra.mxu0 %v4668_v50  ;;  %4563 = vmatpush3.bf16.msra.mxu1 %v4668_v50  ;;  %v4669_v41 = vld [vmem:[#allocation7 + $0x8] sm:$0xff]   ;;  %v4674_v31 = vld [vmem:[#allocation7 + $0x30] sm:$0xff]  }
 0xa5d   : > { %v4889_v33 = vpop.eup %4888  ;;  %v3363_v4 = vadd.f32 1e-05, %v3331_v32  ;;  %v3332_v23 = vsub.f32 %v3300_v2, %v3316_v12  ;;  %v3301_v54 = vmul.f32 0.015625, %v3283_v35  ;;  %4525 = vmatprep.subr.bf16.mxu0 %v4669_v41  ;;  %4556 = vmatprep.subr.bf16.mxu1 %v4669_v41  ;;  %v6773_v12 = vld [vmem:[#allocation2 + $0x12] ss:$0 sm:$0xff] }
 0xa5e   : > { %v3286_v30 = vpop.xlane.xlu1 %3285  ;;  %v3391_v38 = vmul.f32 %v4889_v33, %v3343_v51  ;;  %v3414_v39 = vmul.f32 %v6686_v57, %v3394_v22  ;;  %v3433_v34 = vadd.f32 %v6693_v15, %v3413_v49 }
 0xa5f   : > { %v4891_v62 = vpop.eup %4890  ;;  %4892 = vrsqrt.f32 %v3363_v4  ;;  %v3364_v37 = vadd.f32 1e-05, %v3332_v23  ;;  %v3333_v1 = vsub.f32 %v3301_v54, %v3317_v28  ;;  %v3302_v16 = vmul.f32 0.015625, %v3286_v30 }
 0xa60   : > { %v3392_v43 = vmul.f32 %v4891_v62, %v3344_v7  ;;  %v3411_v3 = vmul.f32 %v6686_v57, %v3391_v38  ;;  %v3434_v46 = vadd.f32 %v6693_v15, %v3414_v39  ;;  %4526 = vmatpush3.bf16.msra.mxu0 %v4669_v41  ;;  %4564 = vmatpush3.bf16.msra.mxu1 %v4669_v41 }
 0xa61   : > { %4894 = vrsqrt.f32 %v3364_v37  ;;  %v3365_v20 = vadd.f32 1e-05, %v3333_v1  ;;  %v3334_v11 = vsub.f32 %v3302_v16, %v3318_v56 }
 0xa62   : > { %v3412_v40 = vmul.f32 %v6686_v57, %v3392_v43  ;;  %v3431_v29 = vadd.f32 %v6693_v15, %v3411_v3  ;;  %v3452_v61 = vpack.c.bf16 %v3434_v46, %v3433_v34 }
 0xa63   : > { %4896 = vrsqrt.f32 %v3365_v20  ;;  %v3366_v36 = vadd.f32 1e-05, %v3334_v11 }
 0xa64   : > { %v3432_v18 = vadd.f32 %v6693_v15, %v3412_v40 }
 0xa65   : > { %4898 = vrsqrt.f32 %v3366_v36 }
 0xa66   : > { %v3451_v27 = vpack.c.bf16 %v3432_v18, %v3431_v29 }
 0xa68   : > { %4515 = vmatprep.mubr.msk.bf16.mxu0 %vm598_vm0, %v3451_v27 }
 0xa69   : > { %v4893_v10 = vpop.eup %4892  ;;  %4516 = vmatmul.mubr.msk.bf16.gmra.mrb[56].mxu0 %vm598_vm0, %v3452_v61 }
 0xa6a   : > { %v3395_v6 = vmul.f32 %v4893_v10, %v3347_v9 }
 0xa6b   : > { %v4895_v25 = vpop.eup %4894 }
 0xa6c   : > { %v3396_v60 = vmul.f32 %v4895_v25, %v3348_v17  ;;  %v3415_v26 = vmul.f32 %v6686_v57, %v3395_v6 }
 0xa6d   : > { %v4897_v63 = vpop.eup %4896 }
 0xa6e   : > { %v3416_v8 = vmul.f32 %v6686_v57, %v3396_v60  ;;  %v3397_v48 = vmul.f32 %v4897_v63, %v3349_v21  ;;  %v3435_v0 = vadd.f32 %v6693_v15, %v3415_v26 }
 0xa6f   : > { %v4899_v13 = vpop.eup %4898 }
 0xa70   : > { %v3436_v14 = vadd.f32 %v6693_v15, %v3416_v8  ;;  %v3398_v47 = vmul.f32 %v4899_v13, %v3350_v55  ;;  %v3417_v42 = vmul.f32 %v6686_v57, %v3397_v48 }
 0xa72   : > { %v3453_v24 = vpack.c.bf16 %v3436_v14, %v3435_v0  ;;  %v3418_v58 = vmul.f32 %v6686_v57, %v3398_v47  ;;  %v3437_v53 = vadd.f32 %v6693_v15, %v3417_v42  ;;  %v4670_v57 = vld [vmem:[#allocation7 + $0x10] sm:$0xff]  }
 0xa73   : > { %4527 = vmatprep.subr.bf16.mxu0 %v4670_v57  ;;  %4557 = vmatprep.subr.bf16.mxu1 %v4670_v57 }
 0xa74   : > { %4519 = vmatprep.mubr.msk.bf16.mxu0 %vm598_vm0, %v3453_v24  ;;  %v3438_v59 = vadd.f32 %v6693_v15, %v3418_v58  ;;  %4528 = vmatpush3.bf16.msra.mxu0 %v4670_v57  ;;  %v4672_v15 = vld [vmem:[#allocation7 + $0x20] sm:$0xff]  }
 0xa75   : > { %4565 = vmatpush3.bf16.msra.mxu1 %v4670_v57  ;;  %4529 = vmatprep.subr.bf16.mxu0 %v4671_v5 }
 0xa76   : > { %v3454_v19 = vpack.c.bf16 %v3438_v59, %v3437_v53  ;;  %4558 = vmatprep.subr.bf16.mxu1 %v4671_v5 }
 0xa78   : > { %4520 = vmatmul.mubr.msk.bf16.gmra.mrb[60].mxu0 %vm598_vm0, %v3454_v19 }
 0xa79   : > { %4530 = vmatpush3.bf16.msra.mxu0 %v4671_v5  ;;  %4566 = vmatpush3.bf16.msra.mxu1 %v4671_v5 }
 0xa7a   : > { %4531 = vmatprep.subr.bf16.mxu0 %v4672_v15  ;;  %4559 = vmatprep.subr.bf16.mxu1 %v4672_v15 }
 0xa7d   : > { %4532 = vmatpush3.bf16.msra.mxu0 %v4672_v15  ;;  %4567 = vmatpush3.bf16.msra.mxu1 %v4672_v15 }
 0xa7e   : > { %4533 = vmatprep.subr.bf16.mxu0 %v4673_v52  ;;  %4560 = vmatprep.subr.bf16.mxu1 %v4673_v52 }
 0xa81   : > { %4534 = vmatpush3.bf16.msra.mxu0 %v4673_v52  ;;  %4568 = vmatpush3.bf16.msra.mxu1 %v4673_v52 }
 0xa82   : > { %4535 = vmatprep.subr.bf16.mxu0 %v4674_v31  ;;  %4561 = vmatprep.subr.bf16.mxu1 %v4674_v31 }
 0xa85   : > { %4536 = vmatpush3.bf16.msra.mxu0 %v4674_v31  ;;  %4569 = vmatpush3.bf16.msra.mxu1 %v4674_v31 }
 0xa86   : > { %4537 = vmatprep.subr.bf16.mxu0 %v4675_v45  ;;  %4562 = vmatprep.subr.bf16.mxu1 %v4675_v45 }
 0xa89   : > { %4538 = vmatpush3.bf16.msra.mxu0 %v4675_v45  ;;  %4570 = vmatpush3.bf16.msra.mxu1 %v4675_v45 }
 0xb1c   : > { %v4509_v32 = vpop.f32.mrb[48].mxu0 }
 0xb1d   : > { %v3551_v2 = vadd.f32 %v4509_v32, %v6773_v12  ;;  %v3542_v51 = vpop.f32.mrb[49].mxu0 }
 0xb1e   : > { %v3543_v28 = vadd.f32 %v6773_v12, %v3542_v51  ;;  %v4510_v35 = vpop.f32.mrb[50].mxu0 }
 0xb1f   : > { %v3623_v22 = vmul.f32 0.044715, %v3551_v2  ;;  %v3554_v33 = vadd.f32 %v4510_v35, %v6773_v12  ;;  %v3545_v4 = vpop.f32.mrb[51].mxu0  ;;  %v3607_v0 = vmul.f32 0.5, %v3551_v2 }
 0xb20   : > { %v3621_v23 = vmul.f32 0.044715, %v3543_v28  ;;  %v3546_v54 = vadd.f32 %v6773_v12, %v3545_v4  ;;  %v3605_v59 = vmul.f32 0.5, %v3543_v28 }
 0xb21   : > { %v3639_v44 = vmul.f32 %v3623_v22, %v3551_v2  ;;  %v3624_v7 = vmul.f32 0.044715, %v3554_v33  ;;  %v3608_v41 = vmul.f32 0.5, %v3554_v33 }
 0xb22   : > { %v3637_v56 = vmul.f32 %v3621_v23, %v3543_v28  ;;  %v3622_v30 = vmul.f32 0.044715, %v3546_v54  ;;  %v3606_v45 = vmul.f32 0.5, %v3546_v54 }
 0xb23   : > { %v3655_v38 = vmul.f32 %v3639_v44, %v3551_v2  ;;  %v3640_v39 = vmul.f32 %v3624_v7, %v3554_v33 }
 0xb24   : > { %v3653_v62 = vmul.f32 %v3637_v56, %v3543_v28  ;;  %v3638_v37 = vmul.f32 %v3622_v30, %v3546_v54 }
 0xb25   : > { %v3671_v1 = vadd.f32 %v3655_v38, %v3551_v2  ;;  %v3656_v16 = vmul.f32 %v3640_v39, %v3554_v33 }
 0xb26   : > { %v3654_v43 = vmul.f32 %v3638_v37, %v3546_v54  ;;  %v3669_v3 = vadd.f32 %v3653_v62, %v3543_v28 }
 0xb27   : > { %v3687_v20 = vmul.f32 0.7978846, %v3671_v1  ;;  %v3672_v11 = vadd.f32 %v3656_v16, %v3554_v33 }
 0xb28   : > { %v3670_v49 = vadd.f32 %v3654_v43, %v3546_v54  ;;  %v3685_v40 = vmul.f32 0.7978846, %v3669_v3 }
 0xb29   : > { %4900 = vtanh.f32 %v3687_v20  ;;  %v3688_v36 = vmul.f32 0.7978846, %v3672_v11 }
 0xb2a   : > { %v3686_v46 = vmul.f32 0.7978846, %v3670_v49  ;;  %4902 = vtanh.f32 %v3685_v40 }
 0xb2b   : > { %4904 = vtanh.f32 %v3688_v36 }
 0xb2c   : > { %v4513_v29 = vpop.f32.mrb[52].mxu0  ;;  %4906 = vtanh.f32 %v3686_v46 }
 0xb2d   : > { %v6780_v18 = vadd.f32 %v4513_v29, %v6773_v12  ;;  %v3558_v34 = vpop.f32.mrb[53].mxu0 }
 0xb2e   : > { %v6783_v27 = vadd.f32 %v6773_v12, %v3558_v34  ;;  %v4514_v61 = vpop.f32.mrb[54].mxu0 }
 0xb2f   : > { %v3627_v9 = vmul.f32 0.044715, %v6780_v18  ;;  %v6787_v10 = vadd.f32 %v4514_v61, %v6773_v12  ;;  %v3561_v17 = vpop.f32.mrb[55].mxu0  ;;  %v3611_v34 = vmul.f32 0.5, %v6780_v18 }
 0xb30   : > { %v3625_v6 = vmul.f32 0.044715, %v6783_v27  ;;  %v6791_v25 = vadd.f32 %v6773_v12, %v3561_v17 }
 0xb31   : > { %v3643_v21 = vmul.f32 %v3627_v9, %v6780_v18  ;;  %v3628_v60 = vmul.f32 0.044715, %v6787_v10 }
 0xb32   : > { %v3641_v26 = vmul.f32 %v3625_v6, %v6783_v27  ;;  %v3626_v63 = vmul.f32 0.044715, %v6791_v25 }
 0xb33   : > { %v4901_v55 = vpop.eup %4900  ;;  %v3659_v8 = vmul.f32 %v3643_v21, %v6780_v18  ;;  %v3644_v48 = vmul.f32 %v3628_v60, %v6787_v10  ;;  %v3609_v60 = vmul.f32 0.5, %v6783_v27 }
 0xb34   : > { %v4903_v13 = vpop.eup %4902  ;;  %v3657_v14 = vmul.f32 %v3641_v26, %v6783_v27  ;;  %v3642_v47 = vmul.f32 %v3626_v63, %v6791_v25  ;;  %v3719_v42 = vadd.f32 1.0, %v4901_v55 }
 0xb35   : > { %v4905_v24 = vpop.eup %4904  ;;  %v3675_v58 = vadd.f32 %v3659_v8, %v6780_v18  ;;  %v3660_v53 = vmul.f32 %v3644_v48, %v6787_v10  ;;  %v3717_v19 = vadd.f32 1.0, %v4903_v13  ;;  %v3612_v8 = vmul.f32 0.5, %v6787_v10 }
 0xb36   : > { %v4907_v50 = vpop.eup %4906  ;;  %v3658_v57 = vmul.f32 %v3642_v47, %v6791_v25  ;;  %v3720_v5 = vadd.f32 1.0, %v4905_v24  ;;  %v3673_v15 = vadd.f32 %v3657_v14, %v6783_v27  ;;  %v3735_v2 = vmul.f32 %v3719_v42, %v3607_v0 }
 0xb37   : > { %v3691_v52 = vmul.f32 0.7978846, %v3675_v58  ;;  %v3676_v31 = vadd.f32 %v3660_v53, %v6787_v10  ;;  %v3718_v32 = vadd.f32 1.0, %v4907_v50  ;;  %v3733_v4 = vmul.f32 %v3717_v19, %v3605_v59 }
 0xb38   : > { %v3736_v51 = vmul.f32 %v3720_v5, %v3608_v41  ;;  %v3674_v35 = vadd.f32 %v3658_v57, %v6791_v25  ;;  %v3689_v22 = vmul.f32 0.7978846, %v3673_v15  ;;  %v3610_v0 = vmul.f32 0.5, %v6791_v25 }
 0xb39   : > { %4908 = vtanh.f32 %v3691_v52  ;;  %v3692_v28 = vmul.f32 0.7978846, %v3676_v31  ;;  %v3734_v23 = vmul.f32 %v3718_v32, %v3606_v45 }
 0xb3a   : > { %v3766_v33 = vpack.c.bf16 %v3736_v51, %v3735_v2  ;;  %v3690_v44 = vmul.f32 0.7978846, %v3674_v35  ;;  %4910 = vtanh.f32 %v3689_v22 }
 0xb3b   : > { %4912 = vtanh.f32 %v3692_v28  ;;  %v3765_v7 = vpack.c.bf16 %v3734_v23, %v3733_v4 }
 0xb3c   : > { %v4517_v56 = vpop.f32.mrb[56].mxu0  ;;  %4914 = vtanh.f32 %v3690_v44 }
 0xb3d   : > { %v6808_v30 = vadd.f32 %v4517_v56, %v6773_v12  ;;  %v3574_v54 = vpop.f32.mrb[57].mxu0  ;;  %4539 = vmatprep.mubr.bf16.mxu0 %v3765_v7 }
 0xb3e   : > { %v6811_v38 = vadd.f32 %v6773_v12, %v3574_v54  ;;  %v4518_v39 = vpop.f32.mrb[58].mxu0  ;;  %4540 = vmatmul.mubr.bf16.vlgmr.msra.gmra.mrb[64].mxu0 %v3766_v33 }
 0xb3f   : > { %v3631_v62 = vmul.f32 0.044715, %v6808_v30  ;;  %v6815_v37 = vadd.f32 %v4518_v39, %v6773_v12  ;;  %v3577_v1 = vpop.f32.mrb[59].mxu0 }
 0xb40   : > { %v3629_v16 = vmul.f32 0.044715, %v6811_v38  ;;  %v6819_v43 = vadd.f32 %v6773_v12, %v3577_v1  ;;  %v3615_v1 = vmul.f32 0.5, %v6808_v30 }
 0xb41   : > { %v3647_v3 = vmul.f32 %v3631_v62, %v6808_v30  ;;  %v3632_v20 = vmul.f32 0.044715, %v6815_v37 }
 0xb42   : > { %v3645_v11 = vmul.f32 %v3629_v16, %v6811_v38  ;;  %v3630_v49 = vmul.f32 0.044715, %v6819_v43 }
 0xb43   : > { %v4909_v40 = vpop.eup %4908  ;;  %v3663_v36 = vmul.f32 %v3647_v3, %v6808_v30  ;;  %v3648_v46 = vmul.f32 %v3632_v20, %v6815_v37 }
 0xb44   : > { %v4911_v29 = vpop.eup %4910  ;;  %v3661_v61 = vmul.f32 %v3645_v11, %v6811_v38  ;;  %v3646_v9 = vmul.f32 %v3630_v49, %v6819_v43  ;;  %v3723_v17 = vadd.f32 1.0, %v4909_v40  ;;  %v3613_v49 = vmul.f32 0.5, %v6811_v38 }
 0xb45   : > { %v4913_v6 = vpop.eup %4912  ;;  %v3664_v21 = vmul.f32 %v3648_v46, %v6815_v37  ;;  %v3721_v26 = vadd.f32 1.0, %v4911_v29  ;;  %v3679_v63 = vadd.f32 %v3663_v36, %v6808_v30  ;;  %v3616_v46 = vmul.f32 0.5, %v6815_v37 }
 0xb46   : > { %v4915_v55 = vpop.eup %4914  ;;  %v3662_v48 = vmul.f32 %v3646_v9, %v6819_v43  ;;  %v3724_v13 = vadd.f32 1.0, %v4913_v6  ;;  %v3677_v18 = vadd.f32 %v3661_v61, %v6811_v38  ;;  %v3739_v24 = vmul.f32 %v3723_v17, %v3611_v34 }
 0xb47   : > { %v3722_v14 = vadd.f32 1.0, %v4915_v55  ;;  %v3680_v47 = vadd.f32 %v3664_v21, %v6815_v37  ;;  %v3695_v42 = vmul.f32 0.7978846, %v3679_v63  ;;  %v3737_v59 = vmul.f32 %v3721_v26, %v3609_v60 }
 0xb48   : > { %v3740_v58 = vmul.f32 %v3724_v13, %v3612_v8  ;;  %v3678_v27 = vadd.f32 %v3662_v48, %v6819_v43  ;;  %v3693_v53 = vmul.f32 0.7978846, %v3677_v18  ;;  %v3614_v9 = vmul.f32 0.5, %v6819_v43 }
 0xb49   : > { %v3738_v19 = vmul.f32 %v3722_v14, %v3610_v0  ;;  %v3696_v50 = vmul.f32 0.7978846, %v3680_v47  ;;  %4916 = vtanh.f32 %v3695_v42 }
 0xb4a   : > { %v3768_v10 = vpack.c.bf16 %v3740_v58, %v3739_v24  ;;  %v3694_v41 = vmul.f32 0.7978846, %v3678_v27  ;;  %4918 = vtanh.f32 %v3693_v53 }
 0xb4b   : > { %v4521_v57 = vpop.f32.mrb[60].mxu0  ;;  %v3767_v5 = vpack.c.bf16 %v3738_v19, %v3737_v59  ;;  %4920 = vtanh.f32 %v3696_v50 }
 0xb4c   : > { %v3599_v25 = vadd.f32 %v4521_v57, %v6773_v12  ;;  %v3590_v15 = vpop.f32.mrb[61].mxu0  ;;  %4922 = vtanh.f32 %v3694_v41 }
 0xb4d   : > { %v3591_v52 = vadd.f32 %v6773_v12, %v3590_v15  ;;  %v4522_v31 = vpop.f32.mrb[62].mxu0  ;;  %4543 = vmatprep.mubr.bf16.mxu1 %v3767_v5  ;;  %v4172_v5 = vld [vmem:[#allocation2 + $0x13] ss:$0 sm:$0xff] }
 0xb4e   : > { %v3635_v45 = vmul.f32 0.044715, %v3599_v25  ;;  %v3602_v32 = vadd.f32 %v4522_v31, %v6773_v12  ;;  %v3593_v2 = vpop.f32.mrb[63].mxu0  ;;  %4544 = vmatmul.mubr.bf16.vlgmr.msra.gmra.mrb[64].mxu1 %v3768_v10  ;;  %v3619_v47 = vmul.f32 0.5, %v3599_v25 }
 0xb4f   : > { %v3633_v51 = vmul.f32 0.044715, %v3591_v52  ;;  %v3594_v35 = vadd.f32 %v6773_v12, %v3593_v2  ;;  %v3617_v58 = vmul.f32 0.5, %v3591_v52 }
 0xb50   : > { %v3651_v22 = vmul.f32 %v3635_v45, %v3599_v25  ;;  %v3636_v28 = vmul.f32 0.044715, %v3602_v32  ;;  %v3620_v42 = vmul.f32 0.5, %v3602_v32 }
 0xb51   : > { %v3649_v4 = vmul.f32 %v3633_v51, %v3591_v52  ;;  %v3634_v23 = vmul.f32 0.044715, %v3594_v35  ;;  %v3618_v27 = vmul.f32 0.5, %v3594_v35 }
 0xb52   : > { %v3667_v33 = vmul.f32 %v3651_v22, %v3599_v25  ;;  %v3652_v44 = vmul.f32 %v3636_v28, %v3602_v32 }
 0xb53   : > { %v4917_v7 = vpop.eup %4916  ;;  %v3665_v56 = vmul.f32 %v3649_v4, %v3591_v52  ;;  %v3650_v54 = vmul.f32 %v3634_v23, %v3594_v35 }
 0xb54   : > { %v4919_v39 = vpop.eup %4918  ;;  %v3668_v62 = vmul.f32 %v3652_v44, %v3602_v32  ;;  %v3727_v16 = vadd.f32 1.0, %v4917_v7  ;;  %v3683_v3 = vadd.f32 %v3667_v33, %v3599_v25 }
 0xb55   : > { %v4921_v20 = vpop.eup %4920  ;;  %v3666_v11 = vmul.f32 %v3650_v54, %v3594_v35  ;;  %v3725_v12 = vadd.f32 1.0, %v4919_v39  ;;  %v3681_v40 = vadd.f32 %v3665_v56, %v3591_v52 }
 0xb56   : > { %v4923_v36 = vpop.eup %4922  ;;  %v3728_v29 = vadd.f32 1.0, %v4921_v20  ;;  %v3684_v34 = vadd.f32 %v3668_v62, %v3602_v32  ;;  %v3699_v61 = vmul.f32 0.7978846, %v3683_v3  ;;  %v3743_v30 = vmul.f32 %v3727_v16, %v3615_v1 }
 0xb57   : > { %v3726_v17 = vadd.f32 1.0, %v4923_v36  ;;  %v3682_v6 = vadd.f32 %v3666_v11, %v3594_v35  ;;  %v3697_v21 = vmul.f32 0.7978846, %v3681_v40  ;;  %v3741_v63 = vmul.f32 %v3725_v12, %v3613_v49 }
 0xb58   : > { %v3744_v60 = vmul.f32 %v3728_v29, %v3616_v46  ;;  %v3700_v26 = vmul.f32 0.7978846, %v3684_v34  ;;  %4924 = vtanh.f32 %v3699_v61 }
 0xb59   : > { %v3742_v55 = vmul.f32 %v3726_v17, %v3614_v9  ;;  %v3698_v38 = vmul.f32 0.7978846, %v3682_v6  ;;  %4926 = vtanh.f32 %v3697_v21 }
 0xb5a   : > { %v3770_v8 = vpack.c.bf16 %v3744_v60, %v3743_v30  ;;  %4928 = vtanh.f32 %v3700_v26 }
 0xb5b   : > { %v3769_v48 = vpack.c.bf16 %v3742_v55, %v3741_v63  ;;  %4930 = vtanh.f32 %v3698_v38 }
 0xb5d   : > { %4547 = vmatprep.mubr.bf16.mxu1 %v3769_v48 }
 0xb5e   : > { %4548 = vmatmul.mubr.bf16.gmra.mrb[68].mxu1 %v3770_v8 }
 0xb62   : > { %v4925_v37 = vpop.eup %4924 }
 0xb63   : > { %v4927_v13 = vpop.eup %4926  ;;  %v3731_v43 = vadd.f32 1.0, %v4925_v37 }
 0xb64   : > { %v4929_v18 = vpop.eup %4928  ;;  %v3729_v0 = vadd.f32 1.0, %v4927_v13 }
 0xb65   : > { %v4931_v14 = vpop.eup %4930  ;;  %v3732_v24 = vadd.f32 1.0, %v4929_v18  ;;  %v3747_v59 = vmul.f32 %v3731_v43, %v3619_v47 }
 0xb66   : > { %v3730_v53 = vadd.f32 1.0, %v4931_v14  ;;  %v3745_v50 = vmul.f32 %v3729_v0, %v3617_v58 }
 0xb67   : > { %v3748_v19 = vmul.f32 %v3732_v24, %v3620_v42 }
 0xb68   : > { %v3746_v10 = vmul.f32 %v3730_v53, %v3618_v27 }
 0xb69   : > { %v3772_v41 = vpack.c.bf16 %v3748_v19, %v3747_v59 }
 0xb6a   : > { %v3771_v57 = vpack.c.bf16 %v3746_v10, %v3745_v50 }
 0xb6c   : > { %4551 = vmatprep.mubr.bf16.mxu1 %v3771_v57 }
 0xb6d   : > { %4552 = vmatmul.mubr.bf16.gmra.mrb[72].mxu1 %v3772_v41 }
 0xc11   : > { %v4541_v25 = vpop.f32.mrb[64].mxu0 }
 0xc12   : > { %v3869_v15 = vadd.f32 %v4541_v25, %v4172_v5  ;;  %v3860_v52 = vpop.f32.mrb[65].mxu0 }
 0xc13   : > { %v3861_v31 = vadd.f32 %v4172_v5, %v3860_v52  ;;  %v4542_v45 = vpop.f32.mrb[66].mxu0 }
 0xc14   : > { %3925 = vst [vmem:[%s6852_s9 + $0x10] sm:$0xff] %v3869_v15  ;;  %v3872_v32 = vadd.f32 %v4542_v45, %v4172_v5  ;;  %v3863_v2 = vpop.f32.mrb[67].mxu0 }
 0xc15   : > { %3923 = vst [vmem:[%s6852_s9] sm:$0xff] %v3861_v31  ;;  %v3864_v51 = vadd.f32 %v4172_v5, %v3863_v2 }
 0xc16   : > { %3926 = vst [vmem:[%s6852_s9 + $0x18] sm:$0xff] %v3872_v32 }
 0xc17   : > { %3924 = vst [vmem:[%s6852_s9 + $0x8] sm:$0xff] %v3864_v51 }
 0xc21   : > { %v4545_v35 = vpop.f32.mrb[64].mxu1 }
 0xc22   : > { %v3885_v22 = vadd.f32 %v4545_v35, %v4172_v5  ;;  %v3876_v28 = vpop.f32.mrb[65].mxu1 }
 0xc23   : > { %v3877_v4 = vadd.f32 %v4172_v5, %v3876_v28  ;;  %v4546_v23 = vpop.f32.mrb[66].mxu1 }
 0xc24   : > { %3929 = vst [vmem:[%s6852_s9 + $0x30] sm:$0xff] %v3885_v22  ;;  %v3888_v33 = vadd.f32 %v4546_v23, %v4172_v5  ;;  %v3879_v44 = vpop.f32.mrb[67].mxu1 }
 0xc25   : > { %3927 = vst [vmem:[%s6852_s9 + $0x20] sm:$0xff] %v3877_v4  ;;  %v3880_v7 = vadd.f32 %v4172_v5, %v3879_v44 }
 0xc26   : > { %3930 = vst [vmem:[%s6852_s9 + $0x38] sm:$0xff] %v3888_v33 }
 0xc27   : > { %3928 = vst [vmem:[%s6852_s9 + $0x28] sm:$0xff] %v3880_v7 }
 0xc31   : > { %v4549_v56 = vpop.f32.mrb[68].mxu1 }
 0xc32   : > { %v3901_v54 = vadd.f32 %v4549_v56, %v4172_v5  ;;  %v3892_v39 = vpop.f32.mrb[69].mxu1 }
 0xc33   : > { %v3893_v62 = vadd.f32 %v4172_v5, %v3892_v39  ;;  %v4550_v1 = vpop.f32.mrb[70].mxu1 }
 0xc34   : > { %3933 = vst [vmem:[%s6852_s9 + $0x50] sm:$0xff] %v3901_v54  ;;  %v3904_v16 = vadd.f32 %v4550_v1, %v4172_v5  ;;  %v3895_v3 = vpop.f32.mrb[71].mxu1 }
 0xc35   : > { %3931 = vst [vmem:[%s6852_s9 + $0x40] sm:$0xff] %v3893_v62  ;;  %v3896_v20 = vadd.f32 %v4172_v5, %v3895_v3 }
 0xc36   : > { %3934 = vst [vmem:[%s6852_s9 + $0x58] sm:$0xff] %v3904_v16 }
 0xc37   : > { %3932 = vst [vmem:[%s6852_s9 + $0x48] sm:$0xff] %v3896_v20 }
 0xc40   : > { %v4553_v11 = vpop.f32.mrb[72].mxu1 }
 0xc41   : > { %v3917_v49 = vadd.f32 %v4553_v11, %v4172_v5  ;;  %v3908_v12 = vpop.f32.mrb[73].mxu1 }
 0xc42   : > { %v3909_v40 = vadd.f32 %v4172_v5, %v3908_v12  ;;  %v4554_v36 = vpop.f32.mrb[74].mxu1 }
 0xc43   : > { %3937 = vst [vmem:[%s6852_s9 + $0x70] sm:$0xff] %v3917_v49  ;;  %v3920_v46 = vadd.f32 %v4554_v36, %v4172_v5  ;;  %v3911_v29 = vpop.f32.mrb[75].mxu1 }
 0xc44   : > { %3935 = vst [vmem:[%s6852_s9 + $0x60] sm:$0xff] %v3909_v40  ;;  %v3912_v34 = vadd.f32 %v4172_v5, %v3911_v29 }
 0xc45   : > { %3938 = vst [vmem:[%s6852_s9 + $0x78] sm:$0xff] %v3920_v46 }
 0xc46   : > { %3936 = vst [vmem:[%s6852_s9 + $0x68] sm:$0xff] %v3912_v34 }
 0xc47 PF: > { %s21_s27 = sadd.s32 1, %s5062_s27  }
 0xc48   : > { %p18_p3 = scmp.ge.s32.totalorder %s21_s27, 4  }
 0xc4a   :  { %20 = sbr.rel (!%p18_p3) target bundleno = 3 (0x3), region = 102 }
 0xc51   :  { %3961 = vsyncpa [#allocation3], 1 }
 0xc52   :  { %3963 = vsyncpa [#allocation3 + $0x1], 1 }
 0xc53   :  { %3964 = vsyncpa [#allocation5], 1 }
 0xc54   :  { %3965 = vsyncpa [#allocation8], 1 }

</bundles_post_ra>
